<compile_context>
chip_gen: v6e
topology: v6e:2x2x1
jax: 0.10.0
libtpu: 0.0.40
codegen_flags: <defaults>
</compile_context>

<pallas_src>
import functools

import jax
import jax.numpy as jnp
from jax import lax
from jax.experimental import pallas as pl
from jax.experimental.pallas import tpu as pltpu

LANE = 128


def _round_up(x, m):
    return (x + m - 1) // m * m


# ----------------------------------------------------------------------------
# Kernel 1: per-edge gated message (fused attention matmul).
#   x      = [hs | hr | hqr]                               [tE, 3*Dp]
#   s      = ReLU(x @ W_stacked + bqr)                     [tE, Ap]
#   alpha  = sigmoid(sum(s * w_alpha, -1) + b_alpha)       [tE, 1]
#   msg    = alpha * (hs + hr)                             [tE, Dp]
# ----------------------------------------------------------------------------
def _edge_message_kernel(x_ref, w_ref, bqr_ref, wa_ref, ba_ref, out_ref, *,
                         d_pad, mxu_dtype):
    x = x_ref[...]                                            # [tE, 3*Dp] f32
    # One fused K=3*Dp MXU pass (weight already cast to mxu_dtype in wrapper).
    s = jnp.dot(x.astype(mxu_dtype), w_ref[...],
                preferred_element_type=jnp.float32) + bqr_ref[...]
    s = jnp.maximum(s, 0.0)                                   # ReLU
    logit = jnp.sum(s * wa_ref[...], axis=-1, keepdims=True) + ba_ref[...]
    alpha = jax.nn.sigmoid(logit)                             # gate stays f32
    hs = x[:, :d_pad]                                         # lane-aligned
    hr = x[:, d_pad:2 * d_pad]                                # static slices
    out_ref[...] = alpha * (hs + hr)


def edge_messages(x, w_attn, bqr, wa, ba, d_pad, *, tile_e, mxu_dtype):
    E, K = x.shape                       # K = 3 * d_pad
    A = w_attn.shape[1]
    assert E % tile_e == 0
    grid = (E // tile_e,)

    cost = pl.CostEstimate(
        flops=2 * E * K * A + 6 * E * (A + d_pad),
        transcendentals=E,
        bytes_accessed=4 * (E * K + K * A + E * d_pad),
    )

    return pl.pallas_call(
        functools.partial(_edge_message_kernel, d_pad=d_pad,
                          mxu_dtype=mxu_dtype),
        out_shape=jax.ShapeDtypeStruct((E, d_pad), jnp.float32),
        grid_spec=pltpu.PrefetchScalarGridSpec(
            num_scalar_prefetch=0,
            grid=grid,
            in_specs=[pl.BlockSpec((tile_e, K), lambda i: (i, 0)),
                      pl.BlockSpec((K, A), lambda i: (0, 0)),
                      pl.BlockSpec((1, A), lambda i: (0, 0)),
                      pl.BlockSpec((1, A), lambda i: (0, 0)),
                      pl.BlockSpec((1, 1), lambda i: (0, 0))],
            out_specs=pl.BlockSpec((tile_e, d_pad), lambda i: (i, 0)),
        ),
        compiler_params=pltpu.CompilerParams(
            dimension_semantics=("parallel",)),
        cost_estimate=cost,
    )(x, w_attn, bqr, wa, ba)


# ----------------------------------------------------------------------------
# Kernel 2: scatter-sum over destination nodes (one-hot matmul on the MXU,
# E-tiled with a VMEM accumulator) + W_h projection + ReLU.
#   grid = (node tiles [parallel], edge tiles [arbitrary / reduction])
# ----------------------------------------------------------------------------
def _agg_kernel(obj_ref, msg_ref, wh_ref, out_ref, acc_ref, *,
                tile_n, mxu_dtype):
    n = pl.program_id(0)
    k = pl.program_id(1)

    @pl.when(k == 0)
    def _():
        acc_ref[...] = jnp.zeros_like(acc_ref)

    tile_e = obj_ref.shape[1]
    node_ids = (n * tile_n
                + lax.broadcasted_iota(jnp.int32, (tile_n, tile_e), 0))
    onehot = (node_ids == obj_ref[...]).astype(mxu_dtype)     # [tN, tE]
    acc_ref[...] += jnp.dot(onehot, msg_ref[...].astype(mxu_dtype),
                            preferred_element_type=jnp.float32)

    @pl.when(k == pl.num_programs(1) - 1)
    def _():
        hidden = jnp.dot(acc_ref[...].astype(mxu_dtype), wh_ref[...],
                         preferred_element_type=jnp.float32)
        out_ref[...] = jnp.maximum(hidden, 0.0)               # act = relu


def aggregate_and_project(obj_row, msg, wh, n_nodes_pad, *,
                          tile_n, tile_e, mxu_dtype):
    E, D = msg.shape
    assert n_nodes_pad % tile_n == 0 and E % tile_e == 0
    grid = (n_nodes_pad // tile_n, E // tile_e)

    cost = pl.CostEstimate(
        flops=2 * n_nodes_pad * E * D + 2 * n_nodes_pad * D * D,
        transcendentals=0,
        bytes_accessed=4 * ((n_nodes_pad // tile_n) * (E * D + E)
                            + D * D + n_nodes_pad * D),
    )

    return pl.pallas_call(
        functools.partial(_agg_kernel, tile_n=tile_n, mxu_dtype=mxu_dtype),
        out_shape=jax.ShapeDtypeStruct((n_nodes_pad, D), jnp.float32),
        grid_spec=pltpu.PrefetchScalarGridSpec(
            num_scalar_prefetch=0,
            grid=grid,
            in_specs=[pl.BlockSpec((1, tile_e), lambda n, k: (0, k)),
                      pl.BlockSpec((tile_e, D), lambda n, k: (k, 0)),
                      pl.BlockSpec((D, D), lambda n, k: (0, 0))],
            out_specs=pl.BlockSpec((tile_n, D), lambda n, k: (n, 0)),
            scratch_shapes=[pltpu.VMEM((tile_n, D), jnp.float32)],
        ),
        compiler_params=pltpu.CompilerParams(
            dimension_semantics=("parallel", "arbitrary")),
        cost_estimate=cost,
    )(obj_row, msg, wh)


# ----------------------------------------------------------------------------
# GNNLayer forward (glue in plain JAX, hot path in Pallas).
# ----------------------------------------------------------------------------
def gnn_layer_forward(params, q_rel, layer_input, edges, n_nodes, *,
                      tile_e=512, tile_n=128, mxu_dtype=jnp.float32):
    """params: dict of weight matrices (already transposed for x @ W)."""
    D = params["W_h"].shape[0]
    A = params["Ws_attn"].shape[1]
    d_pad = _round_up(D, LANE)
    a_pad = _round_up(A, LANE)

    E = edges.shape[0]
    e_pad = _round_up(E, tile_e)
    n_pad = _round_up(n_nodes, tile_n)

    sub = edges[:, 4]
    rel = edges[:, 2]
    obj = edges[:, 5]
    r_idx = edges[:, 0]

    # Zero-pad tables / weights to the 128-lane width (one-time wrapper work,
    # fused by XLA with the gathers below).
    layer_input_p = jnp.pad(layer_input, ((0, 0), (0, d_pad - D)))
    rela_p = jnp.pad(params["rela_embed"], ((0, 0), (0, d_pad - D)))

    def _pad_w(w):
        return jnp.pad(w, ((0, d_pad - D), (0, a_pad - A)))

    # Stacked attention weight: one (3*Dp, Ap) matrix -> single fused matmul.
    w_attn = jnp.concatenate(
        [_pad_w(params["Ws_attn"]), _pad_w(params["Wr_attn"]),
         _pad_w(params["Wqr_attn"])], axis=0)
    bqr = jnp.pad(params["Wqr_bias"], ((0, 0), (0, a_pad - A)))
    wa = jnp.pad(params["w_alpha"], ((0, 0), (0, a_pad - A)))
    ba = params["w_alpha_b"]
    wh = jnp.pad(params["W_h"], ((0, d_pad - D), (0, d_pad - D)))

    # Gathers / embedding lookups (glue).
    # TODO(synk): fold these into kernel 1 via scalar-prefetched indices with
    # layer_input / rela_embed resident in VMEM to kill the ExDp HBM round-trip.
    hs = jnp.take(layer_input_p, sub, axis=0)                   # [E, Dp]
    hr = jnp.take(rela_p, rel, axis=0)                          # [E, Dp]
    h_qr = jnp.take(jnp.take(rela_p, q_rel, axis=0), r_idx, axis=0)

    x = jnp.concatenate([hs, hr, h_qr], axis=-1)                # [E, 3*Dp]
    x = jnp.pad(x, ((0, e_pad - E), (0, 0)))                    # edge padding

    # Hot path 1: fused attention + gated message.
    msg = edge_messages(x, w_attn.astype(mxu_dtype), bqr, wa, ba, d_pad,
                        tile_e=tile_e, mxu_dtype=mxu_dtype)     # [e_pad, Dp]

    # Padded edges get an out-of-range obj sentinel -> never scattered.
    obj_row = jnp.full((1, e_pad), n_pad, jnp.int32)
    obj_row = obj_row.at[0, :E].set(obj.astype(jnp.int32))

    # Hot path 2: E-tiled scatter-sum + W_h + activation.
    hidden = aggregate_and_project(obj_row, msg, wh.astype(mxu_dtype), n_pad,
                                   tile_n=tile_n, tile_e=tile_e,
                                   mxu_dtype=mxu_dtype)
    return hidden[:n_nodes, :D]


# Pure-JAX reference for validation.
def gnn_layer_reference(params, q_rel, layer_input, edges, n_nodes):
    sub, rel, obj, r_idx = edges[:, 4], edges[:, 2], edges[:, 5], edges[:, 0]
    hs = layer_input[sub]
    hr = params["rela_embed"][rel]
    h_qr = params["rela_embed"][q_rel][r_idx]
    message = hs + hr
    s = jax.nn.relu(hs @ params["Ws_attn"] + hr @ params["Wr_attn"]
                    + h_qr @ params["Wqr_attn"] + params["Wqr_bias"])
    alpha = jax.nn.sigmoid(jnp.sum(s * params["w_alpha"], axis=-1, keepdims=True)
                           + params["w_alpha_b"])
    message = alpha * message
    agg = jax.ops.segment_sum(message, obj, num_segments=n_nodes)
    return jax.nn.relu(agg @ params["W_h"])


if __name__ == "__main__":
    # Small, deterministic configuration.
    n_rel = 5              # relation vocab = 2*n_rel + 1 = 11
    D = 32                 # hidden_dim (in_dim == out_dim)
    A = 32                 # attn_dim
    E = 256                # number of edges
    N_NODES = 128          # len(nodes)
    N_PREV = 80            # rows of layer_input
    B = 4                  # number of queries (q_rel batch)

    key = jax.random.PRNGKey(0)
    ks = jax.random.split(key, 12)

    params = {
        # nn.Embedding(2*n_rel+1, D)
        "rela_embed": jax.random.normal(ks[0], (2 * n_rel + 1, D), jnp.float32) * 0.1,
        # nn.Linear weights stored pre-transposed so forward is x @ W.
        "Ws_attn":  jax.random.normal(ks[1], (D, A), jnp.float32) * 0.1,
        "Wr_attn":  jax.random.normal(ks[2], (D, A), jnp.float32) * 0.1,
        "Wqr_attn": jax.random.normal(ks[3], (D, A), jnp.float32) * 0.1,
        "Wqr_bias": jax.random.normal(ks[4], (1, A), jnp.float32) * 0.1,
        "w_alpha":  jax.random.normal(ks[5], (1, A), jnp.float32) * 0.1,
        "w_alpha_b": jax.random.normal(ks[6], (1, 1), jnp.float32) * 0.1,
        "W_h":      jax.random.normal(ks[7], (D, D), jnp.float32) * 0.1,
    }

    layer_input = jax.random.normal(ks[8], (N_PREV, D), jnp.float32)
    q_rel = jax.random.randint(ks[9], (B,), 0, 2 * n_rel + 1, jnp.int32)

    # edges[:, 0]=r_idx, edges[:, 2]=rel, edges[:, 4]=sub, edges[:, 5]=obj
    ek = jax.random.split(ks[10], 4)
    edges = jnp.zeros((E, 6), jnp.int32)
    edges = edges.at[:, 0].set(jax.random.randint(ek[0], (E,), 0, B, jnp.int32))
    edges = edges.at[:, 2].set(jax.random.randint(ek[1], (E,), 0, 2 * n_rel + 1, jnp.int32))
    edges = edges.at[:, 4].set(jax.random.randint(ek[2], (E,), 0, N_PREV, jnp.int32))
    edges = edges.at[:, 5].set(jax.random.randint(ek[3], (E,), 0, N_NODES, jnp.int32))

    ref = gnn_layer_reference(params, q_rel, layer_input, edges, N_NODES)

    # f32 MXU operands: exact match vs reference.
    out = gnn_layer_forward(params, q_rel, layer_input, edges, N_NODES)
    out = jax.block_until_ready(out)
    assert out.shape == (N_NODES, D)
    assert jnp.allclose(out, ref, atol=1e-4, rtol=1e-4), "f32 mismatch vs reference"

    # bf16 MXU operands (v6e/v7x path): f32 accumulation + f32 gate math.
    out_bf16 = gnn_layer_forward(params, q_rel, layer_input, edges, N_NODES,
                                 mxu_dtype=jnp.bfloat16)
    out_bf16 = jax.block_until_ready(out_bf16)
    assert jnp.allclose(out_bf16, ref, atol=5e-2, rtol=5e-2), "bf16 mismatch vs reference"

    print("KERNEL_OK")
</pallas_src>

<mosaic_0001>
module attributes {stable_mosaic.version = 11 : i64} {
  func.func @_edge_message_kernel(%arg0: i32, %arg1: memref<512x384xf32, #tpu.memory_space<vmem>>, %arg2: memref<384x128xf32, #tpu.memory_space<vmem>>, %arg3: memref<1x128xf32, #tpu.memory_space<vmem>>, %arg4: memref<1x128xf32, #tpu.memory_space<vmem>>, %arg5: memref<1x1xf32, #tpu.memory_space<vmem>>, %arg6: memref<512x128xf32, #tpu.memory_space<vmem>>) attributes {dimension_semantics = [#tpu.dimension_semantics<parallel>], iteration_bounds = array<i64: 1>, scalar_prefetch = 0 : i64, scratch_operands = 0 : i64, tpu.core_type = #tpu.core_type<tc>, window_params = [{transform_indices = @transform_0, window_bounds = array<i64: 512, 384>}, {pipeline_mode = #tpu.pipeline_mode<synchronous>, transform_indices = @transform_1, window_bounds = array<i64: 384, 128>}, {pipeline_mode = #tpu.pipeline_mode<synchronous>, transform_indices = @transform_2, window_bounds = array<i64: 1, 128>}, {pipeline_mode = #tpu.pipeline_mode<synchronous>, transform_indices = @transform_3, window_bounds = array<i64: 1, 128>}, {pipeline_mode = #tpu.pipeline_mode<synchronous>, transform_indices = @transform_4, window_bounds = array<i64: 1, 1>}, {transform_indices = @transform_5, window_bounds = array<i64: 512, 128>}]} {
    %c0 = arith.constant 0 : index
    %c0_0 = arith.constant 0 : index
    %0 = vector.load %arg1[%c0, %c0_0] : memref<512x384xf32, #tpu.memory_space<vmem>>, vector<512x384xf32>
    %c0_1 = arith.constant 0 : index
    %c0_2 = arith.constant 0 : index
    %1 = vector.load %arg2[%c0_1, %c0_2] : memref<384x128xf32, #tpu.memory_space<vmem>>, vector<384x128xf32>
    %cst = arith.constant dense<0.000000e+00> : vector<512x128xf32>
    %2 = tpu.matmul %0, %1, %cst {dimension_numbers = #tpu.dot_dimension_numbers<[1], [0], [0], [1], [0, 0, 1, 1], [], []>} : vector<512x384xf32>, vector<384x128xf32>, vector<512x128xf32> -> vector<512x128xf32>
    %c0_3 = arith.constant 0 : index
    %c0_4 = arith.constant 0 : index
    %3 = vector.load %arg3[%c0_3, %c0_4] : memref<1x128xf32, #tpu.memory_space<vmem>>, vector<1x128xf32>
    %4 = vector.broadcast %3 : vector<1x128xf32> to vector<512x128xf32>
    %5 = arith.addf %2, %4 : vector<512x128xf32>
    %cst_5 = arith.constant 0.000000e+00 : f32
    %6 = vector.broadcast %cst_5 : f32 to vector<512x128xf32>
    %7 = arith.maximumf %5, %6 : vector<512x128xf32>
    %c0_6 = arith.constant 0 : index
    %c0_7 = arith.constant 0 : index
    %8 = vector.load %arg4[%c0_6, %c0_7] : memref<1x128xf32, #tpu.memory_space<vmem>>, vector<1x128xf32>
    %9 = vector.broadcast %8 : vector<1x128xf32> to vector<512x128xf32>
    %10 = arith.mulf %7, %9 : vector<512x128xf32>
    %cst_8 = arith.constant dense<0.000000e+00> : vector<512xf32>
    %11 = vector.multi_reduction <add>, %10, %cst_8 [1] : vector<512x128xf32> to vector<512xf32>
    %12 = vector.shape_cast %11 : vector<512xf32> to vector<512x1xf32>
    %c0_9 = arith.constant 0 : index
    %c0_10 = arith.constant 0 : index
    %13 = vector.load %arg5[%c0_9, %c0_10] : memref<1x1xf32, #tpu.memory_space<vmem>>, vector<1x1xf32>
    %14 = vector.broadcast %13 : vector<1x1xf32> to vector<512x1xf32>
    %15 = arith.addf %12, %14 : vector<512x1xf32>
    %16 = arith.negf %15 : vector<512x1xf32>
    %17 = math.exp %16 : vector<512x1xf32>
    %cst_11 = arith.constant 1.000000e+00 : f32
    %18 = vector.broadcast %cst_11 : f32 to vector<512x1xf32>
    %19 = arith.addf %18, %17 : vector<512x1xf32>
    %20 = arith.divf %18, %19 : vector<512x1xf32>
    %21 = vector.extract_strided_slice %0 {offsets = [0, 0], sizes = [512, 128], strides = [1, 1]} : vector<512x384xf32> to vector<512x128xf32>
    %22 = vector.extract_strided_slice %0 {offsets = [0, 128], sizes = [512, 128], strides = [1, 1]} : vector<512x384xf32> to vector<512x128xf32>
    %23 = arith.addf %21, %22 : vector<512x128xf32>
    %24 = vector.broadcast %20 : vector<512x1xf32> to vector<512x128xf32>
    %25 = arith.mulf %24, %23 : vector<512x128xf32>
    %c0_12 = arith.constant 0 : index
    %c0_13 = arith.constant 0 : index
    %26 = vector.load %arg6[%c0_12, %c0_13] : memref<512x128xf32, #tpu.memory_space<vmem>>, vector<512x128xf32>
    tpu.vector_store %arg6[%c0_12, %c0_13], %25 {strides = array<i32>} : memref<512x128xf32, #tpu.memory_space<vmem>>, vector<512x128xf32>,
    return
  }
  func.func @transform_0(%arg0: i32) -> (i32, i32) {
    %c0_i32 = arith.constant 0 : i32
    %c0_i32_0 = arith.constant 0 : i32
    return %arg0, %c0_i32 : i32, i32
  }
  func.func @transform_1(%arg0: i32) -> (i32, i32) {
    %c0_i32 = arith.constant 0 : i32
    %c0_i32_0 = arith.constant 0 : i32
    %c0_i32_1 = arith.constant 0 : i32
    return %c0_i32, %c0_i32_0 : i32, i32
  }
  func.func @transform_2(%arg0: i32) -> (i32, i32) {
    %c0_i32 = arith.constant 0 : i32
    %c0_i32_0 = arith.constant 0 : i32
    %c0_i32_1 = arith.constant 0 : i32
    return %c0_i32, %c0_i32_0 : i32, i32
  }
  func.func @transform_3(%arg0: i32) -> (i32, i32) {
    %c0_i32 = arith.constant 0 : i32
    %c0_i32_0 = arith.constant 0 : i32
    %c0_i32_1 = arith.constant 0 : i32
    return %c0_i32, %c0_i32_0 : i32, i32
  }
  func.func @transform_4(%arg0: i32) -> (i32, i32) {
    %c0_i32 = arith.constant 0 : i32
    %c0_i32_0 = arith.constant 0 : i32
    %c0_i32_1 = arith.constant 0 : i32
    return %c0_i32, %c0_i32_0 : i32, i32
  }
  func.func @transform_5(%arg0: i32) -> (i32, i32) {
    %c0_i32 = arith.constant 0 : i32
    %c0_i32_0 = arith.constant 0 : i32
    return %arg0, %c0_i32 : i32, i32
  }
}

</mosaic_0001>

<bundles_post_ra>
// kernel: tpu_custom_call.1
= control target key start
LH: loop header
LB: loop body
LE: loop exit
PB: predicated region body
PF: predicated region fallthrough
CT: control target
= control target key end

     0   :  { %s3588_s0 = inlined_call_operand.hbm [shape: f32[512,384], index: 0, kind: input, shape index: {}]   ;;  %s3589_s1 = inlined_call_operand.hbm [shape: f32[384,128], index: 1, kind: input, shape index: {}]   ;;  %s3590_s2 = inlined_call_operand.vmem [shape: f32[1,128], index: 2, kind: input, shape index: {}]   ;;  %s3591_s3 = inlined_call_operand.vmem [shape: f32[1,128], index: 3, kind: input, shape index: {}]   ;;  %s3592_s4 = inlined_call_operand.<no memory space> [shape: f32[1,1], index: 4, kind: input, shape index: {}]   ;;  %s3593_s5 = inlined_call_operand.hbm [shape: f32[512,128], index: 5, kind: output, shape index: {}]  }
   0x1   :  { %v10_v0 = vstv %s3592_s4 }
   0x2   :  { %11 = vst [vmem:[#allocation2] sm:$0x1] %v10_v0 }
   0x3   :  { %12 = vsyncpa [#allocation4], 0 }
   0x4   :  { %13 = vsyncpa [#allocation7], 0 }
   0x5   :  { %14 = vsyncpa [#allocation5], 0  ;;  %s3113_s20 = smov [#allocation3]  }
   0x6   :  { %s20_s21 = sshll.u32 %s3113_s20, 4  ;;  %s21_s21 = int_to_ptr.vmem [resolvable:$true] %s20_s21 }
   0x7   :  { %s3055_s22 = scalar_lea.vmem %s21_s21, 24576  ;;  %p3060_p1 = scmp.lt.s32.totalorder %s21_s21, %s21_s21 }
   0x8   :  { %p3056_p0 = scmp.ne.s32.totalorder %s21_s21, %s3055_s22  ;;  %p3061_p2 = scmp.lt.s32.totalorder %s3055_s22, %s3055_s22 }
   0xa   :  { %p3062_p3 = por %p3061_p2, %p3060_p1 }
   0xc   :  { %p3063_p4 = pnand %p3062_p3, %p3056_p0 }
   0xe   :  { %3066 = shalt.err (!%p3063_p4)
}
   0xf   :  { %s3114_s23 = smov 384   ;;  %s3115_s24 = smov 24  }
  0x10   :  { %26 = dma.hbm_to_vmem [thread:$0]  %s3588_s0, 24576, %s21_s21, [#allocation4], %s3114_s23, %s3114_s23, %s3115_s24  }
  0x11   :  { %s3116_s4 = smov [#allocation6]  }
  0x12   :  { %s32_s27 = sshll.u32 %s3116_s4, 4  ;;  %s33_s27 = int_to_ptr.vmem [resolvable:$true] %s32_s27 }
  0x13   :  { %s3075_s28 = scalar_lea.vmem %s33_s27, 6144  ;;  %p3080_p6 = scmp.lt.s32.totalorder %s33_s27, %s33_s27 }
  0x14   :  { %p3076_p5 = scmp.ne.s32.totalorder %s33_s27, %s3075_s28  ;;  %p3081_p7 = scmp.lt.s32.totalorder %s3075_s28, %s3075_s28 }
  0x16   :  { %p3082_p8 = por %p3081_p7, %p3080_p6 }
  0x18   :  { %p3083_p9 = pnand %p3082_p8, %p3076_p5 }
  0x1a   :  { %3086 = shalt.err (!%p3083_p9)
}
  0x1b   :  { %s3117_s29 = smov 128   ;;  %s3118_s30 = smov 8  }
  0x1c   :  { %38 = dma.hbm_to_vmem [thread:$0]  %s3589_s1, 6144, %s33_s27, [#allocation7], %s3117_s29, %s3117_s29, %s3118_s30  }
  0x1d   :  { %3107 = dma.done.wait [#allocation4], 24576  }
  0x1e   :  { %3108 = vsyncadd [#allocation4], 4294942720 }
  0x1f   :  { %3109 = dma.done.wait [#allocation7], 6144  }
  0x20   :  { %3110 = vsyncadd [#allocation7], 4294961152  ;;  %v3119_v1 = vmov 0.0   ;;  %v258_v2 = vld [vmem:[#allocation6 + $0x78] sm:$0xff]  ;;  %v257_v3 = vld [vmem:[#allocation6 + $0x70] sm:$0xff] }
  0x21   :  { %298 = vmatprep.subr.mxu0 %v3119_v1  ;;  %2591 = vmatprep.subr.mxu1 %v3119_v1  ;;  %v256_v4 = vld [vmem:[#allocation6 + $0x68] sm:$0xff]  ;;  %v255_v5 = vld [vmem:[#allocation6 + $0x60] sm:$0xff]  ;;  %v254_v6 = vld [vmem:[#allocation6 + $0x58] sm:$0xff] }
  0x22   :  { %299 = vmatpush1.msra.mxu0 %v258_v2  ;;  %2623 = vmatpush1.msra.mxu1 %v258_v2  ;;  %v253_v7 = vld [vmem:[#allocation6 + $0x50] sm:$0xff]  ;;  %v252_v8 = vld [vmem:[#allocation6 + $0x48] sm:$0xff]  ;;  %v3176_v9 = vld [vmem:[#allocation3] sm:$0xff] }
  0x23   :  { %300 = vmatprep.subr.mxu0 %v3119_v1  ;;  %2592 = vmatprep.subr.mxu1 %v3119_v1  ;;  %v3178_v10 = vld [vmem:[#allocation3 + $0x8] sm:$0xff]  ;;  %v3180_v11 = vld [vmem:[#allocation3 + $0x480] sm:$0xff]  ;;  %v250_v16 = vld [vmem:[#allocation6 + $0x38] sm:$0xff] }
  0x24   :  { %301 = vmatpush1.msra.mxu0 %v257_v3  ;;  %2624 = vmatpush1.msra.mxu1 %v257_v3  ;;  %v3182_v12 = vld [vmem:[#allocation3 + $0x488] sm:$0xff]  ;;  %v251_v13 = vld [vmem:[#allocation6 + $0x40] sm:$0xff]  ;;  %v3188_v14 = vadd.f32 %v3178_v10, %v3176_v9  ;;  %v249_v17 = vld [vmem:[#allocation6 + $0x30] sm:$0xff] }
  0x25   :  { %302 = vmatprep.subr.mxu0 %v3119_v1  ;;  %2593 = vmatprep.subr.mxu1 %v3119_v1  ;;  %v3192_v15 = vadd.f32 %v3182_v12, %v3180_v11  ;;  %v248_v18 = vld [vmem:[#allocation6 + $0x28] sm:$0xff]  ;;  %v247_v19 = vld [vmem:[#allocation6 + $0x20] sm:$0xff]  ;;  %v246_v20 = vld [vmem:[#allocation6 + $0x18] sm:$0xff] }
  0x26   :  { %303 = vmatpush1.msra.mxu0 %v256_v4  ;;  %2625 = vmatpush1.msra.mxu1 %v256_v4  ;;  %v245_v21 = vld [vmem:[#allocation6 + $0x10] sm:$0xff]  ;;  %v244_v22 = vld [vmem:[#allocation6 + $0x8] sm:$0xff]  ;;  %v243_v23 = vld [vmem:[#allocation6] sm:$0xff] }
  0x27   :  { %304 = vmatprep.subr.mxu0 %v3119_v1  ;;  %2594 = vmatprep.subr.mxu1 %v3119_v1  ;;  %v274_v24 = vld [vmem:[#allocation6 + $0xf8] sm:$0xff]  ;;  %v273_v25 = vld [vmem:[#allocation6 + $0xf0] sm:$0xff]  ;;  %v272_v26 = vld [vmem:[#allocation6 + $0xe8] sm:$0xff] }
  0x28   :  { %305 = vmatpush1.msra.mxu0 %v255_v5  ;;  %2626 = vmatpush1.msra.mxu1 %v255_v5  ;;  %v271_v27 = vld [vmem:[#allocation6 + $0xe0] sm:$0xff]  ;;  %v270_v28 = vld [vmem:[#allocation6 + $0xd8] sm:$0xff]  ;;  %v269_v29 = vld [vmem:[#allocation6 + $0xd0] sm:$0xff] }
  0x29   :  { %306 = vmatprep.subr.mxu0 %v3119_v1  ;;  %2595 = vmatprep.subr.mxu1 %v3119_v1  ;;  %v268_v30 = vld [vmem:[#allocation6 + $0xc8] sm:$0xff]  ;;  %v267_v31 = vld [vmem:[#allocation6 + $0xc0] sm:$0xff]  ;;  %v266_v32 = vld [vmem:[#allocation6 + $0xb8] sm:$0xff] }
  0x2a   :  { %307 = vmatpush1.msra.mxu0 %v254_v6  ;;  %2627 = vmatpush1.msra.mxu1 %v254_v6  ;;  %v265_v33 = vld [vmem:[#allocation6 + $0xb0] sm:$0xff]  ;;  %v264_v34 = vld [vmem:[#allocation6 + $0xa8] sm:$0xff]  ;;  %v263_v35 = vld [vmem:[#allocation6 + $0xa0] sm:$0xff] }
  0x2b   :  { %308 = vmatprep.subr.mxu0 %v3119_v1  ;;  %2596 = vmatprep.subr.mxu1 %v3119_v1  ;;  %v262_v36 = vld [vmem:[#allocation6 + $0x98] sm:$0xff]  ;;  %v261_v37 = vld [vmem:[#allocation6 + $0x90] sm:$0xff]  ;;  %v260_v38 = vld [vmem:[#allocation6 + $0x88] sm:$0xff] }
  0x2c   :  { %309 = vmatpush1.msra.mxu0 %v253_v7  ;;  %2628 = vmatpush1.msra.mxu1 %v253_v7  ;;  %v259_v39 = vld [vmem:[#allocation6 + $0x80] sm:$0xff]  ;;  %v290_v40 = vld [vmem:[#allocation6 + $0x178] sm:$0xff]  ;;  %v289_v43 = vld [vmem:[#allocation6 + $0x170] sm:$0xff] }
  0x2d   :  { %310 = vmatprep.subr.mxu0 %v3119_v1  ;;  %2597 = vmatprep.subr.mxu1 %v3119_v1  ;;  %v55_v41 = vld [vmem:[#allocation3 + $0x20] sm:$0xff]  ;;  %v54_v44 = vld [vmem:[#allocation3 + $0x18] sm:$0xff]  ;;  %v288_v48 = vld [vmem:[#allocation6 + $0x168] sm:$0xff] }
  0x2e   :  { %311 = vmatpush1.msra.mxu0 %v252_v8  ;;  %2629 = vmatpush1.msra.mxu1 %v252_v8  ;;  %v199_v42 = vld [vmem:[#allocation3 + $0x4a0] sm:$0xff]  ;;  %v198_v45 = vld [vmem:[#allocation3 + $0x498] sm:$0xff]  ;;  %v57_v49 = vld [vmem:[#allocation3 + $0x30] sm:$0xff] }
  0x2f   :  { %312 = vmatprep.subr.mxu0 %v3119_v1  ;;  %2598 = vmatprep.subr.mxu1 %v3119_v1  ;;  %v58_v46 = vld [vmem:[#allocation3 + $0x38] sm:$0xff]  ;;  %v201_v50 = vld [vmem:[#allocation3 + $0x4b0] sm:$0xff]  ;;  %v287_v53 = vld [vmem:[#allocation6 + $0x160] sm:$0xff] }
  0x30   :  { %313 = vmatpush1.msra.mxu0 %v251_v13  ;;  %2630 = vmatpush1.msra.mxu1 %v251_v13  ;;  %v202_v47 = vld [vmem:[#allocation3 + $0x4b8] sm:$0xff]  ;;  %v61_v51 = vld [vmem:[#allocation3 + $0x50] sm:$0xff]  ;;  %v60_v54 = vld [vmem:[#allocation3 + $0x48] sm:$0xff] }
  0x31   :  { %314 = vmatprep.subr.mxu0 %v3119_v1  ;;  %2599 = vmatprep.subr.mxu1 %v3119_v1  ;;  %v205_v52 = vld [vmem:[#allocation3 + $0x4d0] sm:$0xff]  ;;  %v204_v55 = vld [vmem:[#allocation3 + $0x4c8] sm:$0xff]  ;;  %v286_v58 = vld [vmem:[#allocation6 + $0x158] sm:$0xff] }
  0x32   :  { %315 = vmatpush1.msra.mxu0 %v250_v16  ;;  %2631 = vmatpush1.msra.mxu1 %v250_v16  ;;  %v64_v56 = vld [vmem:[#allocation3 + $0x68] sm:$0xff]  ;;  %v63_v59 = vld [vmem:[#allocation3 + $0x60] sm:$0xff]  ;;  %v285_v63 = vld [vmem:[#allocation6 + $0x150] sm:$0xff] }
  0x33   :  { %316 = vmatprep.subr.mxu0 %v3119_v1  ;;  %2600 = vmatprep.subr.mxu1 %v3119_v1  ;;  %v208_v57 = vld [vmem:[#allocation3 + $0x4e8] sm:$0xff]  ;;  %v207_v60 = vld [vmem:[#allocation3 + $0x4e0] sm:$0xff]  ;;  %v66_v0 = vld [vmem:[#allocation3 + $0x78] sm:$0xff] }
  0x34   :  { %317 = vmatpush1.msra.mxu0 %v249_v17  ;;  %2632 = vmatpush1.msra.mxu1 %v249_v17  ;;  %v67_v61 = vld [vmem:[#allocation3 + $0x80] sm:$0xff]  ;;  %v70_v2 = vld [vmem:[#allocation3 + $0x98] sm:$0xff]  ;;  %v284_v4 = vld [vmem:[#allocation6 + $0x148] sm:$0xff] }
  0x35   :  { %318 = vmatprep.subr.mxu0 %v3119_v1  ;;  %2601 = vmatprep.subr.mxu1 %v3119_v1  ;;  %v211_v62 = vld [vmem:[#allocation3 + $0x500] sm:$0xff]  ;;  %v214_v3 = vld [vmem:[#allocation3 + $0x518] sm:$0xff]  ;;  %v69_v5 = vld [vmem:[#allocation3 + $0x90] sm:$0xff] }
  0x36   :  { %319 = vmatpush1.msra.mxu0 %v248_v18  ;;  %2633 = vmatpush1.msra.mxu1 %v248_v18  ;;  %v213_v6 = vld [vmem:[#allocation3 + $0x510] sm:$0xff]  ;;  %v220_v13 = vld [vmem:[#allocation3 + $0x548] sm:$0xff]  ;;  %v282_v16 = vld [vmem:[#allocation6 + $0x138] sm:$0xff] }
  0x37   :  { %320 = vmatprep.subr.mxu0 %v3119_v1  ;;  %2602 = vmatprep.subr.mxu1 %v3119_v1  ;;  %v73_v7 = vld [vmem:[#allocation3 + $0xb0] sm:$0xff]  ;;  %v75_v17 = vld [vmem:[#allocation3 + $0xc0] sm:$0xff] }
  0x38   :  { %321 = vmatpush1.msra.mxu0 %v247_v19  ;;  %2634 = vmatpush1.msra.mxu1 %v247_v19  ;;  %v217_v8 = vld [vmem:[#allocation3 + $0x530] sm:$0xff]  ;;  %v219_v18 = vld [vmem:[#allocation3 + $0x540] sm:$0xff] }
  0x39   :  { %322 = vmatprep.subr.mxu0 %v3119_v1  ;;  %2603 = vmatprep.subr.mxu1 %v3119_v1  ;;  %v79_v19 = vld [vmem:[#allocation3 + $0xe0] sm:$0xff] }
  0x3a   :  { %323 = vmatpush1.msra.mxu0 %v246_v20  ;;  %2635 = vmatpush1.msra.mxu1 %v246_v20  ;;  %v223_v20 = vld [vmem:[#allocation3 + $0x560] sm:$0xff] }
  0x3b   :  { %324 = vmatprep.subr.mxu0 %v3119_v1  ;;  %2604 = vmatprep.subr.mxu1 %v3119_v1 }
  0x3c   :  { %325 = vmatpush1.msra.mxu0 %v245_v21  ;;  %2636 = vmatpush1.msra.mxu1 %v245_v21  ;;  %v281_v21 = vld [vmem:[#allocation6 + $0x130] sm:$0xff] }
  0x3d   :  { %326 = vmatprep.subr.mxu0 %v3119_v1  ;;  %2605 = vmatprep.subr.mxu1 %v3119_v1 }
  0x3e   :  { %327 = vmatpush1.msra.mxu0 %v244_v22  ;;  %2637 = vmatpush1.msra.mxu1 %v244_v22  ;;  %v78_v22 = vld [vmem:[#allocation3 + $0xd8] sm:$0xff] }
  0x3f   :  { %328 = vmatprep.subr.mxu0 %v3119_v1  ;;  %2606 = vmatprep.subr.mxu1 %v3119_v1 }
  0x40   :  { %329 = vmatpush1.msra.mxu0 %v243_v23  ;;  %2638 = vmatpush1.msra.mxu1 %v243_v23  ;;  %v222_v23 = vld [vmem:[#allocation3 + $0x558] sm:$0xff] }
  0x41   :  { %330 = vmatprep.subr.mxu0 %v3119_v1  ;;  %2607 = vmatprep.subr.mxu1 %v3119_v1 }
  0x42   :  { %331 = vmatpush2.msra.mxu0 %v274_v24  ;;  %2639 = vmatpush2.msra.mxu1 %v274_v24  ;;  %v82_v24 = vld [vmem:[#allocation3 + $0xf8] sm:$0xff] }
  0x43   :  { %332 = vmatprep.subr.mxu0 %v3119_v1  ;;  %2608 = vmatprep.subr.mxu1 %v3119_v1 }
  0x44   :  { %333 = vmatpush2.msra.mxu0 %v273_v25  ;;  %2640 = vmatpush2.msra.mxu1 %v273_v25  ;;  %v226_v25 = vld [vmem:[#allocation3 + $0x578] sm:$0xff] }
  0x45   :  { %334 = vmatprep.subr.mxu0 %v3119_v1  ;;  %2609 = vmatprep.subr.mxu1 %v3119_v1 }
  0x46   :  { %335 = vmatpush2.msra.mxu0 %v272_v26  ;;  %2641 = vmatpush2.msra.mxu1 %v272_v26  ;;  %v280_v26 = vld [vmem:[#allocation6 + $0x128] sm:$0xff] }
  0x47   :  { %336 = vmatprep.subr.mxu0 %v3119_v1  ;;  %2610 = vmatprep.subr.mxu1 %v3119_v1 }
  0x48   :  { %337 = vmatpush2.msra.mxu0 %v271_v27  ;;  %2642 = vmatpush2.msra.mxu1 %v271_v27  ;;  %v81_v27 = vld [vmem:[#allocation3 + $0xf0] sm:$0xff] }
  0x49   :  { %338 = vmatprep.subr.mxu0 %v3119_v1  ;;  %2611 = vmatprep.subr.mxu1 %v3119_v1 }
  0x4a   :  { %339 = vmatpush2.msra.mxu0 %v270_v28  ;;  %2643 = vmatpush2.msra.mxu1 %v270_v28  ;;  %v225_v28 = vld [vmem:[#allocation3 + $0x570] sm:$0xff] }
  0x4b   :  { %340 = vmatprep.subr.mxu0 %v3119_v1  ;;  %2612 = vmatprep.subr.mxu1 %v3119_v1 }
  0x4c   :  { %341 = vmatpush2.msra.mxu0 %v269_v29  ;;  %2644 = vmatpush2.msra.mxu1 %v269_v29  ;;  %v85_v29 = vld [vmem:[#allocation3 + $0x110] sm:$0xff] }
  0x4d   :  { %342 = vmatprep.subr.mxu0 %v3119_v1  ;;  %2613 = vmatprep.subr.mxu1 %v3119_v1 }
  0x4e   :  { %343 = vmatpush2.msra.mxu0 %v268_v30  ;;  %2645 = vmatpush2.msra.mxu1 %v268_v30  ;;  %v229_v30 = vld [vmem:[#allocation3 + $0x590] sm:$0xff] }
  0x4f   :  { %344 = vmatprep.subr.mxu0 %v3119_v1  ;;  %2614 = vmatprep.subr.mxu1 %v3119_v1 }
  0x50   :  { %345 = vmatpush2.msra.mxu0 %v267_v31  ;;  %2646 = vmatpush2.msra.mxu1 %v267_v31  ;;  %v279_v31 = vld [vmem:[#allocation6 + $0x120] sm:$0xff] }
  0x51   :  { %346 = vmatprep.subr.mxu0 %v3119_v1  ;;  %2615 = vmatprep.subr.mxu1 %v3119_v1 }
  0x52   :  { %347 = vmatpush2.msra.mxu0 %v266_v32  ;;  %2647 = vmatpush2.msra.mxu1 %v266_v32  ;;  %v84_v32 = vld [vmem:[#allocation3 + $0x108] sm:$0xff] }
  0x53   :  { %348 = vmatprep.subr.mxu0 %v3119_v1  ;;  %2616 = vmatprep.subr.mxu1 %v3119_v1 }
  0x54   :  { %349 = vmatpush2.msra.mxu0 %v265_v33  ;;  %2648 = vmatpush2.msra.mxu1 %v265_v33  ;;  %v228_v33 = vld [vmem:[#allocation3 + $0x588] sm:$0xff] }
  0x55   :  { %350 = vmatprep.subr.mxu0 %v3119_v1  ;;  %2617 = vmatprep.subr.mxu1 %v3119_v1 }
  0x56   :  { %351 = vmatpush2.msra.mxu0 %v264_v34  ;;  %2649 = vmatpush2.msra.mxu1 %v264_v34  ;;  %v88_v34 = vld [vmem:[#allocation3 + $0x128] sm:$0xff] }
  0x57   :  { %352 = vmatprep.subr.mxu0 %v3119_v1  ;;  %2618 = vmatprep.subr.mxu1 %v3119_v1 }
  0x58   :  { %353 = vmatpush2.msra.mxu0 %v263_v35  ;;  %2650 = vmatpush2.msra.mxu1 %v263_v35  ;;  %v232_v35 = vld [vmem:[#allocation3 + $0x5a8] sm:$0xff] }
  0x59   :  { %354 = vmatprep.subr.mxu0 %v3119_v1  ;;  %2619 = vmatprep.subr.mxu1 %v3119_v1 }
  0x5a   :  { %355 = vmatpush2.msra.mxu0 %v262_v36  ;;  %2651 = vmatpush2.msra.mxu1 %v262_v36  ;;  %v278_v36 = vld [vmem:[#allocation6 + $0x118] sm:$0xff] }
  0x5b   :  { %356 = vmatprep.subr.mxu0 %v3119_v1  ;;  %2620 = vmatprep.subr.mxu1 %v3119_v1 }
  0x5c   :  { %357 = vmatpush2.msra.mxu0 %v261_v37  ;;  %2652 = vmatpush2.msra.mxu1 %v261_v37  ;;  %v87_v37 = vld [vmem:[#allocation3 + $0x120] sm:$0xff] }
  0x5d   :  { %358 = vmatprep.subr.mxu0 %v3119_v1  ;;  %2621 = vmatprep.subr.mxu1 %v3119_v1 }
  0x5e   :  { %359 = vmatpush2.msra.mxu0 %v260_v38  ;;  %2653 = vmatpush2.msra.mxu1 %v260_v38  ;;  %v231_v38 = vld [vmem:[#allocation3 + $0x5a0] sm:$0xff] }
  0x5f   :  { %360 = vmatprep.subr.mxu0 %v3119_v1  ;;  %2622 = vmatprep.subr.mxu1 %v3119_v1  ;;  %v210_v1 = vld [vmem:[#allocation3 + $0x4f8] sm:$0xff] }
  0x60   :  { %361 = vmatpush2.msra.mxu0 %v259_v39  ;;  %2654 = vmatpush2.msra.mxu1 %v259_v39  ;;  %v91_v39 = vld [vmem:[#allocation3 + $0x140] sm:$0xff] }
  0x61   :  { %362 = vmatprep.mubr.f32.mxu0 %v3178_v10  ;;  %602 = vmatprep.mubr.f32.mxu1 %v3182_v12  ;;  %v72_v10 = vld [vmem:[#allocation3 + $0xa8] sm:$0xff] }
  0x62   :  { %363 = vmatmul.mubr.f32.vlgmr.msra.gmra.mxu0 %v3176_v9  ;;  %603 = vmatmul.mubr.f32.vlgmr.msra.gmra.mxu1 %v3180_v11  ;;  %v283_v9 = vld [vmem:[#allocation6 + $0x140] sm:$0xff]  ;;  %v216_v11 = vld [vmem:[#allocation3 + $0x528] sm:$0xff] }
  0x63   :  { %2463 = vmatprep.subr.mxu1 %v290_v40  ;;  %367 = vmatprep.mubr.f32.mxu0 %v55_v41  ;;  %v76_v12 = vld [vmem:[#allocation3 + $0xc8] sm:$0xff]  ;;  %v277_v41 = vld [vmem:[#allocation6 + $0x110] sm:$0xff] }
  0x64   :  { %2464 = vmatpush3.msra.mxu1 %v290_v40  ;;  %607 = vmatprep.mubr.f32.mxu1 %v199_v42  ;;  %v235_v40 = vld [vmem:[#allocation3 + $0x5c0] sm:$0xff]  ;;  %v90_v42 = vld [vmem:[#allocation3 + $0x138] sm:$0xff] }
  0x65   :  { %2465 = vmatprep.subr.mxu1 %v289_v43 }
  0x66   :  { %368 = vmatmul.mubr.f32.gmra.mxu0 %v54_v44  ;;  %608 = vmatmul.mubr.f32.gmra.mxu1 %v198_v45  ;;  %v94_v44 = vld [vmem:[#allocation3 + $0x158] sm:$0xff] }
  0x67   :  { %2466 = vmatpush3.msra.mxu1 %v289_v43  ;;  %372 = vmatprep.mubr.f32.mxu0 %v58_v46  ;;  %v234_v43 = vld [vmem:[#allocation3 + $0x5b8] sm:$0xff]  ;;  %v276_v46 = vld [vmem:[#allocation6 + $0x108] sm:$0xff] }
  0x68   :  { %612 = vmatprep.mubr.f32.mxu1 %v202_v47  ;;  %2467 = vmatprep.subr.mxu1 %v288_v48  ;;  %v238_v45 = vld [vmem:[#allocation3 + $0x5d8] sm:$0xff]  ;;  %v93_v47 = vld [vmem:[#allocation3 + $0x150] sm:$0xff] }
  0x69   :  { %2468 = vmatpush3.msra.mxu1 %v288_v48  ;;  %v237_v48 = vld [vmem:[#allocation3 + $0x5d0] sm:$0xff] }
  0x6a   :  { %373 = vmatmul.mubr.f32.gmra.mxu0 %v57_v49  ;;  %613 = vmatmul.mubr.f32.gmra.mxu1 %v201_v50  ;;  %v97_v49 = vld [vmem:[#allocation3 + $0x170] sm:$0xff] }
  0x6b   :  { %377 = vmatprep.mubr.f32.mxu0 %v61_v51  ;;  %617 = vmatprep.mubr.f32.mxu1 %v205_v52  ;;  %v241_v50 = vld [vmem:[#allocation3 + $0x5f0] sm:$0xff]  ;;  %v275_v51 = vld [vmem:[#allocation6 + $0x100] sm:$0xff]  ;;  %v96_v52 = vld [vmem:[#allocation3 + $0x168] sm:$0xff] }
  0x6c   :  { %2469 = vmatprep.subr.mxu1 %v287_v53 }
  0x6d   :  { %2470 = vmatpush3.msra.mxu1 %v287_v53  ;;  %v240_v53 = vld [vmem:[#allocation3 + $0x5e8] sm:$0xff] }
  0x6e   :  { %378 = vmatmul.mubr.f32.gmra.mxu0 %v60_v54  ;;  %618 = vmatmul.mubr.f32.gmra.mxu1 %v204_v55  ;;  %v100_v54 = vld [vmem:[#allocation3 + $0x188] sm:$0xff]  ;;  %v53_v55 = vld [vmem:[#allocation3 + $0x10] sm:$0xff] }
  0x6f   :  { %382 = vmatprep.mubr.f32.mxu0 %v64_v56  ;;  %622 = vmatprep.mubr.f32.mxu1 %v208_v57  ;;  %v99_v56 = vld [vmem:[#allocation3 + $0x180] sm:$0xff]  ;;  %v56_v57 = vld [vmem:[#allocation3 + $0x28] sm:$0xff] }
  0x70   :  { %2471 = vmatprep.subr.mxu1 %v286_v58 }
  0x71   :  { %2472 = vmatpush3.msra.mxu1 %v286_v58  ;;  %v103_v58 = vld [vmem:[#allocation3 + $0x1a0] sm:$0xff] }
  0x72   :  { %383 = vmatmul.mubr.f32.gmra.mxu0 %v63_v59  ;;  %623 = vmatmul.mubr.f32.gmra.mxu1 %v207_v60  ;;  %v59_v59 = vld [vmem:[#allocation3 + $0x40] sm:$0xff]  ;;  %v102_v60 = vld [vmem:[#allocation3 + $0x198] sm:$0xff] }
  0x73   :  { %387 = vmatprep.mubr.f32.mxu0 %v67_v61  ;;  %627 = vmatprep.mubr.f32.mxu1 %v211_v62  ;;  %v62_v61 = vld [vmem:[#allocation3 + $0x58] sm:$0xff] }
  0x74   :  { %2473 = vmatprep.subr.mxu1 %v285_v63  ;;  %v106_v62 = vld [vmem:[#allocation3 + $0x1b8] sm:$0xff] }
  0x75   :  { %2474 = vmatpush3.msra.mxu1 %v285_v63  ;;  %v65_v63 = vld [vmem:[#allocation3 + $0x70] sm:$0xff] }
  0x76   :  { %388 = vmatmul.mubr.f32.gmra.mxu0 %v66_v0  ;;  %628 = vmatmul.mubr.f32.gmra.mxu1 %v210_v1  ;;  %v105_v0 = vld [vmem:[#allocation3 + $0x1b0] sm:$0xff]  ;;  %v68_v1 = vld [vmem:[#allocation3 + $0x88] sm:$0xff] }
  0x77   :  { %392 = vmatprep.mubr.f32.mxu0 %v70_v2  ;;  %632 = vmatprep.mubr.f32.mxu1 %v214_v3  ;;  %v109_v2 = vld [vmem:[#allocation3 + $0x1d0] sm:$0xff]  ;;  %v71_v3 = vld [vmem:[#allocation3 + $0xa0] sm:$0xff] }
  0x78   :  { %2475 = vmatprep.subr.mxu1 %v284_v4 }
  0x79   :  { %2476 = vmatpush3.msra.mxu1 %v284_v4  ;;  %v108_v4 = vld [vmem:[#allocation3 + $0x1c8] sm:$0xff] }
  0x7a   :  { %393 = vmatmul.mubr.f32.gmra.mxu0 %v69_v5  ;;  %633 = vmatmul.mubr.f32.gmra.mxu1 %v213_v6  ;;  %v74_v5 = vld [vmem:[#allocation3 + $0xb8] sm:$0xff]  ;;  %v112_v6 = vld [vmem:[#allocation3 + $0x1e8] sm:$0xff] }
  0x7b   :  { %397 = vmatprep.mubr.f32.mxu0 %v73_v7  ;;  %637 = vmatprep.mubr.f32.mxu1 %v217_v8  ;;  %v77_v7 = vld [vmem:[#allocation3 + $0xd0] sm:$0xff]  ;;  %v111_v8 = vld [vmem:[#allocation3 + $0x1e0] sm:$0xff] }
  0x7c   :  { %2477 = vmatprep.subr.mxu1 %v283_v9 }
  0x7d   :  { %2478 = vmatpush3.msra.mxu1 %v283_v9  ;;  %v80_v9 = vld [vmem:[#allocation3 + $0xe8] sm:$0xff] }
  0x7e   :  { %398 = vmatmul.mubr.f32.gmra.mxu0 %v72_v10  ;;  %638 = vmatmul.mubr.f32.gmra.mxu1 %v216_v11  ;;  %v115_v10 = vld [vmem:[#allocation3 + $0x200] sm:$0xff] }
  0x7f   :  { %402 = vmatprep.mubr.f32.mxu0 %v76_v12  ;;  %642 = vmatprep.mubr.f32.mxu1 %v220_v13  ;;  %v83_v11 = vld [vmem:[#allocation3 + $0x100] sm:$0xff]  ;;  %v114_v12 = vld [vmem:[#allocation3 + $0x1f8] sm:$0xff] }
  0x80   :  { %2479 = vmatprep.subr.mxu1 %v282_v16  ;;  %v86_v13 = vld [vmem:[#allocation3 + $0x118] sm:$0xff] }
  0x81   :  { %2480 = vmatpush3.msra.mxu1 %v282_v16  ;;  %v118_v16 = vld [vmem:[#allocation3 + $0x218] sm:$0xff] }
  0x82   :  { %403 = vmatmul.mubr.f32.gmra.mxu0 %v75_v17  ;;  %643 = vmatmul.mubr.f32.gmra.mxu1 %v219_v18  ;;  %v89_v17 = vld [vmem:[#allocation3 + $0x130] sm:$0xff] }
  0x83   :  { %407 = vmatprep.mubr.f32.mxu0 %v79_v19  ;;  %647 = vmatprep.mubr.f32.mxu1 %v223_v20  ;;  %v117_v18 = vld [vmem:[#allocation3 + $0x210] sm:$0xff]  ;;  %v92_v19 = vld [vmem:[#allocation3 + $0x148] sm:$0xff] }
  0x84   :  { %2481 = vmatprep.subr.mxu1 %v281_v21  ;;  %v121_v20 = vld [vmem:[#allocation3 + $0x230] sm:$0xff] }
  0x85   :  { %2482 = vmatpush3.msra.mxu1 %v281_v21  ;;  %v95_v21 = vld [vmem:[#allocation3 + $0x160] sm:$0xff] }
  0x86   :  { %408 = vmatmul.mubr.f32.gmra.mxu0 %v78_v22  ;;  %648 = vmatmul.mubr.f32.gmra.mxu1 %v222_v23  ;;  %v120_v22 = vld [vmem:[#allocation3 + $0x228] sm:$0xff]  ;;  %v98_v23 = vld [vmem:[#allocation3 + $0x178] sm:$0xff] }
  0x87   :  { %412 = vmatprep.mubr.f32.mxu0 %v82_v24  ;;  %652 = vmatprep.mubr.f32.mxu1 %v226_v25  ;;  %v124_v24 = vld [vmem:[#allocation3 + $0x248] sm:$0xff]  ;;  %v101_v25 = vld [vmem:[#allocation3 + $0x190] sm:$0xff] }
  0x88   :  { %2483 = vmatprep.subr.mxu1 %v280_v26 }
  0x89   :  { %2484 = vmatpush3.msra.mxu1 %v280_v26  ;;  %v123_v26 = vld [vmem:[#allocation3 + $0x240] sm:$0xff] }
  0x8a   :  { %413 = vmatmul.mubr.f32.gmra.mxu0 %v81_v27  ;;  %653 = vmatmul.mubr.f32.gmra.mxu1 %v225_v28  ;;  %v104_v27 = vld [vmem:[#allocation3 + $0x1a8] sm:$0xff]  ;;  %v127_v28 = vld [vmem:[#allocation3 + $0x260] sm:$0xff] }
  0x8b   :  { %417 = vmatprep.mubr.f32.mxu0 %v85_v29  ;;  %657 = vmatprep.mubr.f32.mxu1 %v229_v30  ;;  %v107_v29 = vld [vmem:[#allocation3 + $0x1c0] sm:$0xff]  ;;  %v126_v30 = vld [vmem:[#allocation3 + $0x258] sm:$0xff] }
  0x8c   :  { %2485 = vmatprep.subr.mxu1 %v279_v31 }
  0x8d   :  { %2486 = vmatpush3.msra.mxu1 %v279_v31  ;;  %v110_v31 = vld [vmem:[#allocation3 + $0x1d8] sm:$0xff] }
  0x8e   :  { %418 = vmatmul.mubr.f32.gmra.mxu0 %v84_v32  ;;  %658 = vmatmul.mubr.f32.gmra.mxu1 %v228_v33  ;;  %v130_v32 = vld [vmem:[#allocation3 + $0x278] sm:$0xff]  ;;  %v113_v33 = vld [vmem:[#allocation3 + $0x1f0] sm:$0xff] }
  0x8f   :  { %422 = vmatprep.mubr.f32.mxu0 %v88_v34  ;;  %662 = vmatprep.mubr.f32.mxu1 %v232_v35  ;;  %v129_v34 = vld [vmem:[#allocation3 + $0x270] sm:$0xff]  ;;  %v116_v35 = vld [vmem:[#allocation3 + $0x208] sm:$0xff] }
  0x90   :  { %2487 = vmatprep.subr.mxu1 %v278_v36 }
  0x91   :  { %2488 = vmatpush3.msra.mxu1 %v278_v36  ;;  %v133_v36 = vld [vmem:[#allocation3 + $0x290] sm:$0xff] }
  0x92   :  { %423 = vmatmul.mubr.f32.gmra.mxu0 %v87_v37  ;;  %663 = vmatmul.mubr.f32.gmra.mxu1 %v231_v38  ;;  %v119_v37 = vld [vmem:[#allocation3 + $0x220] sm:$0xff]  ;;  %v132_v38 = vld [vmem:[#allocation3 + $0x288] sm:$0xff] }
  0x93   :  { %427 = vmatprep.mubr.f32.mxu0 %v91_v39  ;;  %667 = vmatprep.mubr.f32.mxu1 %v235_v40  ;;  %v122_v39 = vld [vmem:[#allocation3 + $0x238] sm:$0xff]  ;;  %v136_v40 = vld [vmem:[#allocation3 + $0x2a8] sm:$0xff] }
  0x94   :  { %2489 = vmatprep.subr.mxu1 %v277_v41 }
  0x95   :  { %2490 = vmatpush3.msra.mxu1 %v277_v41  ;;  %v125_v41 = vld [vmem:[#allocation3 + $0x250] sm:$0xff] }
  0x96   :  { %428 = vmatmul.mubr.f32.gmra.mxu0 %v90_v42  ;;  %668 = vmatmul.mubr.f32.gmra.mxu1 %v234_v43  ;;  %v135_v42 = vld [vmem:[#allocation3 + $0x2a0] sm:$0xff]  ;;  %v128_v43 = vld [vmem:[#allocation3 + $0x268] sm:$0xff] }
  0x97   :  { %432 = vmatprep.mubr.f32.mxu0 %v94_v44  ;;  %672 = vmatprep.mubr.f32.mxu1 %v238_v45  ;;  %v139_v44 = vld [vmem:[#allocation3 + $0x2c0] sm:$0xff] }
  0x98   :  { %2491 = vmatprep.subr.mxu1 %v276_v46  ;;  %v131_v45 = vld [vmem:[#allocation3 + $0x280] sm:$0xff] }
  0x99   :  { %2492 = vmatpush3.msra.mxu1 %v276_v46  ;;  %v138_v46 = vld [vmem:[#allocation3 + $0x2b8] sm:$0xff] }
  0x9a   :  { %433 = vmatmul.mubr.f32.gmra.mxu0 %v93_v47  ;;  %673 = vmatmul.mubr.f32.gmra.mxu1 %v237_v48  ;;  %v134_v47 = vld [vmem:[#allocation3 + $0x298] sm:$0xff] }
  0x9b   :  { %437 = vmatprep.mubr.f32.mxu0 %v97_v49  ;;  %677 = vmatprep.mubr.f32.mxu1 %v241_v50  ;;  %v142_v48 = vld [vmem:[#allocation3 + $0x2d8] sm:$0xff]  ;;  %v137_v49 = vld [vmem:[#allocation3 + $0x2b0] sm:$0xff] }
  0x9c   :  { %2493 = vmatprep.subr.mxu1 %v275_v51  ;;  %v141_v50 = vld [vmem:[#allocation3 + $0x2d0] sm:$0xff] }
  0x9d   :  { %2494 = vmatpush3.msra.mxu1 %v275_v51  ;;  %v140_v51 = vld [vmem:[#allocation3 + $0x2c8] sm:$0xff] }
  0x9e   :  { %438 = vmatmul.mubr.f32.gmra.mxu0 %v96_v52  ;;  %678 = vmatmul.mubr.f32.gmra.mxu1 %v240_v53  ;;  %v145_v52 = vld [vmem:[#allocation3 + $0x2f0] sm:$0xff]  ;;  %v143_v53 = vld [vmem:[#allocation3 + $0x2e0] sm:$0xff] }
  0x9f   :  { %442 = vmatprep.mubr.f32.mxu0 %v100_v54  ;;  %2495 = vmatprep.mubr.f32.mxu1 %v53_v55  ;;  %v144_v54 = vld [vmem:[#allocation3 + $0x2e8] sm:$0xff]  ;;  %v146_v55 = vld [vmem:[#allocation3 + $0x2f8] sm:$0xff] }
  0xa2   :  { %443 = vmatmul.mubr.f32.gmra.mxu0 %v99_v56  ;;  %2496 = vmatmul.mubr.f32.vlgmr.msra.gmra.mxu1 %v56_v57  ;;  %v148_v56 = vld [vmem:[#allocation3 + $0x308] sm:$0xff]  ;;  %v149_v57 = vld [vmem:[#allocation3 + $0x310] sm:$0xff] }
  0xa3   :  { %447 = vmatprep.mubr.f32.mxu0 %v103_v58  ;;  %2498 = vmatprep.mubr.f32.mxu1 %v59_v59  ;;  %v147_v58 = vld [vmem:[#allocation3 + $0x300] sm:$0xff]  ;;  %v152_v59 = vld [vmem:[#allocation3 + $0x328] sm:$0xff] }
  0xa6   :  { %448 = vmatmul.mubr.f32.gmra.mxu0 %v102_v60  ;;  %2499 = vmatmul.mubr.f32.gmra.mxu1 %v62_v61  ;;  %v151_v60 = vld [vmem:[#allocation3 + $0x320] sm:$0xff] }
  0xa7   :  { %452 = vmatprep.mubr.f32.mxu0 %v106_v62  ;;  %2501 = vmatprep.mubr.f32.mxu1 %v65_v63  ;;  %v155_v61 = vld [vmem:[#allocation3 + $0x340] sm:$0xff]  ;;  %v150_v62 = vld [vmem:[#allocation3 + $0x318] sm:$0xff] }
  0xa8   :  { %v158_v63 = vld [vmem:[#allocation3 + $0x358] sm:$0xff] }
  0xaa   :  { %453 = vmatmul.mubr.f32.gmra.mxu0 %v105_v0  ;;  %2502 = vmatmul.mubr.f32.gmra.mxu1 %v68_v1  ;;  %v154_v0 = vld [vmem:[#allocation3 + $0x338] sm:$0xff]  ;;  %v161_v1 = vld [vmem:[#allocation3 + $0x370] sm:$0xff] }
  0xab   :  { %457 = vmatprep.mubr.f32.mxu0 %v109_v2  ;;  %2504 = vmatprep.mubr.f32.mxu1 %v71_v3  ;;  %v153_v2 = vld [vmem:[#allocation3 + $0x330] sm:$0xff]  ;;  %v164_v3 = vld [vmem:[#allocation3 + $0x388] sm:$0xff] }
  0xae   :  { %458 = vmatmul.mubr.f32.gmra.mxu0 %v108_v4  ;;  %2505 = vmatmul.mubr.f32.gmra.mxu1 %v74_v5  ;;  %v157_v4 = vld [vmem:[#allocation3 + $0x350] sm:$0xff]  ;;  %v167_v5 = vld [vmem:[#allocation3 + $0x3a0] sm:$0xff] }
  0xaf   :  { %462 = vmatprep.mubr.f32.mxu0 %v112_v6  ;;  %2507 = vmatprep.mubr.f32.mxu1 %v77_v7  ;;  %v156_v6 = vld [vmem:[#allocation3 + $0x348] sm:$0xff]  ;;  %v170_v7 = vld [vmem:[#allocation3 + $0x3b8] sm:$0xff] }
  0xb2   :  { %463 = vmatmul.mubr.f32.gmra.mxu0 %v111_v8  ;;  %2508 = vmatmul.mubr.f32.gmra.mxu1 %v80_v9  ;;  %v160_v8 = vld [vmem:[#allocation3 + $0x368] sm:$0xff]  ;;  %v173_v9 = vld [vmem:[#allocation3 + $0x3d0] sm:$0xff] }
  0xb3   :  { %467 = vmatprep.mubr.f32.mxu0 %v115_v10  ;;  %2510 = vmatprep.mubr.f32.mxu1 %v83_v11  ;;  %v159_v10 = vld [vmem:[#allocation3 + $0x360] sm:$0xff]  ;;  %v176_v11 = vld [vmem:[#allocation3 + $0x3e8] sm:$0xff] }
  0xb6   :  { %468 = vmatmul.mubr.f32.gmra.mxu0 %v114_v12  ;;  %2511 = vmatmul.mubr.f32.gmra.mxu1 %v86_v13  ;;  %v163_v12 = vld [vmem:[#allocation3 + $0x380] sm:$0xff] }
  0xb7   :  { %472 = vmatprep.mubr.f32.mxu0 %v118_v16  ;;  %2513 = vmatprep.mubr.f32.mxu1 %v89_v17  ;;  %v179_v13 = vld [vmem:[#allocation3 + $0x400] sm:$0xff]  ;;  %v162_v16 = vld [vmem:[#allocation3 + $0x378] sm:$0xff] }
  0xb8   :  { %v182_v17 = vld [vmem:[#allocation3 + $0x418] sm:$0xff] }
  0xba   :  { %473 = vmatmul.mubr.f32.gmra.mxu0 %v117_v18  ;;  %2514 = vmatmul.mubr.f32.gmra.mxu1 %v92_v19  ;;  %v166_v18 = vld [vmem:[#allocation3 + $0x398] sm:$0xff]  ;;  %v185_v19 = vld [vmem:[#allocation3 + $0x430] sm:$0xff] }
  0xbb   :  { %477 = vmatprep.mubr.f32.mxu0 %v121_v20  ;;  %2516 = vmatprep.mubr.f32.mxu1 %v95_v21  ;;  %v165_v20 = vld [vmem:[#allocation3 + $0x390] sm:$0xff]  ;;  %v188_v21 = vld [vmem:[#allocation3 + $0x448] sm:$0xff] }
  0xbe   :  { %478 = vmatmul.mubr.f32.gmra.mxu0 %v120_v22  ;;  %2517 = vmatmul.mubr.f32.gmra.mxu1 %v98_v23  ;;  %v169_v22 = vld [vmem:[#allocation3 + $0x3b0] sm:$0xff]  ;;  %v191_v23 = vld [vmem:[#allocation3 + $0x460] sm:$0xff] }
  0xbf   :  { %482 = vmatprep.mubr.f32.mxu0 %v124_v24  ;;  %2519 = vmatprep.mubr.f32.mxu1 %v101_v25  ;;  %v168_v24 = vld [vmem:[#allocation3 + $0x3a8] sm:$0xff]  ;;  %v194_v25 = vld [vmem:[#allocation3 + $0x478] sm:$0xff] }
  0xc2   :  { %483 = vmatmul.mubr.f32.gmra.mxu0 %v123_v26  ;;  %2520 = vmatmul.mubr.f32.gmra.mxu1 %v104_v27  ;;  %v172_v26 = vld [vmem:[#allocation3 + $0x3c8] sm:$0xff]  ;;  %v197_v27 = vld [vmem:[#allocation3 + $0x490] sm:$0xff] }
  0xc3   :  { %487 = vmatprep.mubr.f32.mxu0 %v127_v28  ;;  %2522 = vmatprep.mubr.f32.mxu1 %v107_v29  ;;  %v171_v28 = vld [vmem:[#allocation3 + $0x3c0] sm:$0xff]  ;;  %v200_v29 = vld [vmem:[#allocation3 + $0x4a8] sm:$0xff] }
  0xc6   :  { %488 = vmatmul.mubr.f32.gmra.mxu0 %v126_v30  ;;  %2523 = vmatmul.mubr.f32.gmra.mxu1 %v110_v31  ;;  %v175_v30 = vld [vmem:[#allocation3 + $0x3e0] sm:$0xff] }
  0xc7   :  { %492 = vmatprep.mubr.f32.mxu0 %v130_v32  ;;  %2525 = vmatprep.mubr.f32.mxu1 %v113_v33  ;;  %v203_v31 = vld [vmem:[#allocation3 + $0x4c0] sm:$0xff]  ;;  %v174_v32 = vld [vmem:[#allocation3 + $0x3d8] sm:$0xff] }
  0xc8   :  { %v206_v33 = vld [vmem:[#allocation3 + $0x4d8] sm:$0xff] }
  0xca   :  { %493 = vmatmul.mubr.f32.gmra.mxu0 %v129_v34  ;;  %2526 = vmatmul.mubr.f32.gmra.mxu1 %v116_v35  ;;  %v178_v34 = vld [vmem:[#allocation3 + $0x3f8] sm:$0xff]  ;;  %v209_v35 = vld [vmem:[#allocation3 + $0x4f0] sm:$0xff] }
  0xcb   :  { %497 = vmatprep.mubr.f32.mxu0 %v133_v36  ;;  %2528 = vmatprep.mubr.f32.mxu1 %v119_v37  ;;  %v177_v36 = vld [vmem:[#allocation3 + $0x3f0] sm:$0xff]  ;;  %v212_v37 = vld [vmem:[#allocation3 + $0x508] sm:$0xff] }
  0xce   :  { %498 = vmatmul.mubr.f32.gmra.mxu0 %v132_v38  ;;  %2529 = vmatmul.mubr.f32.gmra.mxu1 %v122_v39  ;;  %v181_v38 = vld [vmem:[#allocation3 + $0x410] sm:$0xff]  ;;  %v215_v39 = vld [vmem:[#allocation3 + $0x520] sm:$0xff] }
  0xcf   :  { %502 = vmatprep.mubr.f32.mxu0 %v136_v40  ;;  %2531 = vmatprep.mubr.f32.mxu1 %v125_v41  ;;  %v180_v40 = vld [vmem:[#allocation3 + $0x408] sm:$0xff]  ;;  %v218_v41 = vld [vmem:[#allocation3 + $0x538] sm:$0xff] }
  0xd2   :  { %503 = vmatmul.mubr.f32.gmra.mxu0 %v135_v42  ;;  %2532 = vmatmul.mubr.f32.gmra.mxu1 %v128_v43  ;;  %v184_v42 = vld [vmem:[#allocation3 + $0x428] sm:$0xff]  ;;  %v221_v43 = vld [vmem:[#allocation3 + $0x550] sm:$0xff] }
  0xd3   :  { %507 = vmatprep.mubr.f32.mxu0 %v139_v44  ;;  %2534 = vmatprep.mubr.f32.mxu1 %v131_v45  ;;  %v183_v44 = vld [vmem:[#allocation3 + $0x420] sm:$0xff]  ;;  %v224_v45 = vld [vmem:[#allocation3 + $0x568] sm:$0xff] }
  0xd6   :  { %508 = vmatmul.mubr.f32.gmra.mxu0 %v138_v46  ;;  %2535 = vmatmul.mubr.f32.gmra.mxu1 %v134_v47  ;;  %v187_v46 = vld [vmem:[#allocation3 + $0x440] sm:$0xff] }
  0xd7   :  { %512 = vmatprep.mubr.f32.mxu0 %v142_v48  ;;  %2537 = vmatprep.mubr.f32.mxu1 %v137_v49  ;;  %v227_v47 = vld [vmem:[#allocation3 + $0x580] sm:$0xff]  ;;  %v186_v48 = vld [vmem:[#allocation3 + $0x438] sm:$0xff] }
  0xd8   :  { %v230_v49 = vld [vmem:[#allocation3 + $0x598] sm:$0xff] }
  0xda   :  { %513 = vmatmul.mubr.f32.gmra.mxu0 %v141_v50  ;;  %2538 = vmatmul.mubr.f32.gmra.mxu1 %v140_v51  ;;  %v190_v50 = vld [vmem:[#allocation3 + $0x458] sm:$0xff]  ;;  %v233_v51 = vld [vmem:[#allocation3 + $0x5b0] sm:$0xff] }
  0xdb   :  { %517 = vmatprep.mubr.f32.mxu0 %v145_v52  ;;  %2540 = vmatprep.mubr.f32.mxu1 %v143_v53  ;;  %v189_v52 = vld [vmem:[#allocation3 + $0x450] sm:$0xff]  ;;  %v236_v53 = vld [vmem:[#allocation3 + $0x5c8] sm:$0xff] }
  0xde   :  { %518 = vmatmul.mubr.f32.gmra.mxu0 %v144_v54  ;;  %2541 = vmatmul.mubr.f32.gmra.mxu1 %v146_v55  ;;  %v193_v54 = vld [vmem:[#allocation3 + $0x470] sm:$0xff]  ;;  %v239_v55 = vld [vmem:[#allocation3 + $0x5e0] sm:$0xff] }
  0xdf   :  { %522 = vmatprep.mubr.f32.mxu0 %v148_v56  ;;  %2543 = vmatprep.mubr.f32.mxu1 %v149_v57  ;;  %v192_v56 = vld [vmem:[#allocation3 + $0x468] sm:$0xff]  ;;  %v242_v57 = vld [vmem:[#allocation3 + $0x5f8] sm:$0xff] }
  0xe2   :  { %523 = vmatmul.mubr.f32.gmra.mxu0 %v147_v58  ;;  %2544 = vmatmul.mubr.f32.gmra.mxu1 %v152_v59 }
  0xe3   :  { %527 = vmatprep.mubr.f32.mxu0 %v151_v60  ;;  %2546 = vmatprep.mubr.f32.mxu1 %v155_v61 }
  0xe6   :  { %528 = vmatmul.mubr.f32.gmra.mxu0 %v150_v62  ;;  %2547 = vmatmul.mubr.f32.gmra.mxu1 %v158_v63 }
  0xe7   :  { %532 = vmatprep.mubr.f32.mxu0 %v154_v0  ;;  %2549 = vmatprep.mubr.f32.mxu1 %v161_v1 }
  0xea   :  { %533 = vmatmul.mubr.f32.gmra.mxu0 %v153_v2  ;;  %2550 = vmatmul.mubr.f32.gmra.mxu1 %v164_v3 }
  0xeb   :  { %537 = vmatprep.mubr.f32.mxu0 %v157_v4  ;;  %2552 = vmatprep.mubr.f32.mxu1 %v167_v5 }
  0xee   :  { %538 = vmatmul.mubr.f32.gmra.mxu0 %v156_v6  ;;  %2553 = vmatmul.mubr.f32.gmra.mxu1 %v170_v7 }
  0xef   :  { %542 = vmatprep.mubr.f32.mxu0 %v160_v8  ;;  %2555 = vmatprep.mubr.f32.mxu1 %v173_v9 }
  0xf2   :  { %543 = vmatmul.mubr.f32.gmra.mxu0 %v159_v10  ;;  %2556 = vmatmul.mubr.f32.gmra.mxu1 %v176_v11 }
  0xf3   :  { %547 = vmatprep.mubr.f32.mxu0 %v163_v12  ;;  %2558 = vmatprep.mubr.f32.mxu1 %v179_v13 }
  0xf6   :  { %548 = vmatmul.mubr.f32.gmra.mxu0 %v162_v16  ;;  %2559 = vmatmul.mubr.f32.gmra.mxu1 %v182_v17 }
  0xf7   :  { %552 = vmatprep.mubr.f32.mxu0 %v166_v18  ;;  %2561 = vmatprep.mubr.f32.mxu1 %v185_v19 }
  0xfa   :  { %553 = vmatmul.mubr.f32.gmra.mxu0 %v165_v20  ;;  %2562 = vmatmul.mubr.f32.gmra.mxu1 %v188_v21 }
  0xfb   :  { %557 = vmatprep.mubr.f32.mxu0 %v169_v22  ;;  %2564 = vmatprep.mubr.f32.mxu1 %v191_v23 }
  0xfe   :  { %558 = vmatmul.mubr.f32.gmra.mxu0 %v168_v24  ;;  %2565 = vmatmul.mubr.f32.gmra.mxu1 %v194_v25 }
  0xff   :  { %562 = vmatprep.mubr.f32.mxu0 %v172_v26  ;;  %2567 = vmatprep.mubr.f32.mxu1 %v197_v27 }
 0x102   :  { %563 = vmatmul.mubr.f32.gmra.mxu0 %v171_v28  ;;  %2568 = vmatmul.mubr.f32.gmra.mxu1 %v200_v29 }
 0x103   :  { %567 = vmatprep.mubr.f32.mxu0 %v175_v30  ;;  %2570 = vmatprep.mubr.f32.mxu1 %v203_v31 }
 0x106   :  { %568 = vmatmul.mubr.f32.gmra.mxu0 %v174_v32  ;;  %2571 = vmatmul.mubr.f32.gmra.mxu1 %v206_v33 }
 0x107   :  { %572 = vmatprep.mubr.f32.mxu0 %v178_v34  ;;  %2573 = vmatprep.mubr.f32.mxu1 %v209_v35 }
 0x10a   :  { %573 = vmatmul.mubr.f32.gmra.mxu0 %v177_v36  ;;  %2574 = vmatmul.mubr.f32.gmra.mxu1 %v212_v37 }
 0x10b   :  { %577 = vmatprep.mubr.f32.mxu0 %v181_v38  ;;  %2576 = vmatprep.mubr.f32.mxu1 %v215_v39 }
 0x10e   :  { %578 = vmatmul.mubr.f32.gmra.mxu0 %v180_v40  ;;  %2577 = vmatmul.mubr.f32.gmra.mxu1 %v218_v41 }
 0x10f   :  { %582 = vmatprep.mubr.f32.mxu0 %v184_v42  ;;  %2579 = vmatprep.mubr.f32.mxu1 %v221_v43 }
 0x112   :  { %583 = vmatmul.mubr.f32.gmra.mxu0 %v183_v44  ;;  %2580 = vmatmul.mubr.f32.gmra.mxu1 %v224_v45 }
 0x113   :  { %587 = vmatprep.mubr.f32.mxu0 %v187_v46  ;;  %2582 = vmatprep.mubr.f32.mxu1 %v227_v47 }
 0x116   :  { %588 = vmatmul.mubr.f32.gmra.mxu0 %v186_v48  ;;  %2583 = vmatmul.mubr.f32.gmra.mxu1 %v230_v49 }
 0x117   :  { %592 = vmatprep.mubr.f32.mxu0 %v190_v50  ;;  %2585 = vmatprep.mubr.f32.mxu1 %v233_v51 }
 0x11a   :  { %593 = vmatmul.mubr.f32.gmra.mxu0 %v189_v52  ;;  %2586 = vmatmul.mubr.f32.gmra.mxu1 %v236_v53 }
 0x11b   :  { %597 = vmatprep.mubr.f32.mxu0 %v193_v54  ;;  %2588 = vmatprep.mubr.f32.mxu1 %v239_v55 }
 0x11e   :  { %598 = vmatmul.mubr.f32.gmra.mxu0 %v192_v56  ;;  %2589 = vmatmul.mubr.f32.gmra.mxu1 %v242_v57 }
 0x122   :  { %v3248_v58 = vpop.f32.mrf.mxu0  ;;  %v3250_v59 = vpop.f32.mrf.mxu1 }
 0x124   :  { %v366_v60 = vpop.f32.mrf.mxu0  ;;  %v606_v61 = vpop.f32.mrf.mxu1 }
 0x125   :  { %v3311_v60 = vld [vmem:[%s3590_s2] ss:$0 sm:$0xff]  ;;  %s3121_s2 = smov [#allocation8]  }
 0x126   :  { %v369_v62 = vpop.f32.mrf.mxu0  ;;  %v3252_v63 = vpop.f32.mrf.mxu1 }
 0x128   :  { %v371_v0 = vpop.f32.mrf.mxu0  ;;  %v611_v1 = vpop.f32.mrf.mxu1 }
 0x129   :  { %v370_v1 = vadd.f32 %v3311_v60, %v369_v62 }
 0x12a   :  { %v3254_v2 = vpop.f32.mrf.mxu0  ;;  %v3256_v3 = vpop.f32.mrf.mxu1 }
 0x12c   :  { %v376_v4 = vpop.f32.mrf.mxu0  ;;  %v616_v5 = vpop.f32.mrf.mxu1 }
 0x12e   :  { %v379_v6 = vpop.f32.mrf.mxu0  ;;  %v3258_v7 = vpop.f32.mrf.mxu1 }
 0x130   :  { %v381_v8 = vpop.f32.mrf.mxu0  ;;  %v621_v9 = vpop.f32.mrf.mxu1 }
 0x131   :  { %v365_v8 = vadd.f32 %v3311_v60, %v3248_v58 }
 0x132   :  { %v3260_v10 = vpop.f32.mrf.mxu0  ;;  %v3262_v11 = vpop.f32.mrf.mxu1 }
 0x134   :  { %v386_v12 = vpop.f32.mrf.mxu0  ;;  %v626_v13 = vpop.f32.mrf.mxu1 }
 0x136   :  { %v3264_v16 = vpop.f32.mrf.mxu0  ;;  %v3266_v17 = vpop.f32.mrf.mxu1 }
 0x138   :  { %v391_v18 = vpop.f32.mrf.mxu0  ;;  %v631_v19 = vpop.f32.mrf.mxu1 }
 0x139   :  { %v3321_v18 = vld [vmem:[%s3591_s3] ss:$0 sm:$0xff]  ;;  %v380_v19 = vadd.f32 %v3311_v60, %v379_v6  ;;  %v385_v6 = vadd.f32 %v3311_v60, %v3260_v10  ;;  %s2303_s3 = sshll.u32 %s3121_s2, 4  ;;  %s2304_s3 = int_to_ptr.vmem [resolvable:$true] %s2303_s3 }
 0x13a   :  { %v3268_v20 = vpop.f32.mrf.mxu0  ;;  %v3270_v21 = vpop.f32.mrf.mxu1  ;;  %s3087_s10 = scalar_lea.vmem %s2304_s3, 8192  ;;  %p3092_p11 = scmp.lt.s32.totalorder %s2304_s3, %s2304_s3 }
 0x13b   :  { %v395_v10 = vadd.f32 %v3311_v60, %v3268_v20  ;;  %p3088_p10 = scmp.ne.s32.totalorder %s2304_s3, %s3087_s10  ;;  %p3093_p12 = scmp.lt.s32.totalorder %s3087_s10, %s3087_s10 }
 0x13c   :  { %v396_v22 = vpop.f32.mrf.mxu0  ;;  %v636_v23 = vpop.f32.mrf.mxu1 }
 0x13d   :  { %p3094_p13 = por %p3093_p12, %p3092_p11 }
 0x13e   :  { %v3272_v24 = vpop.f32.mrf.mxu0  ;;  %v3274_v25 = vpop.f32.mrf.mxu1 }
 0x13f   :  { %p3095_p0 = pnand %p3094_p13, %p3088_p10 }
 0x140   :  { %v401_v26 = vpop.f32.mrf.mxu0  ;;  %v641_v27 = vpop.f32.mrf.mxu1 }
 0x141   :  { %v375_v27 = vadd.f32 %v3311_v60, %v3254_v2 }
 0x142   :  { %v3276_v28 = vpop.f32.mrf.mxu0  ;;  %v3278_v29 = vpop.f32.mrf.mxu1 }
 0x143   :  { %v405_v20 = vadd.f32 %v3311_v60, %v3276_v28 }
 0x144   :  { %v406_v30 = vpop.f32.mrf.mxu0  ;;  %v646_v31 = vpop.f32.mrf.mxu1 }
 0x146   :  { %v3280_v32 = vpop.f32.mrf.mxu0  ;;  %v3282_v33 = vpop.f32.mrf.mxu1 }
 0x148   :  { %v411_v34 = vpop.f32.mrf.mxu0  ;;  %v651_v35 = vpop.f32.mrf.mxu1 }
 0x14a   :  { %v3284_v36 = vpop.f32.mrf.mxu0  ;;  %v3286_v37 = vpop.f32.mrf.mxu1 }
 0x14b   :  { %v415_v28 = vadd.f32 %v3311_v60, %v3284_v36 }
 0x14c   :  { %v416_v38 = vpop.f32.mrf.mxu0  ;;  %v656_v39 = vpop.f32.mrf.mxu1 }
 0x14d   :  { %v390_v38 = vadd.f32 %v3311_v60, %v3264_v16  ;;  %v400_v16 = vadd.f32 %v3311_v60, %v3272_v24 }
 0x14e   :  { %v3288_v40 = vpop.f32.mrf.mxu0  ;;  %v3290_v41 = vpop.f32.mrf.mxu1 }
 0x150   :  { %v421_v42 = vpop.f32.mrf.mxu0  ;;  %v661_v43 = vpop.f32.mrf.mxu1 }
 0x152   :  { %v3292_v44 = vpop.f32.mrf.mxu0  ;;  %v3294_v45 = vpop.f32.mrf.mxu1 }
 0x153   :  { %v425_v36 = vadd.f32 %v3311_v60, %v3292_v44 }
 0x154   :  { %v426_v46 = vpop.f32.mrf.mxu0  ;;  %v666_v47 = vpop.f32.mrf.mxu1 }
 0x156   :  { %v3296_v48 = vpop.f32.mrf.mxu0  ;;  %v3298_v49 = vpop.f32.mrf.mxu1 }
 0x158   :  { %v431_v50 = vpop.f32.mrf.mxu0  ;;  %v671_v51 = vpop.f32.mrf.mxu1 }
 0x15a   :  { %v3300_v52 = vpop.f32.mrf.mxu0  ;;  %v3302_v53 = vpop.f32.mrf.mxu1 }
 0x15b   :  { %v435_v44 = vadd.f32 %v3311_v60, %v3300_v52 }
 0x15c   :  { %v436_v54 = vpop.f32.mrf.mxu0  ;;  %v676_v55 = vpop.f32.mrf.mxu1 }
 0x15e   :  { %v3304_v56 = vpop.f32.mrf.mxu0  ;;  %v3306_v57 = vpop.f32.mrf.mxu1 }
 0x160   :  { %v441_v61 = vpop.f32.mrf.mxu0  ;;  %v681_v0 = vpop.f32.mrf.mxu1 }
 0x162   :  { %v3314_v4 = vpop.f32.mrf.mxu0  ;;  %v2497_v5 = vpop.f32.mrf.mxu1 }
 0x163   :  { %v755_v9 = vadd.f32 %v2497_v5, %v370_v1  ;;  %v445_v52 = vadd.f32 %v3311_v60, %v3314_v4 }
 0x164   :  { %v446_v12 = vpop.f32.mrf.mxu0  ;;  %v749_v13 = vpop.f32.mrf.mxu1 }
 0x165   :  { %v1069_v22 = vmax.f32 %v755_v9, 0.0  ;;  %v750_v23 = vadd.f32 %v749_v13, %v365_v8 }
 0x166   :  { %v3324_v26 = vpop.f32.mrf.mxu0  ;;  %v2500_v62 = vpop.f32.mrf.mxu1 }
 0x167   :  { %v1068_v30 = vmax.f32 %v750_v23, 0.0  ;;  %v765_v58 = vadd.f32 %v2500_v62, %v380_v19  ;;  %v1140_v31 = vmul.f32 %v3321_v18, %v1069_v22  ;;  %v410_v22 = vadd.f32 %v3311_v60, %v3280_v32 }
 0x168   :  { %v451_v34 = vpop.f32.mrf.mxu0  ;;  %v759_v35 = vpop.f32.mrf.mxu1  ;;  %v420_v32 = vadd.f32 %v3311_v60, %v3288_v40  ;;  %v430_v40 = vadd.f32 %v3311_v60, %v3296_v48  ;;  %v440_v48 = vadd.f32 %v3311_v60, %v3304_v56  ;;  %v450_v56 = vadd.f32 %v3311_v60, %v3324_v26 }
 0x169   :  { %v1071_v39 = vmax.f32 %v765_v58, 0.0  ;;  %v760_v42 = vadd.f32 %v759_v35, %v375_v27  ;;  %1205 = vadd.xlane.f32.xlu0 %v1140_v31  ;;  %v1139_v51 = vmul.f32 %v3321_v18, %v1068_v30 }
 0x16a   :  { %v3333_v43 = vpop.f32.mrf.mxu0  ;;  %v2503_v46 = vpop.f32.mrf.mxu1 }
 0x16b   :  { %v1070_v47 = vmax.f32 %v760_v42, 0.0  ;;  %v775_v2 = vadd.f32 %v2503_v46, %v390_v38  ;;  %v1142_v50 = vmul.f32 %v3321_v18, %v1071_v39  ;;  %v455_v4 = vadd.f32 %v3311_v60, %v3333_v43 }
 0x16c   :  { %v456_v54 = vpop.f32.mrf.mxu0  ;;  %v769_v55 = vpop.f32.mrf.mxu1 }
 0x16d   :  { %v770_v61 = vadd.f32 %v769_v55, %v385_v6  ;;  %1209 = vadd.xlane.f32.xlu1 %v1142_v50  ;;  %1203 = vadd.xlane.f32.xlu0 %v1139_v51  ;;  %v1073_v5 = vmax.f32 %v775_v2, 0.0  ;;  %v1141_v12 = vmul.f32 %v3321_v18, %v1070_v47 }
 0x16e   :  { %v3341_v0 = vpop.f32.mrf.mxu0  ;;  %v2506_v1 = vpop.f32.mrf.mxu1 }
 0x16f   :  { %v1072_v8 = vmax.f32 %v770_v61, 0.0  ;;  %v785_v9 = vadd.f32 %v2506_v1, %v400_v16  ;;  %v1144_v34 = vmul.f32 %v3321_v18, %v1073_v5  ;;  %v460_v26 = vadd.f32 %v3311_v60, %v3341_v0 }
 0x170   :  { %v461_v13 = vpop.f32.mrf.mxu0  ;;  %v779_v19 = vpop.f32.mrf.mxu1 }
 0x171   :  { %v780_v24 = vadd.f32 %v779_v19, %v395_v10  ;;  %1207 = vadd.xlane.f32.xlu1 %v1141_v12  ;;  %v1143_v23 = vmul.f32 %v3321_v18, %v1072_v8  ;;  %v1075_v30 = vmax.f32 %v785_v9, 0.0 }
 0x172   :  { %v3349_v62 = vpop.f32.mrf.mxu0  ;;  %v2509_v27 = vpop.f32.mrf.mxu1 }
 0x173   :  { %v1074_v58 = vmax.f32 %v780_v24, 0.0  ;;  %v795_v31 = vadd.f32 %v2509_v27, %v410_v22  ;;  %1211 = vadd.xlane.f32.xlu0 %v1143_v23  ;;  %v1146_v51 = vmul.f32 %v3321_v18, %v1075_v30  ;;  %v465_v43 = vadd.f32 %v3311_v60, %v3349_v62 }
 0x174   :  { %v466_v35 = vpop.f32.mrf.mxu0  ;;  %v789_v38 = vpop.f32.mrf.mxu1 }
 0x175   :  { %v790_v39 = vadd.f32 %v789_v38, %v405_v20  ;;  %1213 = vadd.xlane.f32.xlu1 %v1144_v34  ;;  %v1145_v42 = vmul.f32 %v3321_v18, %v1074_v58  ;;  %v1077_v47 = vmax.f32 %v795_v31, 0.0 }
 0x176   :  { %v3357_v6 = vpop.f32.mrf.mxu0  ;;  %v2512_v46 = vpop.f32.mrf.mxu1 }
 0x177   :  { %v1076_v2 = vmax.f32 %v790_v39, 0.0  ;;  %v805_v50 = vadd.f32 %v2512_v46, %v420_v32  ;;  %1215 = vadd.xlane.f32.xlu0 %v1145_v42  ;;  %v1148_v12 = vmul.f32 %v3321_v18, %v1077_v47  ;;  %v470_v0 = vadd.f32 %v3311_v60, %v3357_v6 }
 0x178   :  { %v471_v54 = vpop.f32.mrf.mxu0  ;;  %v799_v55 = vpop.f32.mrf.mxu1 }
 0x179   :  { %v800_v16 = vadd.f32 %v799_v55, %v415_v28  ;;  %1217 = vadd.xlane.f32.xlu1 %v1146_v51  ;;  %v1147_v61 = vmul.f32 %v3321_v18, %v1076_v2  ;;  %v1079_v5 = vmax.f32 %v805_v50, 0.0 }
 0x17a   :  { %v3365_v10 = vpop.f32.mrf.mxu0  ;;  %v2515_v1 = vpop.f32.mrf.mxu1 }
 0x17b   :  { %v1078_v8 = vmax.f32 %v800_v16, 0.0  ;;  %v815_v9 = vadd.f32 %v2515_v1, %v430_v40  ;;  %1219 = vadd.xlane.f32.xlu0 %v1147_v61  ;;  %v1150_v31 = vmul.f32 %v3321_v18, %v1079_v5 }
 0x17c   :  { %v476_v13 = vpop.f32.mrf.mxu0  ;;  %v809_v19 = vpop.f32.mrf.mxu1 }
 0x17d   :  { %v810_v22 = vadd.f32 %v809_v19, %v425_v36  ;;  %1221 = vadd.xlane.f32.xlu1 %v1148_v12  ;;  %v1149_v24 = vmul.f32 %v3321_v18, %v1078_v8  ;;  %v1081_v27 = vmax.f32 %v815_v9, 0.0 }
 0x17e   :  { %v479_v23 = vpop.f32.mrf.mxu0  ;;  %v2518_v20 = vpop.f32.mrf.mxu1 }
 0x17f   :  { %v1080_v30 = vmax.f32 %v810_v22, 0.0  ;;  %v825_v58 = vadd.f32 %v2518_v20, %v440_v48  ;;  %1223 = vadd.xlane.f32.xlu0 %v1149_v24  ;;  %v1152_v2 = vmul.f32 %v3321_v18, %v1081_v27 }
 0x180   :  { %v481_v34 = vpop.f32.mrf.mxu0  ;;  %v819_v35 = vpop.f32.mrf.mxu1 }
 0x181   :  { %v820_v38 = vadd.f32 %v819_v35, %v435_v44  ;;  %1225 = vadd.xlane.f32.xlu1 %v1150_v31  ;;  %v1151_v32 = vmul.f32 %v3321_v18, %v1080_v30  ;;  %v1083_v28 = vmax.f32 %v825_v58, 0.0  ;;  %v480_v58 = vadd.f32 %v3311_v60, %v479_v23 }
 0x182   :  { %v484_v39 = vpop.f32.mrf.mxu0  ;;  %v2521_v42 = vpop.f32.mrf.mxu1  ;;  %v475_v34 = vadd.f32 %v3311_v60, %v3365_v10 }
 0x183   :  { %v1082_v46 = vmax.f32 %v820_v38, 0.0  ;;  %v835_v47 = vadd.f32 %v2521_v42, %v450_v56  ;;  %1227 = vadd.xlane.f32.xlu0 %v1151_v32  ;;  %v1154_v5 = vmul.f32 %v3321_v18, %v1083_v28 }
 0x184   :  { %v486_v50 = vpop.f32.mrf.mxu0  ;;  %v829_v51 = vpop.f32.mrf.mxu1 }
 0x185   :  { %v830_v54 = vadd.f32 %v829_v51, %v445_v52  ;;  %1229 = vadd.xlane.f32.xlu1 %v1152_v2  ;;  %v1153_v55 = vmul.f32 %v3321_v18, %v1082_v46  ;;  %v1085_v61 = vmax.f32 %v835_v47, 0.0  ;;  %v485_v2 = vadd.f32 %v3311_v60, %v484_v39 }
 0x186   :  { %v489_v40 = vpop.f32.mrf.mxu0  ;;  %v2524_v16 = vpop.f32.mrf.mxu1 }
 0x187   :  { %v1084_v36 = vmax.f32 %v830_v54, 0.0  ;;  %v845_v1 = vadd.f32 %v2524_v16, %v460_v26  ;;  %1231 = vadd.xlane.f32.xlu0 %v1153_v55  ;;  %v1156_v20 = vmul.f32 %v3321_v18, %v1085_v61  ;;  %v490_v46 = vadd.f32 %v3311_v60, %v489_v40 }
 0x188   :  { %v491_v8 = vpop.f32.mrf.mxu0  ;;  %v839_v9 = vpop.f32.mrf.mxu1 }
 0x189   :  { %v840_v12 = vadd.f32 %v839_v9, %v455_v4  ;;  %1233 = vadd.xlane.f32.xlu1 %v1154_v5  ;;  %v1155_v13 = vmul.f32 %v3321_v18, %v1084_v36  ;;  %v1087_v22 = vmax.f32 %v845_v1, 0.0  ;;  %v3120_v8 = vmov 0  }
 0x18a   :  { %v494_v19 = vpop.f32.mrf.mxu0  ;;  %v2527_v48 = vpop.f32.mrf.mxu1  ;;  %2664 = vset.pattern.permute.xlu1 %v3120_v8  ;;  %2665 = vset.pattern.permute.xlu0 %v3120_v8 }
 0x18b   :  { %v1086_v24 = vmax.f32 %v840_v12, 0.0  ;;  %v855_v44 = vadd.f32 %v2527_v48, %v470_v0  ;;  %1235 = vadd.xlane.f32.xlu0 %v1155_v13  ;;  %v1158_v52 = vmul.f32 %v3321_v18, %v1087_v22  ;;  %v495_v1 = vadd.f32 %v3311_v60, %v494_v19 }
 0x18c   :  { %v496_v27 = vpop.f32.mrf.mxu0  ;;  %v849_v30 = vpop.f32.mrf.mxu1 }
 0x18d   :  { %v850_v6 = vadd.f32 %v849_v30, %v465_v43  ;;  %1237 = vadd.xlane.f32.xlu1 %v1156_v20  ;;  %v1157_v31 = vmul.f32 %v3321_v18, %v1086_v24  ;;  %v1089_v56 = vmax.f32 %v855_v44, 0.0 }
 0x18e   :  { %v499_v62 = vpop.f32.mrf.mxu0  ;;  %v2530_v35 = vpop.f32.mrf.mxu1 }
 0x18f   :  { %v1088_v38 = vmax.f32 %v850_v6, 0.0  ;;  %v865_v32 = vadd.f32 %v2530_v35, %v480_v58  ;;  %1239 = vadd.xlane.f32.xlu0 %v1157_v31  ;;  %v1160_v55 = vmul.f32 %v3321_v18, %v1089_v56  ;;  %v500_v61 = vadd.f32 %v3311_v60, %v499_v62 }
 0x190   :  { %v501_v42 = vpop.f32.mrf.mxu0  ;;  %v859_v28 = vpop.f32.mrf.mxu1 }
 0x191   :  { %v860_v23 = vadd.f32 %v859_v28, %v475_v34  ;;  %1241 = vadd.xlane.f32.xlu1 %v1158_v52  ;;  %v1159_v47 = vmul.f32 %v3321_v18, %v1088_v38  ;;  %v1091_v51 = vmax.f32 %v865_v32, 0.0 }
 0x192   :  { %v504_v50 = vpop.f32.mrf.mxu0  ;;  %v2533_v10 = vpop.f32.mrf.mxu1 }
 0x193   :  { %v1090_v26 = vmax.f32 %v860_v23, 0.0  ;;  %v875_v54 = vadd.f32 %v2533_v10, %v490_v46  ;;  %1243 = vadd.xlane.f32.xlu0 %v1159_v47  ;;  %v1162_v13 = vmul.f32 %v3321_v18, %v1091_v51  ;;  %v505_v19 = vadd.f32 %v3311_v60, %v504_v50 }
 0x194   :  { %v506_v4 = vpop.f32.mrf.mxu0  ;;  %v869_v16 = vpop.f32.mrf.mxu1 }
 0x195   :  { %v870_v36 = vadd.f32 %v869_v16, %v485_v2  ;;  %1245 = vadd.xlane.f32.xlu1 %v1160_v55  ;;  %v1161_v40 = vmul.f32 %v3321_v18, %v1090_v26  ;;  %v1093_v9 = vmax.f32 %v875_v54, 0.0 }
 0x196   :  { %v509_v5 = vpop.f32.mrf.mxu0  ;;  %v2536_v39 = vpop.f32.mrf.mxu1 }
 0x197   :  { %v1092_v0 = vmax.f32 %v870_v36, 0.0  ;;  %v885_v12 = vadd.f32 %v2536_v39, %v500_v61  ;;  %1247 = vadd.xlane.f32.xlu0 %v1161_v40  ;;  %v510_v22 = vadd.f32 %v3311_v60, %v509_v5  ;;  %v1164_v31 = vmul.f32 %v3321_v18, %v1093_v9 }
 0x198   :  { %v511_v43 = vpop.f32.mrf.mxu0  ;;  %v879_v48 = vpop.f32.mrf.mxu1 }
 0x199   :  { %v880_v24 = vadd.f32 %v879_v48, %v495_v1  ;;  %1249 = vadd.xlane.f32.xlu1 %v1162_v13  ;;  %v1163_v44 = vmul.f32 %v3321_v18, %v1092_v0  ;;  %v1095_v30 = vmax.f32 %v885_v12, 0.0 }
 0x19a   :  { %v514_v20 = vpop.f32.mrf.mxu0  ;;  %v2539_v27 = vpop.f32.mrf.mxu1 }
 0x19b   :  { %v1094_v58 = vmax.f32 %v880_v24, 0.0  ;;  %v895_v6 = vadd.f32 %v2539_v27, %v510_v22  ;;  %1251 = vadd.xlane.f32.xlu0 %v1163_v44  ;;  %v515_v38 = vadd.f32 %v3311_v60, %v514_v20  ;;  %v1166_v23 = vmul.f32 %v3321_v18, %v1095_v30 }
 0x19c   :  { %v516_v34 = vpop.f32.mrf.mxu0  ;;  %v889_v62 = vpop.f32.mrf.mxu1 }
 0x19d   :  { %v890_v35 = vadd.f32 %v889_v62, %v505_v19  ;;  %1253 = vadd.xlane.f32.xlu1 %v1164_v31  ;;  %v1165_v56 = vmul.f32 %v3321_v18, %v1094_v58  ;;  %v1097_v42 = vmax.f32 %v895_v6, 0.0 }
 0x19e   :  { %v519_v32 = vpop.f32.mrf.mxu0  ;;  %v2542_v52 = vpop.f32.mrf.mxu1 }
 0x19f   :  { %v1096_v28 = vmax.f32 %v890_v35, 0.0  ;;  %v520_v46 = vadd.f32 %v3311_v60, %v519_v32  ;;  %1255 = vadd.xlane.f32.xlu0 %v1165_v56  ;;  %v1168_v61 = vmul.f32 %v3321_v18, %v1097_v42 }
 0x1a0   :  { %v521_v47 = vpop.f32.mrf.mxu0  ;;  %v899_v2 = vpop.f32.mrf.mxu1 }
 0x1a1   :  { %v905_v50 = vadd.f32 %v2542_v52, %v520_v46  ;;  %v900_v10 = vadd.f32 %v899_v2, %v515_v38  ;;  %1257 = vadd.xlane.f32.xlu1 %v1166_v23  ;;  %v1167_v51 = vmul.f32 %v3321_v18, %v1096_v28 }
 0x1a2   :  { %v524_v26 = vpop.f32.mrf.mxu0  ;;  %v2545_v54 = vpop.f32.mrf.mxu1 }
 0x1a3   :  { %v1099_v55 = vmax.f32 %v905_v50, 0.0  ;;  %v1098_v4 = vmax.f32 %v900_v10, 0.0  ;;  %v525_v16 = vadd.f32 %v3311_v60, %v524_v26  ;;  %1259 = vadd.xlane.f32.xlu0 %v1167_v51 }
 0x1a4   :  { %v526_v36 = vpop.f32.mrf.mxu0  ;;  %v909_v40 = vpop.f32.mrf.mxu1 }
 0x1a5   :  { %v910_v1 = vadd.f32 %v909_v40, %v525_v16  ;;  %1261 = vadd.xlane.f32.xlu1 %v1168_v61  ;;  %v1169_v5 = vmul.f32 %v3321_v18, %v1098_v4  ;;  %v1170_v12 = vmul.f32 %v3321_v18, %v1099_v55 }
 0x1a6   :  { %v529_v39 = vpop.f32.mrf.mxu0  ;;  %v2548_v8 = vpop.f32.mrf.mxu1 }
 0x1a7   :  { %v1100_v9 = vmax.f32 %v910_v1, 0.0  ;;  %v530_v0 = vadd.f32 %v3311_v60, %v529_v39  ;;  %1263 = vadd.xlane.f32.xlu0 %v1169_v5 }
 0x1a8   :  { %v531_v13 = vpop.f32.mrf.mxu0  ;;  %v919_v43 = vpop.f32.mrf.mxu1 }
 0x1a9   :  { %v915_v48 = vadd.f32 %v2545_v54, %v530_v0  ;;  %1265 = vadd.xlane.f32.xlu1 %v1170_v12  ;;  %v1171_v22 = vmul.f32 %v3321_v18, %v1100_v9 }
 0x1aa   :  { %v534_v24 = vpop.f32.mrf.mxu0  ;;  %v2551_v44 = vpop.f32.mrf.mxu1 }
 0x1ab   :  { %v1101_v19 = vmax.f32 %v915_v48, 0.0  ;;  %v535_v20 = vadd.f32 %v3311_v60, %v534_v24  ;;  %1267 = vadd.xlane.f32.xlu0 %v1171_v22 }
 0x1ac   :  { %v536_v27 = vpop.f32.mrf.mxu0  ;;  %v929_v30 = vpop.f32.mrf.mxu1 }
 0x1ad   :  { %v920_v58 = vadd.f32 %v919_v43, %v535_v20  ;;  %v1172_v6 = vmul.f32 %v3321_v18, %v1101_v19  ;;  %v610_v19 = vadd.f32 %v3311_v60, %v3252_v63 }
 0x1ae   :  { %v539_v31 = vpop.f32.mrf.mxu0  ;;  %v2554_v34 = vpop.f32.mrf.mxu1 }
 0x1af   :  { %v1102_v62 = vmax.f32 %v920_v58, 0.0  ;;  %v540_v35 = vadd.f32 %v3311_v60, %v539_v31  ;;  %1269 = vadd.xlane.f32.xlu1 %v1172_v6  ;;  %v605_v6 = vadd.f32 %v3311_v60, %v3250_v59  ;;  %v615_v59 = vadd.f32 %v3311_v60, %v3256_v3 }
 0x1b0   :  { %v541_v56 = vpop.f32.mrf.mxu0  ;;  %v939_v38 = vpop.f32.mrf.mxu1 }
 0x1b1   :  { %v925_v32 = vadd.f32 %v2548_v8, %v540_v35  ;;  %v1173_v52 = vmul.f32 %v3321_v18, %v1102_v62  ;;  %v620_v56 = vadd.f32 %v3311_v60, %v3258_v7 }
 0x1b2   :  { %v544_v42 = vpop.f32.mrf.mxu0  ;;  %v2557_v28 = vpop.f32.mrf.mxu1 }
 0x1b3   :  { %v1103_v46 = vmax.f32 %v925_v32, 0.0  ;;  %v545_v23 = vadd.f32 %v3311_v60, %v544_v42  ;;  %1271 = vadd.xlane.f32.xlu0 %v1173_v52 }
 0x1b4   :  { %v546_v47 = vpop.f32.mrf.mxu0  ;;  %v949_v2 = vpop.f32.mrf.mxu1 }
 0x1b5   :  { %v930_v50 = vadd.f32 %v929_v30, %v545_v23  ;;  %v1174_v10 = vmul.f32 %v3321_v18, %v1103_v46 }
 0x1b6   :  { %v549_v51 = vpop.f32.mrf.mxu0  ;;  %v3426_v26 = vpop.f32.mrf.mxu1 }
 0x1b7   :  { %v1104_v54 = vmax.f32 %v930_v50, 0.0  ;;  %v550_v55 = vadd.f32 %v3311_v60, %v549_v51  ;;  %1273 = vadd.xlane.f32.xlu1 %v1174_v10 }
 0x1b8   :  { %v551_v4 = vpop.f32.mrf.mxu0  ;;  %v3429_v16 = vpop.f32.mrf.mxu1 }
 0x1b9   :  { %v935_v61 = vadd.f32 %v2551_v44, %v550_v55  ;;  %v1175_v36 = vmul.f32 %v3321_v18, %v1104_v54 }
 0x1ba   :  { %v554_v40 = vpop.f32.mrf.mxu0  ;;  %v3432_v1 = vpop.f32.mrf.mxu1 }
 0x1bb   :  { %v1105_v5 = vmax.f32 %v935_v61, 0.0  ;;  %v555_v39 = vadd.f32 %v3311_v60, %v554_v40  ;;  %1275 = vadd.xlane.f32.xlu0 %v1175_v36  ;;  %v630_v40 = vadd.f32 %v3311_v60, %v3266_v17  ;;  %v625_v17 = vadd.f32 %v3311_v60, %v3262_v11 }
 0x1bc   :  { %v556_v8 = vpop.f32.mrf.mxu0  ;;  %v3435_v9 = vpop.f32.mrf.mxu1 }
 0x1bd   :  { %v940_v0 = vadd.f32 %v939_v38, %v555_v39  ;;  %v1176_v12 = vmul.f32 %v3321_v18, %v1105_v5 }
 0x1be   :  { %v559_v13 = vpop.f32.mrf.mxu0  ;;  %v3438_v43 = vpop.f32.mrf.mxu1 }
 0x1bf   :  { %v1106_v48 = vmax.f32 %v940_v0, 0.0  ;;  %v560_v22 = vadd.f32 %v3311_v60, %v559_v13  ;;  %1277 = vadd.xlane.f32.xlu1 %v1176_v12 }
 0x1c0   :  { %v561_v24 = vpop.f32.mrf.mxu0  ;;  %v3441_v44 = vpop.f32.mrf.mxu1 }
 0x1c1   :  { %v945_v20 = vadd.f32 %v2554_v34, %v560_v22  ;;  %v1177_v27 = vmul.f32 %v3321_v18, %v1106_v48 }
 0x1c2   :  { %v564_v30 = vpop.f32.mrf.mxu0  ;;  %v2569_v58 = vpop.f32.mrf.mxu1 }
 0x1c3   :  { %v1107_v31 = vmax.f32 %v945_v20, 0.0  ;;  %v565_v62 = vadd.f32 %v3311_v60, %v564_v30  ;;  %v995_v35 = vadd.f32 %v2569_v58, %v610_v19  ;;  %1279 = vadd.xlane.f32.xlu0 %v1177_v27  ;;  %v640_v27 = vadd.f32 %v3311_v60, %v3274_v25 }
 0x1c4   :  { %v566_v38 = vpop.f32.mrf.mxu0  ;;  %v989_v32 = vpop.f32.mrf.mxu1 }
 0x1c5   :  { %v950_v52 = vadd.f32 %v949_v2, %v565_v62  ;;  %v1117_v63 = vmax.f32 %v995_v35, 0.0  ;;  %v990_v34 = vadd.f32 %v989_v32, %v605_v6  ;;  %v1178_v42 = vmul.f32 %v3321_v18, %v1107_v31 }
 0x1c6   :  { %v569_v46 = vpop.f32.mrf.mxu0  ;;  %v2572_v23 = vpop.f32.mrf.mxu1 }
 0x1c7   :  { %v1108_v47 = vmax.f32 %v950_v52, 0.0  ;;  %v570_v50 = vadd.f32 %v3311_v60, %v569_v46  ;;  %v1005_v10 = vadd.f32 %v2572_v23, %v620_v56  ;;  %1281 = vadd.xlane.f32.xlu1 %v1178_v42  ;;  %v1116_v51 = vmax.f32 %v990_v34, 0.0 }
 0x1c8   :  { %v571_v54 = vpop.f32.mrf.mxu0  ;;  %v999_v7 = vpop.f32.mrf.mxu1  ;;  %v1188_v55 = vmul.f32 %v3321_v18, %v1117_v63  ;;  %v635_v52 = vadd.f32 %v3311_v60, %v3270_v21 }
 0x1c9   :  { %v955_v2 = vadd.f32 %v2557_v28, %v570_v50  ;;  %v1119_v4 = vmax.f32 %v1005_v10, 0.0  ;;  %v1000_v61 = vadd.f32 %v999_v7, %v615_v59  ;;  %v1179_v36 = vmul.f32 %v3321_v18, %v1108_v47 }
 0x1ca   :  { %v574_v5 = vpop.f32.mrf.mxu0  ;;  %v2575_v3 = vpop.f32.mrf.mxu1  ;;  %v1187_v13 = vmul.f32 %v3321_v18, %v1116_v51  ;;  %v650_v10 = vadd.f32 %v3311_v60, %v3282_v33  ;;  %v660_v33 = vadd.f32 %v3311_v60, %v3290_v41 }
 0x1cb   :  { %v575_v39 = vadd.f32 %v3311_v60, %v574_v5  ;;  %1301 = vadd.xlane.f32.xlu1 %v1188_v55  ;;  %1283 = vadd.xlane.f32.xlu0 %v1179_v36  ;;  %v1015_v8 = vadd.f32 %v2575_v3, %v630_v40  ;;  %v1109_v48 = vmax.f32 %v955_v2, 0.0  ;;  %v1118_v28 = vmax.f32 %v1000_v61, 0.0 }
 0x1cc   :  { %v576_v0 = vpop.f32.mrf.mxu0  ;;  %v1009_v12 = vpop.f32.mrf.mxu1  ;;  %v1190_v24 = vmul.f32 %v3321_v18, %v1119_v4  ;;  %v645_v36 = vadd.f32 %v3311_v60, %v3278_v29 }
 0x1cd   :  { %v960_v22 = vadd.f32 %v3429_v16, %v575_v39  ;;  %v1121_v30 = vmax.f32 %v1015_v8, 0.0  ;;  %v1010_v58 = vadd.f32 %v1009_v12, %v625_v17  ;;  %v1180_v56 = vmul.f32 %v3321_v18, %v1109_v48 }
 0x1ce   :  { %v579_v19 = vpop.f32.mrf.mxu0  ;;  %v2578_v20 = vpop.f32.mrf.mxu1  ;;  %v1189_v38 = vmul.f32 %v3321_v18, %v1118_v28 }
 0x1cf   :  { %1305 = vadd.xlane.f32.xlu1 %v1190_v24  ;;  %1299 = vadd.xlane.f32.xlu0 %v1187_v13  ;;  %v580_v6 = vadd.f32 %v3311_v60, %v579_v19  ;;  %v1110_v35 = vmax.f32 %v960_v22, 0.0  ;;  %v1025_v16 = vadd.f32 %v2578_v20, %v640_v27  ;;  %v1120_v25 = vmax.f32 %v1010_v58, 0.0 }
 0x1d0   :  { %v581_v31 = vpop.f32.mrf.mxu0  ;;  %v1019_v62 = vpop.f32.mrf.mxu1  ;;  %v1192_v46 = vmul.f32 %v3321_v18, %v1121_v30  ;;  %v655_v22 = vadd.f32 %v3311_v60, %v3286_v37 }
 0x1d1   :  { %v965_v63 = vadd.f32 %v3426_v26, %v580_v6  ;;  %v1123_v23 = vmax.f32 %v1025_v16, 0.0  ;;  %v1020_v59 = vadd.f32 %v1019_v62, %v635_v52  ;;  %v1181_v50 = vmul.f32 %v3321_v18, %v1110_v35 }
 0x1d2   :  { %v584_v11 = vpop.f32.mrf.mxu0  ;;  %v2581_v32 = vpop.f32.mrf.mxu1  ;;  %v1191_v26 = vmul.f32 %v3321_v18, %v1120_v25  ;;  %v670_v6 = vadd.f32 %v3311_v60, %v3298_v49 }
 0x1d3   :  { %1285 = vadd.xlane.f32.xlu1 %v1180_v56  ;;  %1303 = vadd.xlane.f32.xlu0 %v1189_v38  ;;  %v585_v47 = vadd.f32 %v3311_v60, %v584_v11  ;;  %v1035_v54 = vadd.f32 %v2581_v32, %v650_v10  ;;  %v1111_v55 = vmax.f32 %v965_v63, 0.0  ;;  %v1122_v2 = vmax.f32 %v1020_v59, 0.0 }
 0x1d4   :  { %v586_v34 = vpop.f32.mrf.mxu0  ;;  %v1029_v42 = vpop.f32.mrf.mxu1  ;;  %v1194_v61 = vmul.f32 %v3321_v18, %v1123_v23  ;;  %v665_v38 = vadd.f32 %v3311_v60, %v3294_v45  ;;  %v680_v32 = vadd.f32 %v3311_v60, %v3306_v57  ;;  %v675_v45 = vadd.f32 %v3311_v60, %v3302_v53 }
 0x1d5   :  { %v970_v4 = vadd.f32 %v3435_v9, %v585_v47  ;;  %v1125_v3 = vmax.f32 %v1035_v54, 0.0  ;;  %v1030_v39 = vadd.f32 %v1029_v42, %v645_v36  ;;  %v1182_v9 = vmul.f32 %v3321_v18, %v1111_v55 }
 0x1d6   :  { %v589_v51 = vpop.f32.mrf.mxu0  ;;  %v2584_v21 = vpop.f32.mrf.mxu1  ;;  %v1193_v48 = vmul.f32 %v3321_v18, %v1122_v2 }
 0x1d7   :  { %1309 = vadd.xlane.f32.xlu1 %v1192_v46  ;;  %1287 = vadd.xlane.f32.xlu0 %v1181_v50  ;;  %v590_v8 = vadd.f32 %v3311_v60, %v589_v51  ;;  %v1112_v12 = vmax.f32 %v970_v4, 0.0  ;;  %v1045_v13 = vadd.f32 %v2584_v21, %v660_v33  ;;  %v1124_v41 = vmax.f32 %v1030_v39, 0.0  ;;  %v3511_v51 = vld [vmem:[#allocation2] ss:$0 sm:$0xff] }
 0x1d8   :  { %v591_v7 = vpop.f32.mrf.mxu0  ;;  %v1039_v40 = vpop.f32.mrf.mxu1  ;;  %v1196_v17 = vmul.f32 %v3321_v18, %v1125_v3 }
 0x1d9   :  { %v975_v24 = vadd.f32 %v3432_v1, %v590_v8  ;;  %v1127_v20 = vmax.f32 %v1045_v13, 0.0  ;;  %v1040_v27 = vadd.f32 %v1039_v40, %v655_v22  ;;  %v1183_v58 = vmul.f32 %v3321_v18, %v1112_v12 }
 0x1da   :  { %v594_v5 = vpop.f32.mrf.mxu0  ;;  %v2587_v28 = vpop.f32.mrf.mxu1  ;;  %v1195_v56 = vmul.f32 %v3321_v18, %v1124_v41 }
 0x1db   :  { %1313 = vadd.xlane.f32.xlu1 %v1194_v61  ;;  %1307 = vadd.xlane.f32.xlu0 %v1191_v26  ;;  %v595_v30 = vadd.f32 %v3311_v60, %v594_v5  ;;  %v1113_v37 = vmax.f32 %v975_v24, 0.0  ;;  %v1055_v62 = vadd.f32 %v2587_v28, %v670_v6  ;;  %v1126_v35 = vmax.f32 %v1040_v27, 0.0 }
 0x1dc   :  { %v596_v0 = vpop.f32.mrf.mxu0  ;;  %v1049_v31 = vpop.f32.mrf.mxu1  ;;  %v1198_v16 = vmul.f32 %v3321_v18, %v1127_v20 }
 0x1dd   :  { %v980_v1 = vadd.f32 %v3441_v44, %v595_v30  ;;  %v1129_v49 = vmax.f32 %v1055_v62, 0.0  ;;  %v1050_v52 = vadd.f32 %v1049_v31, %v665_v38  ;;  %v1184_v25 = vmul.f32 %v3321_v18, %v1113_v37 }
 0x1de   :  { %v599_v29 = vpop.f32.mrf.mxu0  ;;  %v2590_v11 = vpop.f32.mrf.mxu1  ;;  %v1197_v42 = vmul.f32 %v3321_v18, %v1126_v35 }
 0x1df   :  { %1289 = vadd.xlane.f32.xlu1 %v1182_v9  ;;  %1311 = vadd.xlane.f32.xlu0 %v1193_v48  ;;  %v1114_v63 = vmax.f32 %v980_v1, 0.0  ;;  %v600_v44 = vadd.f32 %v3311_v60, %v599_v29  ;;  %v1065_v34 = vadd.f32 %v2590_v11, %v680_v32  ;;  %v1128_v23 = vmax.f32 %v1050_v52, 0.0 }
 0x1e0   :  { %v601_v19 = vpop.f32.mrf.mxu0  ;;  %v1059_v46 = vpop.f32.mrf.mxu1  ;;  %v1200_v57 = vmul.f32 %v3321_v18, %v1129_v49 }
 0x1e1   :  { %v985_v59 = vadd.f32 %v3438_v43, %v600_v44  ;;  %v1131_v47 = vmax.f32 %v1065_v34, 0.0  ;;  %v1060_v50 = vadd.f32 %v1059_v46, %v675_v45  ;;  %v1185_v10 = vmul.f32 %v3321_v18, %v1114_v63 }
 0x1e2   :  { %v1199_v53 = vmul.f32 %v3321_v18, %v1128_v23 }
 0x1e3   :  { %1317 = vadd.xlane.f32.xlu1 %v1196_v17  ;;  %1291 = vadd.xlane.f32.xlu0 %v1183_v58  ;;  %v1115_v21 = vmax.f32 %v985_v59, 0.0  ;;  %v1130_v54 = vmax.f32 %v1060_v50, 0.0  ;;  %v1202_v7 = vmul.f32 %v3321_v18, %v1131_v47 }
 0x1e5   :  { %v1186_v55 = vmul.f32 %v3321_v18, %v1115_v21  ;;  %v1201_v2 = vmul.f32 %v3321_v18, %v1130_v54 }
 0x1e7   :  { %1321 = vadd.xlane.f32.xlu1 %v1198_v16  ;;  %1315 = vadd.xlane.f32.xlu0 %v1195_v56 }
 0x1eb   :  { %1293 = vadd.xlane.f32.xlu1 %v1184_v25  ;;  %1319 = vadd.xlane.f32.xlu0 %v1197_v42 }
 0x1ef   :  { %1325 = vadd.xlane.f32.xlu1 %v1200_v57  ;;  %1295 = vadd.xlane.f32.xlu0 %v1185_v10 }
 0x1f2   :  { %v1206_v60 = vpop.xlane.xlu0 %1205 }
 0x1f3   :  { %v1339_v26 = vadd.f32 %v3511_v51, %v1206_v60  ;;  %1329 = vadd.xlane.f32.xlu1 %v1202_v7  ;;  %1323 = vadd.xlane.f32.xlu0 %v1199_v53 }
 0x1f5   :  { %v2320_v43 = vmul.f32 -1.442695, %v1339_v26 }
 0x1f6   :  { %v1210_v4 = vpop.xlane.xlu1 %1209  ;;  %v1204_v61 = vpop.xlane.xlu0 %1203 }
 0x1f7   :  { %2666 = vpow2.f32 %v2320_v43  ;;  %v1341_v36 = vadd.f32 %v3511_v51, %v1210_v4  ;;  %v1338_v40 = vadd.f32 %v3511_v51, %v1204_v61  ;;  %1297 = vadd.xlane.f32.xlu1 %v1186_v55  ;;  %1327 = vadd.xlane.f32.xlu0 %v1201_v2 }
 0x1f9   :  { %v2322_v5 = vmul.f32 -1.442695, %v1341_v36  ;;  %v2319_v33 = vmul.f32 -1.442695, %v1338_v40 }
 0x1fa   :  { %v1208_v3 = vpop.xlane.xlu1 %1207 }
 0x1fb   :  { %2668 = vpow2.f32 %v2322_v5  ;;  %v1340_v39 = vadd.f32 %v3511_v51, %v1208_v3 }
 0x1fc   :  { %2670 = vpow2.f32 %v2319_v33  ;;  %v1212_v8 = vpop.xlane.xlu0 %1211 }
 0x1fd   :  { %v2321_v0 = vmul.f32 -1.442695, %v1340_v39  ;;  %v1342_v18 = vadd.f32 %v3511_v51, %v1212_v8 }
 0x1fe   :  { %v1214_v12 = vpop.xlane.xlu1 %1213 }
 0x1ff   :  { %2672 = vpow2.f32 %v2321_v0  ;;  %v2323_v13 = vmul.f32 -1.442695, %v1342_v18  ;;  %v1343_v9 = vadd.f32 %v3511_v51, %v1214_v12 }
 0x200   :  { %v1216_v48 = vpop.xlane.xlu0 %1215 }
 0x201   :  { %2674 = vpow2.f32 %v2323_v13  ;;  %v2324_v28 = vmul.f32 -1.442695, %v1343_v9  ;;  %v1344_v29 = vadd.f32 %v3511_v51, %v1216_v48 }
 0x202   :  { %v1218_v22 = vpop.xlane.xlu1 %1217 }
 0x203   :  { %2676 = vpow2.f32 %v2324_v28  ;;  %v1345_v41 = vadd.f32 %v3511_v51, %v1218_v22  ;;  %v2325_v20 = vmul.f32 -1.442695, %v1344_v29 }
 0x204   :  { %v2667_v24 = vpop.eup %2666  ;;  %v1220_v17 = vpop.xlane.xlu0 %1219 }
 0x205   :  { %v1595_v19 = vadd.f32 1.0, %v2667_v24  ;;  %v2326_v27 = vmul.f32 -1.442695, %v1345_v41  ;;  %v1346_v30 = vadd.f32 %v3511_v51, %v1220_v17 }
 0x206   :  { %v1222_v58 = vpop.xlane.xlu1 %1221 }
 0x207   :  { %2678 = vrcp.f32 %v1595_v19  ;;  %v2327_v6 = vmul.f32 -1.442695, %v1346_v30  ;;  %v1347_v31 = vadd.f32 %v3511_v51, %v1222_v58 }
 0x208   :  { %v2669_v37 = vpop.eup %2668  ;;  %2680 = vpow2.f32 %v2326_v27  ;;  %v1224_v62 = vpop.xlane.xlu0 %1223 }
 0x209   :  { %v2671_v35 = vpop.eup %2670  ;;  %v1597_v1 = vadd.f32 1.0, %v2669_v37  ;;  %2682 = vpow2.f32 %v2325_v20  ;;  %v2328_v16 = vmul.f32 -1.442695, %v1347_v31  ;;  %v1348_v56 = vadd.f32 %v3511_v51, %v1224_v62 }
 0x20a   :  { %v1594_v38 = vadd.f32 1.0, %v2671_v35  ;;  %2684 = vpow2.f32 %v2327_v6  ;;  %v1226_v11 = vpop.xlane.xlu1 %1225 }
 0x20b   :  { %2686 = vrcp.f32 %v1597_v1  ;;  %v2329_v32 = vmul.f32 -1.442695, %v1348_v56  ;;  %v1349_v49 = vadd.f32 %v3511_v51, %v1226_v11 }
 0x20c   :  { %v2673_v52 = vpop.eup %2672  ;;  %2688 = vrcp.f32 %v1594_v38  ;;  %v1228_v25 = vpop.xlane.xlu0 %1227 }
 0x20d   :  { %v1596_v63 = vadd.f32 1.0, %v2673_v52  ;;  %2690 = vpow2.f32 %v2328_v16  ;;  %v2330_v44 = vmul.f32 -1.442695, %v1349_v49  ;;  %v1350_v42 = vadd.f32 %v3511_v51, %v1228_v25 }
 0x20e   :  { %v2675_v34 = vpop.eup %2674  ;;  %2692 = vpow2.f32 %v2329_v32  ;;  %v1230_v46 = vpop.xlane.xlu1 %1229 }
 0x20f   :  { %2694 = vrcp.f32 %v1596_v63  ;;  %v1351_v45 = vadd.f32 %v3511_v51, %v1230_v46  ;;  %v1598_v59 = vadd.f32 1.0, %v2675_v34  ;;  %v2331_v21 = vmul.f32 -1.442695, %v1350_v42 }
 0x210   :  { %v2677_v23 = vpop.eup %2676  ;;  %2696 = vpow2.f32 %v2330_v44  ;;  %v1232_v57 = vpop.xlane.xlu0 %1231 }
 0x211   :  { %v1599_v47 = vadd.f32 1.0, %v2677_v23  ;;  %v2332_v50 = vmul.f32 -1.442695, %v1351_v45  ;;  %v1352_v10 = vadd.f32 %v3511_v51, %v1232_v57 }
 0x212   :  { %v1234_v54 = vpop.xlane.xlu1 %1233 }
 0x213   :  { %2698 = vrcp.f32 %v1599_v47  ;;  %v1353_v7 = vadd.f32 %v3511_v51, %v1234_v54  ;;  %v2333_v60 = vmul.f32 -1.442695, %v1352_v10 }
 0x214   :  { %v2679_v53 = vpop.eup %2678  ;;  %2700 = vpow2.f32 %v2332_v50  ;;  %v1236_v26 = vpop.xlane.xlu0 %1235 }
 0x215   :  { %v2681_v43 = vpop.eup %2680  ;;  %2702 = vrcp.f32 %v1598_v59  ;;  %v2334_v55 = vmul.f32 -1.442695, %v1353_v7  ;;  %v1354_v2 = vadd.f32 %v3511_v51, %v1236_v26  ;;  %1857 = vperm.xlu1 %2664, %v2679_v53  }
 0x216   :  { %v2683_v4 = vpop.eup %2682  ;;  %v1601_v61 = vadd.f32 1.0, %v2681_v43  ;;  %2704 = vpow2.f32 %v2331_v21  ;;  %v1238_v36 = vpop.xlane.xlu1 %1237 }
 0x217   :  { %v2685_v40 = vpop.eup %2684  ;;  %2706 = vpow2.f32 %v2334_v55  ;;  %v2335_v5 = vmul.f32 -1.442695, %v1354_v2  ;;  %v1355_v33 = vadd.f32 %v3511_v51, %v1238_v36  ;;  %v1600_v13 = vadd.f32 1.0, %v2683_v4 }
 0x218   :  { %v2687_v3 = vpop.eup %2686  ;;  %2708 = vpow2.f32 %v2333_v60  ;;  %v1240_v39 = vpop.xlane.xlu0 %1239  ;;  %v1602_v20 = vadd.f32 1.0, %v2685_v40 }
 0x219   :  { %v2689_v8 = vpop.eup %2688  ;;  %2710 = vrcp.f32 %v1601_v61  ;;  %v2336_v0 = vmul.f32 -1.442695, %v1355_v33  ;;  %v1356_v18 = vadd.f32 %v3511_v51, %v1240_v39  ;;  %1867 = vperm.xlu1 %2664, %v2687_v3  }
 0x21a   :  { %v2691_v12 = vpop.eup %2690  ;;  %2712 = vpow2.f32 %v2335_v5  ;;  %1852 = vperm.xlu0 %2665, %v2689_v8   ;;  %v1242_v9 = vpop.xlane.xlu1 %1241 }
 0x21b   :  { %v2693_v48 = vpop.eup %2692  ;;  %v1603_v28 = vadd.f32 1.0, %v2691_v12  ;;  %2714 = vpow2.f32 %v2336_v0  ;;  %v2337_v29 = vmul.f32 -1.442695, %v1356_v18  ;;  %v1357_v22 = vadd.f32 %v3511_v51, %v1242_v9 }
 0x21c   :  { %v2695_v41 = vpop.eup %2694  ;;  %v1244_v24 = vpop.xlane.xlu0 %1243  ;;  %v1604_v6 = vadd.f32 1.0, %v2693_v48 }
 0x21d   :  { %v2697_v17 = vpop.eup %2696  ;;  %2716 = vrcp.f32 %v1603_v28  ;;  %v2338_v19 = vmul.f32 -1.442695, %v1357_v22  ;;  %1862 = vperm.xlu1 %2664, %v2695_v41   ;;  %v1358_v30 = vadd.f32 %v3511_v51, %v1244_v24 }
 0x21e   :  { %2718 = vrcp.f32 %v1600_v13  ;;  %v1605_v27 = vadd.f32 1.0, %v2697_v17  ;;  %v1246_v58 = vpop.xlane.xlu1 %1245 }
 0x21f   :  { %2720 = vpow2.f32 %v2337_v29  ;;  %v1359_v31 = vadd.f32 %v3511_v51, %v1246_v58  ;;  %v2339_v11 = vmul.f32 -1.442695, %v1358_v30 }
 0x220   :  { %v2699_v37 = vpop.eup %2698  ;;  %2722 = vrcp.f32 %v1605_v27  ;;  %v1248_v62 = vpop.xlane.xlu0 %1247 }
 0x221   :  { %v2701_v35 = vpop.eup %2700  ;;  %2724 = vpow2.f32 %v2338_v19  ;;  %v2340_v1 = vmul.f32 -1.442695, %v1359_v31  ;;  %v1360_v16 = vadd.f32 %v3511_v51, %v1248_v62  ;;  %1877 = vperm.xlu1 %2664, %v2699_v37  }
 0x222   :  { %v2703_v56 = vpop.eup %2702  ;;  %2726 = vrcp.f32 %v1602_v20  ;;  %v1607_v38 = vadd.f32 1.0, %v2701_v35  ;;  %v1250_v32 = vpop.xlane.xlu1 %1249 }
 0x223   :  { %v2705_v49 = vpop.eup %2704  ;;  %2728 = vrcp.f32 %v1604_v6  ;;  %v1361_v52 = vadd.f32 %v3511_v51, %v1250_v32  ;;  %v2341_v63 = vmul.f32 -1.442695, %v1360_v16 }
 0x224   :  { %v2707_v25 = vpop.eup %2706  ;;  %2730 = vrcp.f32 %v1607_v38  ;;  %v1252_v44 = vpop.xlane.xlu0 %1251  ;;  %v1606_v23 = vadd.f32 1.0, %v2705_v49 }
 0x225   :  { %v2709_v34 = vpop.eup %2708  ;;  %v1609_v42 = vadd.f32 1.0, %v2707_v25  ;;  %2732 = vpow2.f32 %v2340_v1  ;;  %v2342_v46 = vmul.f32 -1.442695, %v1361_v52  ;;  %1872 = vperm.xlu1 %2664, %v2703_v56   ;;  %v1362_v57 = vadd.f32 %v3511_v51, %v1252_v44 }
 0x226   :  { %v2711_v45 = vpop.eup %2710  ;;  %2734 = vpow2.f32 %v2339_v11  ;;  %v1254_v59 = vpop.xlane.xlu1 %1253  ;;  %v1608_v21 = vadd.f32 1.0, %v2709_v34 }
 0x227   :  { %v2713_v47 = vpop.eup %2712  ;;  %2736 = vrcp.f32 %v1609_v42  ;;  %v1363_v50 = vadd.f32 %v3511_v51, %v1254_v59  ;;  %v2343_v26 = vmul.f32 -1.442695, %v1362_v57 }
 0x228   :  { %v2715_v10 = vpop.eup %2714  ;;  %2738 = vpow2.f32 %v2341_v63  ;;  %v1256_v54 = vpop.xlane.xlu0 %1255  ;;  %v1610_v4 = vadd.f32 1.0, %v2713_v47 }
 0x229   :  { %v1611_v7 = vadd.f32 1.0, %v2715_v10  ;;  %2740 = vpow2.f32 %v2342_v46  ;;  %v2344_v53 = vmul.f32 -1.442695, %v1363_v50  ;;  %1887 = vperm.xlu1 %2664, %v2711_v45   ;;  %v1364_v43 = vadd.f32 %v3511_v51, %v1256_v54 }
 0x22a   :  { %v2717_v60 = vpop.eup %2716  ;;  %2742 = vrcp.f32 %v1606_v23  ;;  %v1258_v55 = vpop.xlane.xlu1 %1257 }
 0x22b   :  { %v2719_v2 = vpop.eup %2718  ;;  %2744 = vrcp.f32 %v1611_v7  ;;  %1897 = vperm.xlu0 %2665, %v2717_v60   ;;  %v1365_v61 = vadd.f32 %v3511_v51, %v1258_v55  ;;  %v2345_v39 = vmul.f32 -1.442695, %v1364_v43 }
 0x22c   :  { %v2721_v36 = vpop.eup %2720  ;;  %2746 = vrcp.f32 %v1608_v21  ;;  %v1260_v40 = vpop.xlane.xlu0 %1259 }
 0x22d   :  { %v2723_v5 = vpop.eup %2722  ;;  %2748 = vpow2.f32 %v2344_v53  ;;  %v2346_v33 = vmul.f32 -1.442695, %v1365_v61  ;;  %1882 = vperm.xlu1 %2664, %v2719_v2   ;;  %v1366_v8 = vadd.f32 %v3511_v51, %v1260_v40  ;;  %v1612_v12 = vadd.f32 1.0, %v2721_v36 }
 0x22e   :  { %v2725_v3 = vpop.eup %2724  ;;  %2750 = vpow2.f32 %v2343_v26  ;;  %v1262_v0 = vpop.xlane.xlu1 %1261 }
 0x22f   :  { %v2727_v18 = vpop.eup %2726  ;;  %2752 = vrcp.f32 %v1610_v4  ;;  %v1613_v13 = vadd.f32 1.0, %v2725_v3  ;;  %1907 = vperm.xlu0 %2665, %v2723_v5   ;;  %v1367_v9 = vadd.f32 %v3511_v51, %v1262_v0  ;;  %v2347_v24 = vmul.f32 -1.442695, %v1366_v8 }
 0x230   :  { %v2729_v48 = vpop.eup %2728  ;;  %2754 = vpow2.f32 %v2346_v33  ;;  %v1264_v28 = vpop.xlane.xlu0 %1263 }
 0x231   :  { %v2731_v29 = vpop.eup %2730  ;;  %2756 = vrcp.f32 %v1613_v13  ;;  %v2348_v22 = vmul.f32 -1.442695, %v1367_v9  ;;  %1892 = vperm.xlu1 %2664, %v2727_v18   ;;  %v1368_v17 = vadd.f32 %v3511_v51, %v1264_v28 }
 0x232   :  { %v2733_v41 = vpop.eup %2732  ;;  %2758 = vpow2.f32 %v2345_v39  ;;  %v1266_v19 = vpop.xlane.xlu1 %1265 }
 0x233   :  { %v2735_v20 = vpop.eup %2734  ;;  %2760 = vrcp.f32 %v1612_v12  ;;  %v1615_v27 = vadd.f32 1.0, %v2733_v41  ;;  %1917 = vperm.xlu0 %2665, %v2731_v29   ;;  %v1369_v30 = vadd.f32 %v3511_v51, %v1266_v19  ;;  %v2349_v35 = vmul.f32 -1.442695, %v1368_v17 }
 0x234   :  { %v2737_v58 = vpop.eup %2736  ;;  %2762 = vpow2.f32 %v2348_v22  ;;  %v1268_v6 = vpop.xlane.xlu0 %1267  ;;  %v1614_v56 = vadd.f32 1.0, %v2735_v20 }
 0x235   :  { %v2739_v31 = vpop.eup %2738  ;;  %2764 = vrcp.f32 %v1615_v27  ;;  %v2350_v37 = vmul.f32 -1.442695, %v1369_v30  ;;  %1902 = vperm.xlu1 %2664, %v2729_v48   ;;  %v1370_v1 = vadd.f32 %v3511_v51, %v1268_v6 }
 0x236   :  { %v2741_v62 = vpop.eup %2740  ;;  %2766 = vpow2.f32 %v2347_v24  ;;  %v1616_v32 = vadd.f32 1.0, %v2739_v31 }
 0x237   :  { %v2743_v16 = vpop.eup %2742  ;;  %v1617_v38 = vadd.f32 1.0, %v2741_v62  ;;  %2768 = vpow2.f32 %v2350_v37  ;;  %1927 = vperm.xlu0 %2665, %v2737_v58   ;;  %v2351_v44 = vmul.f32 -1.442695, %v1370_v1 }
 0x238   :  { %v2745_v11 = vpop.eup %2744  ;;  %v1270_v49 = vpop.xlane.xlu1 %1269 }
 0x239   :  { %v2747_v52 = vpop.eup %2746  ;;  %2770 = vrcp.f32 %v1617_v38  ;;  %v1371_v25 = vadd.f32 %v3511_v51, %v1270_v49  ;;  %1912 = vperm.xlu1 %2664, %v2743_v16  }
 0x23a   :  { %v2749_v63 = vpop.eup %2748  ;;  %2772 = vpow2.f32 %v2349_v35 }
 0x23b   :  { %v2751_v34 = vpop.eup %2750  ;;  %2774 = vrcp.f32 %v1614_v56  ;;  %v1619_v42 = vadd.f32 1.0, %v2749_v63  ;;  %v2352_v46 = vmul.f32 -1.442695, %v1371_v25  ;;  %1937 = vperm.xlu0 %2665, %v2745_v11  }
 0x23c   :  { %v2753_v45 = vpop.eup %2752  ;;  %2776 = vrcp.f32 %v1616_v32  ;;  %v1272_v23 = vpop.xlane.xlu0 %1271  ;;  %v1618_v50 = vadd.f32 1.0, %v2751_v34 }
 0x23d   :  { %v2755_v57 = vpop.eup %2754  ;;  %2778 = vrcp.f32 %v1619_v42  ;;  %v1372_v59 = vadd.f32 %v3511_v51, %v1272_v23  ;;  %1922 = vperm.xlu1 %2664, %v2747_v52  }
 0x23e   :  { %v2757_v47 = vpop.eup %2756  ;;  %v1621_v10 = vadd.f32 1.0, %v2755_v57  ;;  %2780 = vpow2.f32 %v2351_v44 }
 0x23f   :  { %v2759_v21 = vpop.eup %2758  ;;  %2782 = vpow2.f32 %v2352_v46  ;;  %v2353_v54 = vmul.f32 -1.442695, %v1372_v59  ;;  %1947 = vperm.xlu0 %2665, %v2757_v47  }
 0x240   :  { %v2761_v7 = vpop.eup %2760  ;;  %2784 = vrcp.f32 %v1621_v10  ;;  %v1274_v53 = vpop.xlane.xlu1 %1273  ;;  %v1620_v55 = vadd.f32 1.0, %v2759_v21 }
 0x241   :  { %v2763_v60 = vpop.eup %2762  ;;  %v1373_v26 = vadd.f32 %v3511_v51, %v1274_v53  ;;  %1932 = vperm.xlu1 %2664, %v2753_v45   ;;  %2786 = vrcp.f32 %v1618_v50 }
 0x242   :  { %v2765_v43 = vpop.eup %2764  ;;  %v1623_v2 = vadd.f32 1.0, %v2763_v60  ;;  %2788 = vpow2.f32 %v2353_v54 }
 0x243   :  { %v2767_v4 = vpop.eup %2766  ;;  %v2354_v61 = vmul.f32 -1.442695, %v1373_v26  ;;  %1957 = vperm.xlu0 %2665, %v2765_v43  }
 0x244   :  { %v2769_v36 = vpop.eup %2768  ;;  %2790 = vrcp.f32 %v1623_v2  ;;  %v1276_v40 = vpop.xlane.xlu0 %1275  ;;  %v1622_v8 = vadd.f32 1.0, %v2767_v4 }
 0x245   :  { %v1625_v5 = vadd.f32 1.0, %v2769_v36  ;;  %2792 = vpow2.f32 %v2354_v61  ;;  %v1374_v33 = vadd.f32 %v3511_v51, %v1276_v40  ;;  %1942 = vperm.xlu1 %2664, %v2761_v7  }
 0x246   :  { %v2771_v3 = vpop.eup %2770  ;;  %2794 = vrcp.f32 %v1620_v55 }
 0x247   :  { %v2773_v39 = vpop.eup %2772  ;;  %2796 = vrcp.f32 %v1625_v5  ;;  %v2355_v0 = vmul.f32 -1.442695, %v1374_v33  ;;  %1967 = vperm.xlu0 %2665, %v2771_v3  }
 0x248   :  { %v2775_v18 = vpop.eup %2774  ;;  %v1278_v12 = vpop.xlane.xlu1 %1277  ;;  %v1624_v28 = vadd.f32 1.0, %v2773_v39 }
 0x249   :  { %v2777_v13 = vpop.eup %2776  ;;  %2798 = vpow2.f32 %v2355_v0  ;;  %v1375_v9 = vadd.f32 %v3511_v51, %v1278_v12  ;;  %1952 = vperm.xlu1 %2664, %v2775_v18  }
 0x24a   :  { %v2779_v48 = vpop.eup %2778  ;;  %2800 = vrcp.f32 %v1622_v8 }
 0x24b   :  { %v2781_v29 = vpop.eup %2780  ;;  %v2356_v22 = vmul.f32 -1.442695, %v1375_v9  ;;  %1977 = vperm.xlu0 %2665, %v2779_v48  }
 0x24c   :  { %v2783_v41 = vpop.eup %2782  ;;  %v1280_v24 = vpop.xlane.xlu0 %1279  ;;  %v1626_v30 = vadd.f32 1.0, %v2781_v29 }
 0x24d   :  { %v2785_v17 = vpop.eup %2784  ;;  %v1627_v19 = vadd.f32 1.0, %v2783_v41  ;;  %2802 = vpow2.f32 %v2356_v22  ;;  %v1376_v20 = vadd.f32 %v3511_v51, %v1280_v24  ;;  %1962 = vperm.xlu1 %2664, %v2777_v13  }
 0x24e   :  { %2804 = vrcp.f32 %v1624_v28  ;;  %v2787_v27 = vpop.eup %2786 }
 0x24f   :  { %2806 = vrcp.f32 %v1627_v19  ;;  %v2357_v58 = vmul.f32 -1.442695, %v1376_v20  ;;  %1987 = vperm.xlu0 %2665, %v2785_v17   ;;  %v2789_v6 = vpop.eup %2788 }
 0x250   :  { %v1282_v31 = vpop.xlane.xlu1 %1281  ;;  %v1628_v16 = vadd.f32 1.0, %v2789_v6 }
 0x251   :  { %v2791_v37 = vpop.eup %2790  ;;  %v1377_v62 = vadd.f32 %v3511_v51, %v1282_v31  ;;  %1972 = vperm.xlu1 %2664, %v2787_v27   ;;  %2808 = vpow2.f32 %v2357_v58 }
 0x252   :  { %v2793_v35 = vpop.eup %2792  ;;  %2810 = vrcp.f32 %v1626_v30 }
 0x253   :  { %v2795_v1 = vpop.eup %2794  ;;  %v1629_v56 = vadd.f32 1.0, %v2793_v35  ;;  %v2358_v38 = vmul.f32 -1.442695, %v1377_v62  ;;  %1997 = vperm.xlu0 %2665, %v2791_v37  }
 0x254   :  { %v2797_v11 = vpop.eup %2796  ;;  %v1302_v32 = vpop.xlane.xlu1 %1301 }
 0x255   :  { %v1284_v49 = vpop.xlane.xlu0 %1283  ;;  %2812 = vrcp.f32 %v1629_v56  ;;  %v1387_v52 = vadd.f32 %v3511_v51, %v1302_v32  ;;  %1982 = vperm.xlu1 %2664, %v2795_v1  }
 0x256   :  { %v1378_v25 = vadd.f32 %v3511_v51, %v1284_v49  ;;  %v2799_v63 = vpop.eup %2798  ;;  %2814 = vpow2.f32 %v2358_v38 }
 0x257   :  { %2816 = vrcp.f32 %v1628_v16  ;;  %v1630_v44 = vadd.f32 1.0, %v2799_v63  ;;  %v2368_v34 = vmul.f32 -1.442695, %v1387_v52  ;;  %2007 = vperm.xlu0 %2665, %v2797_v11   ;;  %v2801_v46 = vpop.eup %2800 }
 0x258   :  { %v2359_v42 = vmul.f32 -1.442695, %v1378_v25  ;;  %v1306_v45 = vpop.xlane.xlu1 %1305 }
 0x259   :  { %v1300_v23 = vpop.xlane.xlu0 %1299  ;;  %2818 = vrcp.f32 %v1630_v44  ;;  %v1389_v57 = vadd.f32 %v3511_v51, %v1306_v45  ;;  %1992 = vperm.xlu1 %2664, %v2801_v46  }
 0x25a   :  { %v1386_v59 = vadd.f32 %v3511_v51, %v1300_v23  ;;  %v2803_v47 = vpop.eup %2802  ;;  %2820 = vpow2.f32 %v2368_v34 }
 0x25b   :  { %v2805_v50 = vpop.eup %2804  ;;  %v1631_v10 = vadd.f32 1.0, %v2803_v47  ;;  %2822 = vpow2.f32 %v2359_v42  ;;  %v2370_v21 = vmul.f32 -1.442695, %v1389_v57 }
 0x25c   :  { %v2367_v54 = vmul.f32 -1.442695, %v1386_v59  ;;  %v2807_v7 = vpop.eup %2806  ;;  %v1286_v53 = vpop.xlane.xlu1 %1285 }
 0x25d   :  { %v1304_v60 = vpop.xlane.xlu0 %1303  ;;  %2824 = vrcp.f32 %v1631_v10  ;;  %2017 = vperm.xlu0 %2665, %v2807_v7   ;;  %v1379_v26 = vadd.f32 %v3511_v51, %v1286_v53  ;;  %2002 = vperm.xlu1 %2664, %v2805_v50  }
 0x25e   :  { %v1388_v43 = vadd.f32 %v3511_v51, %v1304_v60  ;;  %2826 = vpow2.f32 %v2370_v21  ;;  %v2809_v55 = vpop.eup %2808 }
 0x25f   :  { %2828 = vpow2.f32 %v2367_v54  ;;  %v2360_v2 = vmul.f32 -1.442695, %v1379_v26  ;;  %v2811_v61 = vpop.eup %2810  ;;  %v1632_v36 = vadd.f32 1.0, %v2809_v55 }
 0x260   :  { %v2369_v4 = vmul.f32 -1.442695, %v1388_v43  ;;  %v1310_v40 = vpop.xlane.xlu1 %1309 }
 0x261   :  { %v1288_v5 = vpop.xlane.xlu0 %1287  ;;  %2830 = vpow2.f32 %v2360_v2  ;;  %v1391_v33 = vadd.f32 %v3511_v51, %v1310_v40  ;;  %2012 = vperm.xlu1 %2664, %v2811_v61  }
 0x262   :  { %v1380_v3 = vadd.f32 %v3511_v51, %v1288_v5  ;;  %v2813_v39 = vpop.eup %2812  ;;  %2832 = vrcp.f32 %v1632_v36 }
 0x263   :  { %v2815_v8 = vpop.eup %2814  ;;  %2834 = vpow2.f32 %v2369_v4  ;;  %v2372_v0 = vmul.f32 -1.442695, %v1391_v33  ;;  %2027 = vperm.xlu0 %2665, %v2813_v39  }
 0x264   :  { %v2361_v18 = vmul.f32 -1.442695, %v1380_v3  ;;  %v2817_v12 = vpop.eup %2816  ;;  %v1633_v13 = vadd.f32 1.0, %v2815_v8  ;;  %v1314_v9 = vpop.xlane.xlu1 %1313 }
 0x265   :  { %v1308_v48 = vpop.xlane.xlu0 %1307  ;;  %2836 = vpow2.f32 %v2372_v0  ;;  %v1393_v28 = vadd.f32 %v3511_v51, %v1314_v9  ;;  %2022 = vperm.xlu1 %2664, %v2817_v12  }
 0x266   :  { %v1390_v29 = vadd.f32 %v3511_v51, %v1308_v48  ;;  %v2819_v22 = vpop.eup %2818  ;;  %2838 = vrcp.f32 %v1633_v13 }
 0x267   :  { %v2821_v41 = vpop.eup %2820  ;;  %2840 = vpow2.f32 %v2361_v18  ;;  %v2374_v24 = vmul.f32 -1.442695, %v1393_v28 }
 0x268   :  { %v2823_v17 = vpop.eup %2822  ;;  %v1643_v19 = vadd.f32 1.0, %v2821_v41  ;;  %v2371_v20 = vmul.f32 -1.442695, %v1390_v29  ;;  %v1290_v27 = vpop.xlane.xlu1 %1289 }
 0x269   :  { %v1312_v30 = vpop.xlane.xlu0 %1311  ;;  %v1634_v58 = vadd.f32 1.0, %v2823_v17  ;;  %2842 = vpow2.f32 %v2374_v24  ;;  %v1381_v6 = vadd.f32 %v3511_v51, %v1290_v27  ;;  %2032 = vperm.xlu1 %2664, %v2819_v22  }
 0x26a   :  { %v1392_v31 = vadd.f32 %v3511_v51, %v1312_v30  ;;  %v2825_v37 = vpop.eup %2824  ;;  %2844 = vrcp.f32 %v1643_v19 }
 0x26b   :  { %v2827_v62 = vpop.eup %2826  ;;  %2846 = vrcp.f32 %v1634_v58  ;;  %v2362_v35 = vmul.f32 -1.442695, %v1381_v6  ;;  %2037 = vperm.xlu0 %2665, %v2825_v37  }
 0x26c   :  { %v2829_v1 = vpop.eup %2828  ;;  %v1645_v16 = vadd.f32 1.0, %v2827_v62  ;;  %2848 = vpow2.f32 %v2371_v20  ;;  %v2373_v56 = vmul.f32 -1.442695, %v1392_v31  ;;  %v1318_v38 = vpop.xlane.xlu1 %1317 }
 0x26d   :  { %v1292_v11 = vpop.xlane.xlu0 %1291  ;;  %v1642_v32 = vadd.f32 1.0, %v2829_v1  ;;  %2850 = vpow2.f32 %v2362_v35  ;;  %v1395_v49 = vadd.f32 %v3511_v51, %v1318_v38  ;;  %v2922_v38 = vld [vmem:[#allocation2] ss:$0 sm:$0xff] }
 0x26e   :  { %v1382_v52 = vadd.f32 %v3511_v51, %v1292_v11  ;;  %v2831_v25 = vpop.eup %2830  ;;  %2852 = vrcp.f32 %v1645_v16 }
 0x26f   :  { %v2833_v63 = vpop.eup %2832  ;;  %2854 = vrcp.f32 %v1642_v32  ;;  %v1635_v44 = vadd.f32 1.0, %v2831_v25  ;;  %v2376_v34 = vmul.f32 -1.442695, %v1395_v49 }
 0x270   :  { %v2835_v42 = vpop.eup %2834  ;;  %2856 = vpow2.f32 %v2373_v56  ;;  %v2363_v46 = vmul.f32 -1.442695, %v1382_v52  ;;  %2042 = vperm.xlu1 %2664, %v2833_v63   ;;  %v1322_v45 = vpop.xlane.xlu1 %1321 }
 0x271   :  { %v1316_v23 = vpop.xlane.xlu0 %1315  ;;  %2858 = vrcp.f32 %v1635_v44  ;;  %v1644_v57 = vadd.f32 1.0, %v2835_v42  ;;  %v1397_v59 = vadd.f32 %v3511_v51, %v1322_v45 }
 0x272   :  { %v1394_v47 = vadd.f32 %v3511_v51, %v1316_v23  ;;  %v2837_v50 = vpop.eup %2836  ;;  %2860 = vpow2.f32 %v2376_v34 }
 0x273   :  { %v2839_v10 = vpop.eup %2838  ;;  %2862 = vrcp.f32 %v1644_v57  ;;  %v1647_v21 = vadd.f32 1.0, %v2837_v50  ;;  %v2378_v54 = vmul.f32 -1.442695, %v1397_v59 }
 0x274   :  { %v2841_v7 = vpop.eup %2840  ;;  %2864 = vpow2.f32 %v2363_v46  ;;  %v2375_v53 = vmul.f32 -1.442695, %v1394_v47  ;;  %2047 = vperm.xlu0 %2665, %v2839_v10   ;;  %v1294_v60 = vpop.xlane.xlu1 %1293 }
 0x275   :  { %v1320_v26 = vpop.xlane.xlu0 %1319  ;;  %2866 = vrcp.f32 %v1647_v21  ;;  %v1636_v43 = vadd.f32 1.0, %v2841_v7  ;;  %v1383_v55 = vadd.f32 %v3511_v51, %v1294_v60  ;;  %v2923_v60 = vld [vmem:[#allocation3 + $0x20] sm:$0xff] }
 0x276   :  { %v1396_v2 = vadd.f32 %v3511_v51, %v1320_v26  ;;  %v2843_v4 = vpop.eup %2842  ;;  %2868 = vpow2.f32 %v2378_v54  ;;  %v2924_v26 = vld [vmem:[#allocation3 + $0x18] sm:$0xff] }
 0x277   :  { %v2845_v61 = vpop.eup %2844  ;;  %2870 = vrcp.f32 %v1636_v43  ;;  %v1649_v36 = vadd.f32 1.0, %v2843_v4  ;;  %v2364_v40 = vmul.f32 -1.442695, %v1383_v55  ;;  %v1787_v43 = vadd.f32 %v2924_v26, %v2923_v60 }
 0x278   :  { %v2377_v5 = vmul.f32 -1.442695, %v1396_v2  ;;  %v2847_v33 = vpop.eup %2846  ;;  %2872 = vpow2.f32 %v2375_v53  ;;  %2097 = vperm.xlu0 %2665, %v2845_v61   ;;  %v1326_v3 = vpop.xlane.xlu1 %1325 }
 0x279   :  { %v1296_v39 = vpop.xlane.xlu0 %1295  ;;  %v2849_v8 = vpop.eup %2848  ;;  %2874 = vrcp.f32 %v1649_v36  ;;  %2052 = vperm.xlu1 %2664, %v2847_v33   ;;  %v1399_v0 = vadd.f32 %v3511_v51, %v1326_v3  ;;  %v2925_v33 = vld [vmem:[#allocation3 + $0x50] sm:$0xff]  ;;  %v2926_v3 = vld [vmem:[#allocation3 + $0x48] sm:$0xff] }
 0x27a   :  { %v1384_v18 = vadd.f32 %v3511_v51, %v1296_v39  ;;  %v2851_v12 = vpop.eup %2850  ;;  %v1646_v13 = vadd.f32 1.0, %v2849_v8  ;;  %2876 = vpow2.f32 %v2364_v40  ;;  %v1789_v39 = vadd.f32 %v2926_v3, %v2925_v33 }
 0x27b   :  { %v2853_v9 = vpop.eup %2852  ;;  %v1637_v48 = vadd.f32 1.0, %v2851_v12  ;;  %2878 = vpow2.f32 %v2377_v5  ;;  %v2380_v28 = vmul.f32 -1.442695, %v1399_v0 }
 0x27c   :  { %v2365_v29 = vmul.f32 -1.442695, %v1384_v18  ;;  %v2855_v22 = vpop.eup %2854  ;;  %2880 = vrcp.f32 %v1646_v13  ;;  %2107 = vperm.xlu0 %2665, %v2853_v9   ;;  %v1330_v41 = vpop.xlane.xlu1 %1329  ;;  %v2927_v9 = vld [vmem:[#allocation3 + $0x38] sm:$0xff] }
 0x27d   :  { %v1324_v24 = vpop.xlane.xlu0 %1323  ;;  %v2857_v17 = vpop.eup %2856  ;;  %2882 = vrcp.f32 %v1637_v48  ;;  %2092 = vperm.xlu1 %2664, %v2855_v22   ;;  %v1401_v19 = vadd.f32 %v3511_v51, %v1330_v41  ;;  %v2928_v48 = vld [vmem:[#allocation3 + $0x30] sm:$0xff] }
 0x27e   :  { %v1398_v20 = vadd.f32 %v3511_v51, %v1324_v24  ;;  %v2859_v27 = vpop.eup %2858  ;;  %v1648_v30 = vadd.f32 1.0, %v2857_v17  ;;  %2884 = vpow2.f32 %v2380_v28  ;;  %v1788_v28 = vadd.f32 %v2928_v48, %v2927_v9  ;;  %v2948_v9 = vld [vmem:[#allocation3 + $0x168] sm:$0xff] }
 0x27f   :  { %v2861_v58 = vpop.eup %2860  ;;  %2886 = vpow2.f32 %v2365_v29  ;;  %v2382_v6 = vmul.f32 -1.442695, %v1401_v19 }
 0x280   :  { %v2379_v31 = vmul.f32 -1.442695, %v1398_v20  ;;  %v2863_v37 = vpop.eup %2862  ;;  %2888 = vrcp.f32 %v1648_v30  ;;  %v1651_v62 = vadd.f32 1.0, %v2861_v58  ;;  %2057 = vperm.xlu0 %2665, %v2859_v27   ;;  %v1298_v35 = vpop.xlane.xlu1 %1297 }
 0x281   :  { %v1328_v1 = vpop.xlane.xlu0 %1327  ;;  %v2865_v16 = vpop.eup %2864  ;;  %2890 = vpow2.f32 %v2382_v6  ;;  %2102 = vperm.xlu1 %2664, %v2863_v37   ;;  %v1385_v56 = vadd.f32 %v3511_v51, %v1298_v35  ;;  %v2929_v6 = vld [vmem:[#allocation3 + $0x80] sm:$0xff] }
 0x282   :  { %v1400_v11 = vadd.f32 %v2922_v38, %v1328_v1  ;;  %v2867_v32 = vpop.eup %2866  ;;  %2892 = vrcp.f32 %v1651_v62  ;;  %v1638_v49 = vadd.f32 1.0, %v2865_v16 }
 0x283   :  { %v2869_v52 = vpop.eup %2868  ;;  %2894 = vpow2.f32 %v2379_v31  ;;  %v2366_v25 = vmul.f32 -1.442695, %v1385_v56  ;;  %v2930_v31 = vld [vmem:[#allocation3 + $0x78] sm:$0xff]  ;;  %v2932_v56 = vld [vmem:[#allocation3 + $0x60] sm:$0xff] }
 0x284   :  { %v2381_v63 = vmul.f32 -1.442695, %v1400_v11  ;;  %v2871_v44 = vpop.eup %2870  ;;  %2896 = vrcp.f32 %v1638_v49  ;;  %v1653_v34 = vadd.f32 1.0, %v2869_v52  ;;  %2117 = vperm.xlu0 %2665, %v2867_v32   ;;  %v1791_v37 = vadd.f32 %v2930_v31, %v2929_v6  ;;  %v2933_v52 = vld [vmem:[#allocation3 + $0xb0] sm:$0xff]  ;;  %v2953_v31 = vld [vmem:[#allocation3 + $0x158] sm:$0xff] }
 0x285   :  { %v2873_v42 = vpop.eup %2872  ;;  %2898 = vpow2.f32 %v2366_v25  ;;  %2062 = vperm.xlu1 %2664, %v2871_v44   ;;  %v2934_v25 = vld [vmem:[#allocation3 + $0xa8] sm:$0xff] }
 0x286   :  { %v2875_v46 = vpop.eup %2874  ;;  %2900 = vrcp.f32 %v1653_v34  ;;  %v1650_v45 = vadd.f32 1.0, %v2873_v42  ;;  %v2935_v34 = vld [vmem:[#allocation3 + $0xe0] sm:$0xff]  ;;  %v2936_v42 = vld [vmem:[#allocation3 + $0xd8] sm:$0xff] }
 0x287   :  { %v2877_v51 = vpop.eup %2876  ;;  %2902 = vpow2.f32 %v2381_v63  ;;  %v1793_v63 = vadd.f32 %v2934_v25, %v2933_v52 }
 0x288   :  { %v2879_v23 = vpop.eup %2878  ;;  %2904 = vrcp.f32 %v1650_v45  ;;  %v1639_v57 = vadd.f32 1.0, %v2877_v51  ;;  %2127 = vperm.xlu0 %2665, %v2875_v46   ;;  %v1795_v46 = vadd.f32 %v2936_v42, %v2935_v34  ;;  %v2960_v34 = vld [vmem:[#allocation3 + $0x1f8] sm:$0xff] }
 0x289   :  { %v2881_v59 = vpop.eup %2880  ;;  %v1652_v47 = vadd.f32 1.0, %v2879_v23 }
 0x28a   :  { %v2883_v50 = vpop.eup %2882  ;;  %2906 = vrcp.f32 %v1639_v57  ;;  %2112 = vperm.xlu1 %2664, %v2881_v59   ;;  %v2937_v57 = vld [vmem:[#allocation3 + $0x98] sm:$0xff]  ;;  %v2938_v59 = vld [vmem:[#allocation3 + $0x90] sm:$0xff] }
 0x28b   :  { %v2885_v10 = vpop.eup %2884  ;;  %2908 = vrcp.f32 %v1652_v47  ;;  %v1792_v47 = vadd.f32 %v2938_v59, %v2937_v57 }
 0x28c   :  { %v2887_v21 = vpop.eup %2886  ;;  %v1655_v54 = vadd.f32 1.0, %v2885_v10  ;;  %2067 = vperm.xlu0 %2665, %v2883_v50  }
 0x28d   :  { %v2889_v7 = vpop.eup %2888  ;;  %v1640_v53 = vadd.f32 1.0, %v2887_v21 }
 0x28e   :  { %v2891_v55 = vpop.eup %2890  ;;  %2910 = vrcp.f32 %v1655_v54  ;;  %2122 = vperm.xlu1 %2664, %v2889_v7   ;;  %v2939_v54 = vld [vmem:[#allocation3 + $0x110] sm:$0xff]  ;;  %v2940_v7 = vld [vmem:[#allocation3 + $0x108] sm:$0xff] }
 0x28f   :  { %v2893_v2 = vpop.eup %2892  ;;  %2912 = vrcp.f32 %v1640_v53  ;;  %v1657_v22 = vadd.f32 1.0, %v2891_v55  ;;  %v1797_v53 = vadd.f32 %v2940_v7, %v2939_v54  ;;  %v2942_v55 = vld [vmem:[#allocation3 + $0xc0] sm:$0xff] }
 0x290   :  { %v2895_v4 = vpop.eup %2894  ;;  %2137 = vperm.xlu0 %2665, %v2893_v2   ;;  %v1858_v61 = vpop.permute.xlu1 %1857 }
 0x291   :  { %v2897_v36 = vpop.eup %2896  ;;  %v1654_v40 = vadd.f32 1.0, %v2895_v4  ;;  %v2171_v5 = vmul.f32 %v1858_v61, %v1787_v43  ;;  %v2941_v43 = vld [vmem:[#allocation3 + $0xc8] sm:$0xff] }
 0x292   :  { %v2899_v8 = vpop.eup %2898  ;;  %2072 = vperm.xlu1 %2664, %v2897_v36   ;;  %v1794_v2 = vadd.f32 %v2942_v55, %v2941_v43  ;;  %v2943_v36 = vld [vmem:[#allocation3 + $0x140] sm:$0xff] }
 0x293   :  { %v2901_v0 = vpop.eup %2900  ;;  %2914 = vrcp.f32 %v1654_v40  ;;  %v1641_v18 = vadd.f32 1.0, %v2899_v8  ;;  %2235 = vst [vmem:[#allocation8 + $0x8] sm:$0xff] %v2171_v5  ;;  %v2944_v40 = vld [vmem:[#allocation3 + $0x138] sm:$0xff]  ;;  %v2946_v8 = vld [vmem:[#allocation3 + $0xf0] sm:$0xff] }
 0x294   :  { %v2903_v12 = vpop.eup %2902  ;;  %2147 = vperm.xlu0 %2665, %v2901_v0   ;;  %v1868_v13 = vpop.permute.xlu1 %1867  ;;  %v1799_v5 = vadd.f32 %v2944_v40, %v2943_v36 }
 0x295   :  { %v2905_v29 = vpop.eup %2904  ;;  %2916 = vrcp.f32 %v1641_v18  ;;  %v1656_v41 = vadd.f32 1.0, %v2903_v12  ;;  %v2173_v24 = vmul.f32 %v1868_v13, %v1789_v39  ;;  %v1853_v17 = vpop.permute.xlu0 %1852  ;;  %v2945_v39 = vld [vmem:[#allocation3 + $0xf8] sm:$0xff]  ;;  %v2947_v13 = vld [vmem:[#allocation3 + $0x170] sm:$0xff] }
 0x296   :  { %2132 = vperm.xlu1 %2664, %v2905_v29   ;;  %v2170_v19 = vmul.f32 %v1853_v17, %v3188_v14  ;;  %v2931_v14 = vld [vmem:[#allocation3 + $0x68] sm:$0xff]  ;;  %v1796_v0 = vadd.f32 %v2946_v8, %v2945_v39  ;;  %v1801_v48 = vadd.f32 %v2948_v9, %v2947_v13 }
 0x297   :  { %v2907_v20 = vpop.eup %2906  ;;  %2918 = vrcp.f32 %v1656_v41  ;;  %2237 = vst [vmem:[#allocation8 + $0x18] sm:$0xff] %v2173_v24  ;;  %v1790_v38 = vadd.f32 %v2932_v56, %v2931_v14  ;;  %v2950_v41 = vld [vmem:[#allocation3 + $0x120] sm:$0xff]  ;;  %v2956_v14 = vld [vmem:[#allocation3 + $0x1c8] sm:$0xff] }
 0x298   :  { %v2909_v27 = vpop.eup %2908  ;;  %2234 = vst [vmem:[#allocation8] sm:$0xff] %v2170_v19  ;;  %2077 = vperm.xlu0 %2665, %v2907_v20   ;;  %v1863_v30 = vpop.permute.xlu1 %1862  ;;  %2920 = vrcp.f32 %v1657_v22  ;;  %v2949_v22 = vld [vmem:[#allocation3 + $0x128] sm:$0xff]  ;;  %v2951_v20 = vld [vmem:[#allocation3 + $0x1a0] sm:$0xff] }
 0x299   :  { %v2172_v58 = vmul.f32 %v1863_v30, %v1788_v28  ;;  %v1798_v24 = vadd.f32 %v2950_v41, %v2949_v22 }
 0x29a   :  { %2142 = vperm.xlu1 %2664, %v2909_v27   ;;  %v2952_v27 = vld [vmem:[#allocation3 + $0x198] sm:$0xff] }
 0x29b   :  { %v2911_v62 = vpop.eup %2910  ;;  %2236 = vst [vmem:[#allocation8 + $0x10] sm:$0xff] %v2172_v58  ;;  %v1803_v30 = vadd.f32 %v2952_v27, %v2951_v20 }
 0x29c   :  { %v2913_v35 = vpop.eup %2912  ;;  %2157 = vperm.xlu0 %2665, %v2911_v62   ;;  %v1878_v1 = vpop.permute.xlu1 %1877 }
 0x29d   :  { %v2175_v16 = vmul.f32 %v1878_v1, %v1791_v37  ;;  %v2954_v37 = vld [vmem:[#allocation3 + $0x150] sm:$0xff] }
 0x29e   :  { %2082 = vperm.xlu1 %2664, %v2913_v35   ;;  %v1800_v62 = vadd.f32 %v2954_v37, %v2953_v31 }
 0x29f   :  { %2239 = vst [vmem:[#allocation8 + $0x28] sm:$0xff] %v2175_v16  ;;  %v2955_v16 = vld [vmem:[#allocation3 + $0x1d0] sm:$0xff] }
 0x2a0   :  { %v2915_v11 = vpop.eup %2914  ;;  %v1873_v32 = vpop.permute.xlu1 %1872  ;;  %v1805_v56 = vadd.f32 %v2956_v14, %v2955_v16 }
 0x2a1   :  { %v2174_v49 = vmul.f32 %v1873_v32, %v1790_v38  ;;  %v2957_v32 = vld [vmem:[#allocation3 + $0x188] sm:$0xff] }
 0x2a2   :  { %v2917_v44 = vpop.eup %2916  ;;  %2152 = vperm.xlu1 %2664, %v2915_v11  }
 0x2a3   :  { %2238 = vst [vmem:[#allocation8 + $0x20] sm:$0xff] %v2174_v49  ;;  %2087 = vperm.xlu0 %2665, %v2917_v44   ;;  %v2958_v49 = vld [vmem:[#allocation3 + $0x180] sm:$0xff] }
 0x2a4   :  { %v2919_v45 = vpop.eup %2918  ;;  %v1888_v51 = vpop.permute.xlu1 %1887  ;;  %v1802_v52 = vadd.f32 %v2958_v49, %v2957_v32  ;;  %v2959_v44 = vld [vmem:[#allocation3 + $0x200] sm:$0xff] }
 0x2a5   :  { %v2177_v23 = vmul.f32 %v1888_v51, %v1793_v63  ;;  %v2921_v50 = vpop.eup %2920  ;;  %v1807_v42 = vadd.f32 %v2960_v34, %v2959_v44  ;;  %v2961_v51 = vld [vmem:[#allocation3 + $0x1b8] sm:$0xff] }
 0x2a6   :  { %2162 = vperm.xlu1 %2664, %v2919_v45   ;;  %v1898_v10 = vpop.permute.xlu0 %1897  ;;  %v2984_v44 = vld [vmem:[#allocation3 + $0x318] sm:$0xff] }
 0x2a7   :  { %2241 = vst [vmem:[#allocation8 + $0x38] sm:$0xff] %v2177_v23  ;;  %v2179_v21 = vmul.f32 %v1898_v10, %v1795_v46  ;;  %2167 = vperm.xlu0 %2665, %v2921_v50   ;;  %v2962_v23 = vld [vmem:[#allocation3 + $0x1b0] sm:$0xff]  ;;  %v2964_v10 = vld [vmem:[#allocation3 + $0x228] sm:$0xff] }
 0x2a8   :  { %v1883_v60 = vpop.permute.xlu1 %1882  ;;  %v1804_v57 = vadd.f32 %v2962_v23, %v2961_v51  ;;  %v2963_v50 = vld [vmem:[#allocation3 + $0x230] sm:$0xff] }
 0x2a9   :  { %2243 = vst [vmem:[#allocation8 + $0x48] sm:$0xff] %v2179_v21  ;;  %v2176_v26 = vmul.f32 %v1883_v60, %v1792_v47  ;;  %v1809_v21 = vadd.f32 %v2964_v10, %v2963_v50  ;;  %v2966_v60 = vld [vmem:[#allocation3 + $0x1e0] sm:$0xff] }
 0x2aa   :  { %v1908_v4 = vpop.permute.xlu0 %1907  ;;  %v2988_v50 = vld [vmem:[#allocation3 + $0x300] sm:$0xff] }
 0x2ab   :  { %2240 = vst [vmem:[#allocation8 + $0x30] sm:$0xff] %v2176_v26  ;;  %v2181_v61 = vmul.f32 %v1908_v4, %v1797_v53  ;;  %v2965_v53 = vld [vmem:[#allocation3 + $0x1e8] sm:$0xff]  ;;  %v2968_v4 = vld [vmem:[#allocation3 + $0x258] sm:$0xff] }
 0x2ac   :  { %v1893_v33 = vpop.permute.xlu1 %1892  ;;  %v1806_v26 = vadd.f32 %v2966_v60, %v2965_v53 }
 0x2ad   :  { %2245 = vst [vmem:[#allocation8 + $0x58] sm:$0xff] %v2181_v61  ;;  %v2178_v3 = vmul.f32 %v1893_v33, %v1794_v2  ;;  %v2967_v2 = vld [vmem:[#allocation3 + $0x260] sm:$0xff]  ;;  %v2970_v33 = vld [vmem:[#allocation3 + $0x210] sm:$0xff] }
 0x2ae   :  { %v1918_v18 = vpop.permute.xlu0 %1917  ;;  %v1811_v61 = vadd.f32 %v2968_v4, %v2967_v2 }
 0x2af   :  { %2242 = vst [vmem:[#allocation8 + $0x40] sm:$0xff] %v2178_v3  ;;  %v2183_v12 = vmul.f32 %v1918_v18, %v1799_v5  ;;  %v2969_v5 = vld [vmem:[#allocation3 + $0x218] sm:$0xff]  ;;  %v2972_v18 = vld [vmem:[#allocation3 + $0x288] sm:$0xff] }
 0x2b0   :  { %v1903_v28 = vpop.permute.xlu1 %1902  ;;  %v1808_v3 = vadd.f32 %v2970_v33, %v2969_v5  ;;  %v2994_v5 = vld [vmem:[#allocation3 + $0x360] sm:$0xff] }
 0x2b1   :  { %2247 = vst [vmem:[#allocation8 + $0x68] sm:$0xff] %v2183_v12  ;;  %v2180_v29 = vmul.f32 %v1903_v28, %v1796_v0  ;;  %v2971_v0 = vld [vmem:[#allocation3 + $0x290] sm:$0xff]  ;;  %v2974_v28 = vld [vmem:[#allocation3 + $0x240] sm:$0xff] }
 0x2b2   :  { %v1928_v17 = vpop.permute.xlu0 %1927  ;;  %v1813_v12 = vadd.f32 %v2972_v18, %v2971_v0 }
 0x2b3   :  { %2244 = vst [vmem:[#allocation8 + $0x50] sm:$0xff] %v2180_v29  ;;  %v2185_v19 = vmul.f32 %v1928_v17, %v1801_v48  ;;  %v2973_v48 = vld [vmem:[#allocation3 + $0x248] sm:$0xff]  ;;  %v2976_v17 = vld [vmem:[#allocation3 + $0x2b8] sm:$0xff] }
 0x2b4   :  { %v1913_v58 = vpop.permute.xlu1 %1912  ;;  %v1810_v29 = vadd.f32 %v2974_v28, %v2973_v48  ;;  %v2998_v48 = vld [vmem:[#allocation3 + $0x390] sm:$0xff] }
 0x2b5   :  { %2249 = vst [vmem:[#allocation8 + $0x78] sm:$0xff] %v2185_v19  ;;  %v2182_v6 = vmul.f32 %v1913_v58, %v1798_v24  ;;  %v2975_v24 = vld [vmem:[#allocation3 + $0x2c0] sm:$0xff]  ;;  %v2978_v58 = vld [vmem:[#allocation3 + $0x270] sm:$0xff] }
 0x2b6   :  { %v1938_v35 = vpop.permute.xlu0 %1937  ;;  %v1815_v19 = vadd.f32 %v2976_v17, %v2975_v24  ;;  %v3000_v24 = vld [vmem:[#allocation3 + $0x3a8] sm:$0xff] }
 0x2b7   :  { %2246 = vst [vmem:[#allocation8 + $0x60] sm:$0xff] %v2182_v6  ;;  %v2187_v1 = vmul.f32 %v1938_v35, %v1803_v30  ;;  %v2977_v30 = vld [vmem:[#allocation3 + $0x278] sm:$0xff]  ;;  %v2980_v35 = vld [vmem:[#allocation3 + $0x2e8] sm:$0xff] }
 0x2b8   :  { %v1923_v38 = vpop.permute.xlu1 %1922  ;;  %v1812_v6 = vadd.f32 %v2978_v58, %v2977_v30  ;;  %v3002_v30 = vld [vmem:[#allocation3 + $0x498] sm:$0xff] }
 0x2b9   :  { %2251 = vst [vmem:[#allocation8 + $0x88] sm:$0xff] %v2187_v1  ;;  %v2184_v11 = vmul.f32 %v1923_v38, %v1800_v62  ;;  %v2979_v62 = vld [vmem:[#allocation3 + $0x2f0] sm:$0xff]  ;;  %v2982_v38 = vld [vmem:[#allocation3 + $0x2a0] sm:$0xff] }
 0x2ba   :  { %v1948_v25 = vpop.permute.xlu0 %1947  ;;  %v1817_v1 = vadd.f32 %v2980_v35, %v2979_v62 }
 0x2bb   :  { %2248 = vst [vmem:[#allocation8 + $0x70] sm:$0xff] %v2184_v11  ;;  %v2189_v63 = vmul.f32 %v1948_v25, %v1805_v56  ;;  %v2981_v56 = vld [vmem:[#allocation3 + $0x2a8] sm:$0xff] }
 0x2bc   :  { %v1933_v46 = vpop.permute.xlu1 %1932  ;;  %v1814_v11 = vadd.f32 %v2982_v38, %v2981_v56 }
 0x2bd   :  { %2253 = vst [vmem:[#allocation8 + $0x98] sm:$0xff] %v2189_v63  ;;  %v2186_v45 = vmul.f32 %v1933_v46, %v1802_v52  ;;  %v2983_v63 = vld [vmem:[#allocation3 + $0x320] sm:$0xff]  ;;  %v2986_v46 = vld [vmem:[#allocation3 + $0x2d0] sm:$0xff] }
 0x2be   :  { %v1958_v59 = vpop.permute.xlu0 %1957  ;;  %v1819_v34 = vadd.f32 %v2984_v44, %v2983_v63 }
 0x2bf   :  { %2250 = vst [vmem:[#allocation8 + $0x80] sm:$0xff] %v2186_v45  ;;  %v2191_v47 = vmul.f32 %v1958_v59, %v1807_v42  ;;  %v2985_v42 = vld [vmem:[#allocation3 + $0x2d8] sm:$0xff] }
 0x2c0   :  { %v1943_v54 = vpop.permute.xlu1 %1942  ;;  %v1816_v45 = vadd.f32 %v2986_v46, %v2985_v42  ;;  %v3010_v42 = vld [vmem:[#allocation3 + $0x4b0] sm:$0xff] }
 0x2c1   :  { %2255 = vst [vmem:[#allocation8 + $0xa8] sm:$0xff] %v2191_v47  ;;  %v2188_v7 = vmul.f32 %v1943_v54, %v1804_v57  ;;  %v2987_v47 = vld [vmem:[#allocation3 + $0x308] sm:$0xff] }
 0x2c2   :  { %v1968_v43 = vpop.permute.xlu0 %1967  ;;  %v1818_v10 = vadd.f32 %v2988_v50, %v2987_v47  ;;  %v2990_v54 = vld [vmem:[#allocation3 + $0x348] sm:$0xff] }
 0x2c3   :  { %2252 = vst [vmem:[#allocation8 + $0x90] sm:$0xff] %v2188_v7  ;;  %v2193_v55 = vmul.f32 %v1968_v43, %v1809_v21  ;;  %v2989_v21 = vld [vmem:[#allocation3 + $0x350] sm:$0xff] }
 0x2c4   :  { %v1953_v36 = vpop.permute.xlu1 %1952  ;;  %v1821_v7 = vadd.f32 %v2990_v54, %v2989_v21  ;;  %v2992_v43 = vld [vmem:[#allocation3 + $0x330] sm:$0xff] }
 0x2c5   :  { %2257 = vst [vmem:[#allocation8 + $0xb8] sm:$0xff] %v2193_v55  ;;  %v2190_v40 = vmul.f32 %v1953_v36, %v1806_v26  ;;  %v2991_v26 = vld [vmem:[#allocation3 + $0x338] sm:$0xff]  ;;  %v3014_v21 = vld [vmem:[#allocation3 + $0x3f0] sm:$0xff] }
 0x2c6   :  { %v1978_v39 = vpop.permute.xlu0 %1977  ;;  %v1820_v55 = vadd.f32 %v2992_v43, %v2991_v26  ;;  %v3016_v26 = vld [vmem:[#allocation3 + $0x528] sm:$0xff] }
 0x2c7   :  { %2254 = vst [vmem:[#allocation8 + $0xa0] sm:$0xff] %v2190_v40  ;;  %v2195_v8 = vmul.f32 %v1978_v39, %v1811_v61  ;;  %v2993_v40 = vld [vmem:[#allocation3 + $0x368] sm:$0xff]  ;;  %v2996_v39 = vld [vmem:[#allocation3 + $0x378] sm:$0xff] }
 0x2c8   :  { %v1963_v13 = vpop.permute.xlu1 %1962  ;;  %v1822_v33 = vadd.f32 %v2994_v5, %v2993_v40  ;;  %v3019_v5 = vld [vmem:[#allocation3 + $0x410] sm:$0xff] }
 0x2c9   :  { %2259 = vst [vmem:[#allocation8 + $0xc8] sm:$0xff] %v2195_v8  ;;  %v2192_v9 = vmul.f32 %v1963_v13, %v1808_v3  ;;  %v2995_v3 = vld [vmem:[#allocation3 + $0x380] sm:$0xff] }
 0x2ca   :  { %v1988_v22 = vpop.permute.xlu0 %1987  ;;  %v1823_v8 = vadd.f32 %v2996_v39, %v2995_v3 }
 0x2cb   :  { %2256 = vst [vmem:[#allocation8 + $0xb0] sm:$0xff] %v2192_v9  ;;  %v2197_v41 = vmul.f32 %v1988_v22, %v1813_v12  ;;  %v2997_v9 = vld [vmem:[#allocation3 + $0x398] sm:$0xff] }
 0x2cc   :  { %v1973_v20 = vpop.permute.xlu1 %1972  ;;  %v1824_v28 = vadd.f32 %v2998_v48, %v2997_v9  ;;  %v3023_v48 = vld [vmem:[#allocation3 + $0x560] sm:$0xff] }
 0x2cd   :  { %2261 = vst [vmem:[#allocation8 + $0xd8] sm:$0xff] %v2197_v41  ;;  %v2194_v27 = vmul.f32 %v1973_v20, %v1810_v29  ;;  %v2999_v41 = vld [vmem:[#allocation3 + $0x3b0] sm:$0xff] }
 0x2ce   :  { %v1998_v31 = vpop.permute.xlu0 %1997  ;;  %v1825_v17 = vadd.f32 %v3000_v24, %v2999_v41  ;;  %v3025_v24 = vld [vmem:[#allocation3 + $0x428] sm:$0xff] }
 0x2cf   :  { %2258 = vst [vmem:[#allocation8 + $0xc0] sm:$0xff] %v2194_v27  ;;  %v2199_v37 = vmul.f32 %v1998_v31, %v1815_v19  ;;  %v3001_v27 = vld [vmem:[#allocation3 + $0x4a0] sm:$0xff] }
 0x2d0   :  { %v1983_v16 = vpop.permute.xlu1 %1982  ;;  %v1835_v58 = vadd.f32 %v3002_v30, %v3001_v27  ;;  %v3004_v31 = vld [vmem:[#allocation3 + $0x3c0] sm:$0xff]  ;;  %v3027_v30 = vld [vmem:[#allocation3 + $0x590] sm:$0xff] }
 0x2d1   :  { %2263 = vst [vmem:[#allocation8 + $0xe8] sm:$0xff] %v2199_v37  ;;  %v2196_v14 = vmul.f32 %v1983_v16, %v1812_v6  ;;  %v3003_v6 = vld [vmem:[#allocation3 + $0x3c8] sm:$0xff]  ;;  %v3005_v16 = vld [vmem:[#allocation3 + $0x4d0] sm:$0xff] }
 0x2d2   :  { %v2008_v32 = vpop.permute.xlu0 %2007  ;;  %v1826_v37 = vadd.f32 %v3004_v31, %v3003_v6 }
 0x2d3   :  { %2260 = vst [vmem:[#allocation8 + $0xd0] sm:$0xff] %v2196_v14  ;;  %v2201_v49 = vmul.f32 %v2008_v32, %v1817_v1  ;;  %v3006_v14 = vld [vmem:[#allocation3 + $0x4c8] sm:$0xff] }
 0x2d4   :  { %v1993_v52 = vpop.permute.xlu1 %1992  ;;  %v1837_v56 = vadd.f32 %v3006_v14, %v3005_v16 }
 0x2d5   :  { %2265 = vst [vmem:[#allocation8 + $0xf8] sm:$0xff] %v2201_v49  ;;  %v2198_v25 = vmul.f32 %v1993_v52, %v1814_v11  ;;  %v3007_v52 = vld [vmem:[#allocation3 + $0x3e0] sm:$0xff] }
 0x2d7   :  { %2262 = vst [vmem:[#allocation8 + $0xe0] sm:$0xff] %v2198_v25  ;;  %v3008_v25 = vld [vmem:[#allocation3 + $0x3d8] sm:$0xff] }
 0x2d8   :  { %v2018_v51 = vpop.permute.xlu0 %2017  ;;  %v2003_v23 = vpop.permute.xlu1 %2002  ;;  %v1827_v63 = vadd.f32 %v3008_v25, %v3007_v52  ;;  %v3033_v52 = vld [vmem:[#allocation3 + $0x578] sm:$0xff]  ;;  %v3034_v25 = vld [vmem:[#allocation3 + $0x570] sm:$0xff] }
 0x2d9   :  { %v2203_v57 = vmul.f32 %v2018_v51, %v1819_v34  ;;  %v2200_v59 = vmul.f32 %v2003_v23, %v1816_v45  ;;  %v3009_v34 = vld [vmem:[#allocation3 + $0x4b8] sm:$0xff] }
 0x2da   :  { %v1836_v46 = vadd.f32 %v3010_v42, %v3009_v34  ;;  %v3035_v42 = vld [vmem:[#allocation3 + $0x5c0] sm:$0xff] }
 0x2db   :  { %2267 = vst [vmem:[#allocation8 + $0x108] sm:$0xff] %v2203_v57  ;;  %2264 = vst [vmem:[#allocation8 + $0xf0] sm:$0xff] %v2200_v59  ;;  %v3011_v57 = vld [vmem:[#allocation3 + $0x500] sm:$0xff]  ;;  %v3012_v59 = vld [vmem:[#allocation3 + $0x4f8] sm:$0xff] }
 0x2dc   :  { %v2013_v53 = vpop.permute.xlu1 %2012  ;;  %v1839_v47 = vadd.f32 %v3012_v59, %v3011_v57  ;;  %v3037_v57 = vld [vmem:[#allocation3 + $0x458] sm:$0xff]  ;;  %v3038_v59 = vld [vmem:[#allocation3 + $0x450] sm:$0xff] }
 0x2dd   :  { %v2202_v60 = vmul.f32 %v2013_v53, %v1818_v10  ;;  %v3013_v10 = vld [vmem:[#allocation3 + $0x3f8] sm:$0xff] }
 0x2de   :  { %v2028_v2 = vpop.permute.xlu0 %2027  ;;  %v1828_v54 = vadd.f32 %v3014_v21, %v3013_v10 }
 0x2df   :  { %2266 = vst [vmem:[#allocation8 + $0x100] sm:$0xff] %v2202_v60  ;;  %v2205_v4 = vmul.f32 %v2028_v2, %v1821_v7  ;;  %v3015_v60 = vld [vmem:[#allocation3 + $0x530] sm:$0xff]  ;;  %v3017_v2 = vld [vmem:[#allocation3 + $0x4e8] sm:$0xff] }
 0x2e0   :  { %v2023_v61 = vpop.permute.xlu1 %2022  ;;  %v1841_v43 = vadd.f32 %v3016_v26, %v3015_v60  ;;  %v3041_v60 = vld [vmem:[#allocation3 + $0x470] sm:$0xff]  ;;  %v3042_v26 = vld [vmem:[#allocation3 + $0x468] sm:$0xff] }
 0x2e1   :  { %2269 = vst [vmem:[#allocation8 + $0x118] sm:$0xff] %v2205_v4  ;;  %v2204_v36 = vmul.f32 %v2023_v61, %v1820_v55  ;;  %v3018_v4 = vld [vmem:[#allocation3 + $0x4e0] sm:$0xff] }
 0x2e2   :  { %v1838_v61 = vadd.f32 %v3018_v4, %v3017_v2  ;;  %v3043_v4 = vld [vmem:[#allocation3 + $0x5d8] sm:$0xff] }
 0x2e3   :  { %2268 = vst [vmem:[#allocation8 + $0x110] sm:$0xff] %v2204_v36 }
 0x2e4   :  { %v2033_v0 = vpop.permute.xlu1 %2032 }
 0x2e5   :  { %v2206_v18 = vmul.f32 %v2033_v0, %v1822_v33  ;;  %v3020_v33 = vld [vmem:[#allocation3 + $0x408] sm:$0xff]  ;;  %v3021_v0 = vld [vmem:[#allocation3 + $0x518] sm:$0xff] }
 0x2e6   :  { %v2038_v12 = vpop.permute.xlu0 %2037  ;;  %v1829_v3 = vadd.f32 %v3020_v33, %v3019_v5  ;;  %v3045_v33 = vld [vmem:[#allocation3 + $0x5f0] sm:$0xff] }
 0x2e7   :  { %2270 = vst [vmem:[#allocation8 + $0x120] sm:$0xff] %v2206_v18  ;;  %v2207_v13 = vmul.f32 %v2038_v12, %v1823_v8  ;;  %v3022_v18 = vld [vmem:[#allocation3 + $0x510] sm:$0xff] }
 0x2e8   :  { %v1840_v12 = vadd.f32 %v3022_v18, %v3021_v0 }
 0x2e9   :  { %2271 = vst [vmem:[#allocation8 + $0x128] sm:$0xff] %v2207_v13 }
 0x2eb   :  { %v2043_v29 = vpop.permute.xlu1 %2042 }
 0x2ec   :  { %v2208_v22 = vmul.f32 %v2043_v29, %v1824_v28  ;;  %v3024_v28 = vld [vmem:[#allocation3 + $0x558] sm:$0xff] }
 0x2ed   :  { %v1843_v29 = vadd.f32 %v3024_v28, %v3023_v48 }
 0x2ee   :  { %2272 = vst [vmem:[#allocation8 + $0x130] sm:$0xff] %v2208_v22 }
 0x2ef   :  { %v2048_v19 = vpop.permute.xlu0 %2047 }
 0x2f0   :  { %v2209_v20 = vmul.f32 %v2048_v19, %v1825_v17  ;;  %v3026_v17 = vld [vmem:[#allocation3 + $0x420] sm:$0xff] }
 0x2f1   :  { %v1830_v19 = vadd.f32 %v3026_v17, %v3025_v24 }
 0x2f2   :  { %2273 = vst [vmem:[#allocation8 + $0x138] sm:$0xff] %v2209_v20 }
 0x2f3   :  { %v2098_v62 = vpop.permute.xlu0 %2097 }
 0x2f4   :  { %v2053_v35 = vpop.permute.xlu1 %2052  ;;  %v2219_v1 = vmul.f32 %v2098_v62, %v1835_v58  ;;  %v3028_v58 = vld [vmem:[#allocation3 + $0x588] sm:$0xff] }
 0x2f5   :  { %v2210_v38 = vmul.f32 %v2053_v35, %v1826_v37  ;;  %v1845_v6 = vadd.f32 %v3028_v58, %v3027_v30  ;;  %v3029_v62 = vld [vmem:[#allocation3 + $0x548] sm:$0xff]  ;;  %v3030_v35 = vld [vmem:[#allocation3 + $0x540] sm:$0xff] }
 0x2f6   :  { %2283 = vst [vmem:[#allocation8 + $0x188] sm:$0xff] %v2219_v1  ;;  %v1842_v1 = vadd.f32 %v3030_v35, %v3029_v62 }
 0x2f7   :  { %2274 = vst [vmem:[#allocation8 + $0x140] sm:$0xff] %v2210_v38  ;;  %v2108_v11 = vpop.permute.xlu0 %2107  ;;  %v3032_v38 = vld [vmem:[#allocation3 + $0x438] sm:$0xff] }
 0x2f8   :  { %v2093_v32 = vpop.permute.xlu1 %2092  ;;  %v2221_v49 = vmul.f32 %v2108_v11, %v1837_v56  ;;  %v3031_v56 = vld [vmem:[#allocation3 + $0x440] sm:$0xff] }
 0x2f9   :  { %v2218_v44 = vmul.f32 %v2093_v32, %v3192_v15  ;;  %v1831_v11 = vadd.f32 %v3032_v38, %v3031_v56 }
 0x2fa   :  { %2285 = vst [vmem:[#allocation8 + $0x198] sm:$0xff] %v2221_v49 }
 0x2fb   :  { %2282 = vst [vmem:[#allocation8 + $0x180] sm:$0xff] %v2218_v44  ;;  %v2058_v45 = vpop.permute.xlu0 %2057 }
 0x2fc   :  { %v2103_v51 = vpop.permute.xlu1 %2102  ;;  %v2211_v23 = vmul.f32 %v2058_v45, %v1827_v63  ;;  %v1844_v63 = vadd.f32 %v3034_v25, %v3033_v52 }
 0x2fd   :  { %v2220_v50 = vmul.f32 %v2103_v51, %v1836_v46  ;;  %v3036_v46 = vld [vmem:[#allocation3 + $0x5b8] sm:$0xff] }
 0x2fe   :  { %2275 = vst [vmem:[#allocation8 + $0x148] sm:$0xff] %v2211_v23  ;;  %v1847_v45 = vadd.f32 %v3036_v46, %v3035_v42 }
 0x2ff   :  { %2284 = vst [vmem:[#allocation8 + $0x190] sm:$0xff] %v2220_v50  ;;  %v2118_v7 = vpop.permute.xlu0 %2117 }
 0x300   :  { %v2063_v53 = vpop.permute.xlu1 %2062  ;;  %v2223_v15 = vmul.f32 %v2118_v7, %v1839_v47  ;;  %v1832_v47 = vadd.f32 %v3038_v59, %v3037_v57  ;;  %v3039_v7 = vld [vmem:[#allocation3 + $0x5a8] sm:$0xff] }
 0x301   :  { %v2212_v55 = vmul.f32 %v2063_v53, %v1828_v54  ;;  %v3040_v53 = vld [vmem:[#allocation3 + $0x5a0] sm:$0xff] }
 0x302   :  { %2287 = vst [vmem:[#allocation8 + $0x1a8] sm:$0xff] %v2223_v15  ;;  %v1846_v15 = vadd.f32 %v3040_v53, %v3039_v7 }
 0x303   :  { %2276 = vst [vmem:[#allocation8 + $0x150] sm:$0xff] %v2212_v55  ;;  %v2128_v36 = vpop.permute.xlu0 %2127 }
 0x304   :  { %v2225_v40 = vmul.f32 %v2128_v36, %v1841_v43  ;;  %v1833_v43 = vadd.f32 %v3042_v26, %v3041_v60 }
 0x305   :  { %v2113_v39 = vpop.permute.xlu1 %2112 }
 0x306   :  { %v2222_v8 = vmul.f32 %v2113_v39, %v1838_v61  ;;  %2289 = vst [vmem:[#allocation8 + $0x1b8] sm:$0xff] %v2225_v40  ;;  %v3044_v61 = vld [vmem:[#allocation3 + $0x5d0] sm:$0xff] }
 0x307   :  { %v2068_v13 = vpop.permute.xlu0 %2067  ;;  %v1848_v36 = vadd.f32 %v3044_v61, %v3043_v4 }
 0x308   :  { %2286 = vst [vmem:[#allocation8 + $0x1a0] sm:$0xff] %v2222_v8  ;;  %v2213_v9 = vmul.f32 %v2068_v13, %v1829_v3  ;;  %v3046_v3 = vld [vmem:[#allocation3 + $0x5e8] sm:$0xff] }
 0x309   :  { %v2123_v22 = vpop.permute.xlu1 %2122  ;;  %v1849_v39 = vadd.f32 %v3046_v3, %v3045_v33 }
 0x30a   :  { %v2224_v41 = vmul.f32 %v2123_v22, %v1840_v12  ;;  %2277 = vst [vmem:[#allocation8 + $0x158] sm:$0xff] %v2213_v9 }
 0x30b   :  { %v2138_v20 = vpop.permute.xlu0 %2137 }
 0x30c   :  { %2288 = vst [vmem:[#allocation8 + $0x1b0] sm:$0xff] %v2224_v41  ;;  %v2227_v27 = vmul.f32 %v2138_v20, %v1843_v29 }
 0x30d   :  { %v2073_v31 = vpop.permute.xlu1 %2072 }
 0x30e   :  { %v2214_v37 = vmul.f32 %v2073_v31, %v1830_v19  ;;  %2291 = vst [vmem:[#allocation8 + $0x1c8] sm:$0xff] %v2227_v27 }
 0x30f   :  { %v2148_v16 = vpop.permute.xlu0 %2147 }
 0x310   :  { %2278 = vst [vmem:[#allocation8 + $0x160] sm:$0xff] %v2214_v37  ;;  %v2229_v14 = vmul.f32 %v2148_v16, %v1845_v6 }
 0x311   :  { %v2133_v32 = vpop.permute.xlu1 %2132 }
 0x312   :  { %v2226_v49 = vmul.f32 %v2133_v32, %v1842_v1  ;;  %2293 = vst [vmem:[#allocation8 + $0x1d8] sm:$0xff] %v2229_v14 }
 0x313   :  { %v2078_v44 = vpop.permute.xlu0 %2077 }
 0x314   :  { %2290 = vst [vmem:[#allocation8 + $0x1c0] sm:$0xff] %v2226_v49  ;;  %v2215_v34 = vmul.f32 %v2078_v44, %v1831_v11 }
 0x315   :  { %v2143_v51 = vpop.permute.xlu1 %2142 }
 0x316   :  { %v2228_v23 = vmul.f32 %v2143_v51, %v1844_v63  ;;  %2279 = vst [vmem:[#allocation8 + $0x168] sm:$0xff] %v2215_v34 }
 0x317   :  { %v2158_v50 = vpop.permute.xlu0 %2157 }
 0x318   :  { %2292 = vst [vmem:[#allocation8 + $0x1d0] sm:$0xff] %v2228_v23  ;;  %v2231_v10 = vmul.f32 %v2158_v50, %v1847_v45 }
 0x319   :  { %v2083_v21 = vpop.permute.xlu1 %2082 }
 0x31a   :  { %v2216_v54 = vmul.f32 %v2083_v21, %v1832_v47  ;;  %2295 = vst [vmem:[#allocation8 + $0x1e8] sm:$0xff] %v2231_v10 }
 0x31c   :  { %2280 = vst [vmem:[#allocation8 + $0x170] sm:$0xff] %v2216_v54 }
 0x31d   :  { %v2153_v55 = vpop.permute.xlu1 %2152 }
 0x31e   :  { %v2230_v2 = vmul.f32 %v2153_v55, %v1846_v15  ;;  %v2088_v40 = vpop.permute.xlu0 %2087 }
 0x31f   :  { %v2217_v5 = vmul.f32 %v2088_v40, %v1833_v43 }
 0x320   :  { %2294 = vst [vmem:[#allocation8 + $0x1e0] sm:$0xff] %v2230_v2 }
 0x321   :  { %v2163_v8 = vpop.permute.xlu1 %2162  ;;  %2281 = vst [vmem:[#allocation8 + $0x178] sm:$0xff] %v2217_v5 }
 0x322   :  { %v2232_v0 = vmul.f32 %v2163_v8, %v1848_v36  ;;  %v2168_v18 = vpop.permute.xlu0 %2167 }
 0x323   :  { %v2233_v12 = vmul.f32 %v2168_v18, %v1849_v39 }
 0x324   :  { %2296 = vst [vmem:[#allocation8 + $0x1f0] sm:$0xff] %v2232_v0 }
 0x325   :  { %2297 = vst [vmem:[#allocation8 + $0x1f8] sm:$0xff] %v2233_v12 }
 0x326   :  { %3098 = shalt.err (!%p3095_p0)
}
 0x327   :  { %2309 = dma.vmem_to_hbm [thread:$0]  %s2304_s3, 8192, %s3593_s5, [#allocation5], %s3117_s29, %s3117_s29, %s3118_s30  }
 0x328   :  { %3111 = dma.done.wait [#allocation5], 8192  }
 0x329   :  { %3112 = vsyncadd [#allocation5], 4294959104 }
 0x32a   :  { %2313 = vsyncpa [#allocation4], 1 }
 0x32b   :  { %2314 = vsyncpa [#allocation7], 1 }
 0x32c   :  { %2315 = vsyncpa [#allocation5], 1 }

</bundles_post_ra>
